<compile_context>
chip_gen: v5e
topology: v5e:2x2
jax: 0.10.0
libtpu: 0.0.40
codegen_flags: <defaults>
</compile_context>

<pallas_src>
from functools import partial

import jax
import jax.numpy as jnp
from jax.experimental import pallas as pl
from jax.experimental.pallas import tpu as pltpu


def _round_up(x, m):
    return ((x + m - 1) // m) * m


def _choose_tile_m(M, max_tile=512, align=16):
    """Largest tile (multiple of `align`) that evenly divides the aligned row
    count and is <= max_tile: no padded-row MXU work, and >=2 grid steps as
    soon as M grows past max_tile."""
    Mp = _round_up(max(M, align), align)
    for nt in range(1, Mp // align + 1):
        tm = Mp // nt
        if Mp % nt == 0 and tm % align == 0 and tm <= max_tile:
            return tm, Mp
    return max_tile, _round_up(Mp, max_tile)


def _choose_chunk_k(K, max_chunk=1024):
    """Largest multiple of 128 that divides K and is <= max_chunk."""
    best, c = 128, 128
    while c <= max_chunk:
        if K % c == 0:
            best = c
        c += 128
    return best


# ----------------------------------------------------------------------------
# Kernel 1: out = relu(x @ w + b).  bf16 MXU operands, f32 accumulate/epilogue,
# bf16 store.  Used for conv1 / conv2 / conv3 as im2col matmuls; M tiled on a
# "parallel" grid axis, weights VMEM-resident across M tiles.
# ----------------------------------------------------------------------------
def _matmul_bias_relu_kernel(x_ref, w_ref, b_ref, o_ref):
    acc = jnp.dot(x_ref[...], w_ref[...], preferred_element_type=jnp.float32)
    o_ref[...] = jnp.maximum(acc + b_ref[...], 0.0).astype(o_ref.dtype)


def fused_linear_relu(x, w_p, b_p, *, max_tile_m=512):
    """x: (M, K) bf16; w_p: (K, Np) bf16 lane-padded; b_p: (1, Np) f32.
    Returns relu(x @ w_p + b_p) as (M, Np) bf16."""
    M, K = x.shape
    Kp, Np = w_p.shape
    assert K == Kp, (K, Kp)

    tm, Mg = _choose_tile_m(M, max_tile_m)
    if Mg != M:
        x = jnp.zeros((Mg, K), x.dtype).at[:M, :].set(x)

    out = pl.pallas_call(
        _matmul_bias_relu_kernel,
        out_shape=jax.ShapeDtypeStruct((Mg, Np), jnp.bfloat16),
        grid=(Mg // tm,),
        in_specs=[
            pl.BlockSpec((tm, K), lambda i: (i, 0)),
            pl.BlockSpec((Kp, Np), lambda i: (0, 0)),   # weight VMEM-resident
            pl.BlockSpec((1, Np), lambda i: (0, 0)),
        ],
        out_specs=pl.BlockSpec((tm, Np), lambda i: (i, 0)),
        compiler_params=pltpu.CompilerParams(
            dimension_semantics=("parallel",)),
    )(x, w_p, b_p)
    return out[:M]


# ----------------------------------------------------------------------------
# Kernel 2: FC1 (3136->512, flattened/padded to 6272->512) + ReLU + FC2.
# The FC1 weight is the dominant HBM traffic (6.4 MB bf16), so it is streamed
# over a K-chunked reduction grid; partial products accumulate into an f32
# VMEM scratch, and the last grid step applies bias+ReLU and the FC2 matmul.
# ----------------------------------------------------------------------------
def _fc_tail_kernel(h_ref, wf1_ref, bf1_ref, wf2_ref, bf2_ref, q_ref, acc_ref):
    k = pl.program_id(0)

    @pl.when(k == 0)
    def _init():
        acc_ref[...] = jnp.zeros_like(acc_ref)

    acc_ref[...] += jnp.dot(h_ref[...], wf1_ref[...],
                            preferred_element_type=jnp.float32)

    @pl.when(k == pl.num_programs(0) - 1)
    def _finalize():
        h = jnp.maximum(acc_ref[...] + bf1_ref[...], 0.0)          # (B, 512) f32
        q_ref[...] = (jnp.dot(h.astype(jnp.bfloat16), wf2_ref[...],
                              preferred_element_type=jnp.float32)
                      + bf2_ref[...])


def fc_tail(h_in, prepared):
    """h_in: (B, 6272) bf16 flattened conv3 output -> (B, 128) f32 padded Q."""
    wf1, bf1 = prepared["wf1"], prepared["bf1"]
    wf2, bf2 = prepared["wf2"], prepared["bf2"]
    B, Kf = h_in.shape
    nh = wf1.shape[1]                  # 512
    Np = wf2.shape[1]                  # 128 (lane-padded action dim)
    kc = _choose_chunk_k(Kf)           # 896 for Kf = 49*128
    nk = Kf // kc

    return pl.pallas_call(
        _fc_tail_kernel,
        out_shape=jax.ShapeDtypeStruct((B, Np), jnp.float32),
        grid=(nk,),
        in_specs=[
            pl.BlockSpec((B, kc), lambda k: (0, k)),
            pl.BlockSpec((kc, nh), lambda k: (k, 0)),   # FC1 weight: pipelined
            pl.BlockSpec((1, nh), lambda k: (0, 0)),
            pl.BlockSpec((nh, Np), lambda k: (0, 0)),
            pl.BlockSpec((1, Np), lambda k: (0, 0)),
        ],
        out_specs=pl.BlockSpec((B, Np), lambda k: (0, 0)),
        scratch_shapes=[pltpu.VMEM((B, nh), jnp.float32)],
        compiler_params=pltpu.CompilerParams(
            dimension_semantics=("arbitrary",)),
    )(h_in, wf1, bf1, wf2, bf2)


# ----------------------------------------------------------------------------
# im2col glue (plain JAX, small): NHWC -> (B, oh, ow, kh*kw*C) patches.
# ----------------------------------------------------------------------------
def _im2col(x, kh, kw, stride):
    B, H, W, C = x.shape
    oh = (H - kh) // stride + 1
    ow = (W - kw) // stride + 1
    cols = []
    for i in range(kh):
        for j in range(kw):
            cols.append(
                x[:, i:i + stride * (oh - 1) + 1:stride,
                  j:j + stride * (ow - 1) + 1:stride, :]
            )
    return jnp.concatenate(cols, axis=-1), oh, ow


# ----------------------------------------------------------------------------
# Parameters.
# init_qnetwork_params: conv weights stored in im2col layout (KH*KW*Cin, Cout)
#   with (kh, kw, cin) row order; Linear weights (in, out) with FC1 input rows
#   in PyTorch's NCHW-flatten order (c*49 + i*7 + j).
# prepare_params: one-time conversion -> lane-padded bf16 weights, f32 biases,
#   /255 folded into w1, FC1 rows permuted to position-major padded-channel
#   order (p*128 + c) so the flatten after conv3 is a free reshape.
# ----------------------------------------------------------------------------
def init_qnetwork_params(key, n_actions):
    ks = jax.random.split(key, 10)
    s = 0.05
    return {
        "w1": jax.random.normal(ks[0], (8 * 8 * 4, 32), jnp.float32) * s,
        "b1": jax.random.normal(ks[1], (32,), jnp.float32) * s,
        "w2": jax.random.normal(ks[2], (4 * 4 * 32, 64), jnp.float32) * s,
        "b2": jax.random.normal(ks[3], (64,), jnp.float32) * s,
        "w3": jax.random.normal(ks[4], (3 * 3 * 64, 64), jnp.float32) * s,
        "b3": jax.random.normal(ks[5], (64,), jnp.float32) * s,
        "wf1": jax.random.normal(ks[6], (3136, 512), jnp.float32) * s,
        "bf1": jax.random.normal(ks[7], (512,), jnp.float32) * s,
        "wf2": jax.random.normal(ks[8], (512, n_actions), jnp.float32) * s,
        "bf2": jax.random.normal(ks[9], (n_actions,), jnp.float32) * s,
    }


def prepare_params(params):
    def pad_w(w, scale=None):
        if scale is not None:
            w = w * scale
        K, N = w.shape
        Np = max(128, _round_up(N, 128))
        if Np != N:
            w = jnp.zeros((K, Np), w.dtype).at[:, :N].set(w)
        return w.astype(jnp.bfloat16)

    def pad_b(b):
        N = b.shape[0]
        Np = max(128, _round_up(N, 128))
        return jnp.zeros((1, Np), jnp.float32).at[0, :N].set(
            b.astype(jnp.float32))

    c3 = params["w3"].shape[1]                    # 64 conv3 out channels
    n_hidden = params["wf1"].shape[1]             # 512
    n_pos = params["wf1"].shape[0] // c3          # 49 spatial positions
    c3p = max(128, _round_up(c3, 128))            # 128

    # FC1 rows: PyTorch NCHW-flatten order (c*n_pos + p) -> (p*c3p + c),
    # zero rows for the padded conv3 channels.
    wf1_r = params["wf1"].reshape(c3, n_pos, n_hidden).transpose(1, 0, 2)
    wf1_p = jnp.zeros((n_pos, c3p, n_hidden), jnp.float32).at[:, :c3, :].set(
        wf1_r)
    wf1_p = wf1_p.reshape(n_pos * c3p, n_hidden).astype(jnp.bfloat16)

    return {
        "w1": pad_w(params["w1"], 1.0 / 255.0),   # /255 folded into conv1
        "b1": pad_b(params["b1"]),
        "w2": pad_w(params["w2"]),
        "b2": pad_b(params["b2"]),
        "w3": pad_w(params["w3"]),
        "b3": pad_b(params["b3"]),
        "wf1": wf1_p,                             # (6272, 512) bf16
        "bf1": pad_b(params["bf1"]),
        "wf2": pad_w(params["wf2"]),
        "bf2": pad_b(params["bf2"]),
    }


# ----------------------------------------------------------------------------
# Forward:  Conv(4->32,8,s4) ReLU, Conv(32->64,4,s2) ReLU,
#           Conv(64->64,3,s1) ReLU, Flatten, Linear(3136,512) ReLU,
#           Linear(512, n_actions);  input scaling x/255 is folded into w1.
# ----------------------------------------------------------------------------
@partial(jax.jit, static_argnames=("n_actions",))
def qnetwork_forward(x_nchw, prepared, *, n_actions):
    B = x_nchw.shape[0]
    # NCHW -> NHWC, bf16 activations from the start.
    x = jnp.transpose(x_nchw.astype(jnp.bfloat16), (0, 2, 3, 1))

    # Conv1 (8x8, stride 4): 84x84x4 -> 20x20x32.
    p, oh, ow = _im2col(x, 8, 8, 4)
    y = fused_linear_relu(p.reshape(B * oh * ow, -1),
                          prepared["w1"], prepared["b1"])
    x = y.reshape(B, oh, ow, -1)[..., :32]

    # Conv2 (4x4, stride 2): 20x20x32 -> 9x9x64.
    p, oh, ow = _im2col(x, 4, 4, 2)
    y = fused_linear_relu(p.reshape(B * oh * ow, -1),
                          prepared["w2"], prepared["b2"])
    x = y.reshape(B, oh, ow, -1)[..., :64]

    # Conv3 (3x3, stride 1): 9x9x64 -> 7x7x64, kept 128-channel-padded.
    # Padded channels are exactly zero and the matching FC1 rows are zero.
    p, oh, ow = _im2col(x, 3, 3, 1)
    y = fused_linear_relu(p.reshape(B * oh * ow, -1),
                          prepared["w3"], prepared["b3"])        # (B*49, 128)

    # Flatten: rows are (batch, position)-major, so this is a contiguous
    # reshape matching the prepared FC1 row order (p*128 + c).
    h_in = y.reshape(B, oh * ow * y.shape[-1])                   # (B, 6272)

    # FC1 + ReLU + FC2 with the FC1 weight streamed over K chunks.
    q = fc_tail(h_in, prepared)                                  # (B, 128) f32
    return q[:, :n_actions]


if __name__ == "__main__":
    n_actions = 6  # e.g. Atari Pong-style action space
    key = jax.random.PRNGKey(0)
    k_param, k_input = jax.random.split(key)

    params = init_qnetwork_params(k_param, n_actions)
    prepared = prepare_params(params)   # one-time weight prep (pad/bf16/fold)

    # Spatial size is fixed at 84x84 by Linear(3136,512) = 64*7*7; small batch.
    x = jax.random.uniform(
        k_input, (2, 4, 84, 84), dtype=jnp.float32, minval=0.0, maxval=255.0
    )

    q = qnetwork_forward(x, prepared, n_actions=n_actions)
    jax.block_until_ready(q)
    assert q.shape == (2, n_actions), q.shape
    print("KERNEL_OK")
</pallas_src>

<mosaic_0001>
module attributes {stable_mosaic.version = 11 : i64} {
  func.func @_matmul_bias_relu_kernel(%arg0: i32, %arg1: memref<400x256xbf16, #tpu.memory_space<vmem>>, %arg2: memref<256x128xbf16, #tpu.memory_space<vmem>>, %arg3: memref<1x128xf32, #tpu.memory_space<vmem>>, %arg4: memref<400x128xbf16, #tpu.memory_space<vmem>>) attributes {dimension_semantics = [#tpu.dimension_semantics<parallel>], iteration_bounds = array<i64: 2>, scalar_prefetch = 0 : i64, scratch_operands = 0 : i64, tpu.core_type = #tpu.core_type<tc>, window_params = [{transform_indices = @transform_0, window_bounds = array<i64: 400, 256>}, {pipeline_mode = #tpu.pipeline_mode<synchronous>, transform_indices = @transform_1, window_bounds = array<i64: 256, 128>}, {pipeline_mode = #tpu.pipeline_mode<synchronous>, transform_indices = @transform_2, window_bounds = array<i64: 1, 128>}, {transform_indices = @transform_3, window_bounds = array<i64: 400, 128>}]} {
    %c0 = arith.constant 0 : index
    %c0_0 = arith.constant 0 : index
    %0 = vector.load %arg1[%c0, %c0_0] : memref<400x256xbf16, #tpu.memory_space<vmem>>, vector<400x256xbf16>
    %c0_1 = arith.constant 0 : index
    %c0_2 = arith.constant 0 : index
    %1 = vector.load %arg2[%c0_1, %c0_2] : memref<256x128xbf16, #tpu.memory_space<vmem>>, vector<256x128xbf16>
    %cst = arith.constant dense<0.000000e+00> : vector<400x128xf32>
    %2 = tpu.matmul %0, %1, %cst {dimension_numbers = #tpu.dot_dimension_numbers<[1], [0], [0], [1], [0, 0, 1, 1], [], []>} : vector<400x256xbf16>, vector<256x128xbf16>, vector<400x128xf32> -> vector<400x128xf32>
    %c0_3 = arith.constant 0 : index
    %c0_4 = arith.constant 0 : index
    %3 = vector.load %arg3[%c0_3, %c0_4] : memref<1x128xf32, #tpu.memory_space<vmem>>, vector<1x128xf32>
    %4 = vector.broadcast %3 : vector<1x128xf32> to vector<400x128xf32>
    %5 = arith.addf %2, %4 : vector<400x128xf32>
    %cst_5 = arith.constant 0.000000e+00 : f32
    %6 = vector.broadcast %cst_5 : f32 to vector<400x128xf32>
    %7 = arith.maximumf %5, %6 : vector<400x128xf32>
    %8 = arith.truncf %7 : vector<400x128xf32> to vector<400x128xbf16>
    %c0_6 = arith.constant 0 : index
    %c0_7 = arith.constant 0 : index
    %9 = vector.load %arg4[%c0_6, %c0_7] : memref<400x128xbf16, #tpu.memory_space<vmem>>, vector<400x128xbf16>
    tpu.vector_store %arg4[%c0_6, %c0_7], %8 {strides = array<i32>} : memref<400x128xbf16, #tpu.memory_space<vmem>>, vector<400x128xbf16>,
    return
  }
  func.func @transform_0(%arg0: i32) -> (i32, i32) {
    %c0_i32 = arith.constant 0 : i32
    %c0_i32_0 = arith.constant 0 : i32
    return %arg0, %c0_i32 : i32, i32
  }
  func.func @transform_1(%arg0: i32) -> (i32, i32) {
    %c0_i32 = arith.constant 0 : i32
    %c0_i32_0 = arith.constant 0 : i32
    %c0_i32_1 = arith.constant 0 : i32
    return %c0_i32, %c0_i32_0 : i32, i32
  }
  func.func @transform_2(%arg0: i32) -> (i32, i32) {
    %c0_i32 = arith.constant 0 : i32
    %c0_i32_0 = arith.constant 0 : i32
    %c0_i32_1 = arith.constant 0 : i32
    return %c0_i32, %c0_i32_0 : i32, i32
  }
  func.func @transform_3(%arg0: i32) -> (i32, i32) {
    %c0_i32 = arith.constant 0 : i32
    %c0_i32_0 = arith.constant 0 : i32
    return %arg0, %c0_i32 : i32, i32
  }
}

module attributes {stable_mosaic.version = 11 : i64} {
  func.func @_matmul_bias_relu_kernel(%arg0: i32, %arg1: memref<176x512xbf16, #tpu.memory_space<vmem>>, %arg2: memref<512x128xbf16, #tpu.memory_space<vmem>>, %arg3: memref<1x128xf32, #tpu.memory_space<vmem>>, %arg4: memref<176x128xbf16, #tpu.memory_space<vmem>>) attributes {dimension_semantics = [#tpu.dimension_semantics<parallel>], iteration_bounds = array<i64: 1>, scalar_prefetch = 0 : i64, scratch_operands = 0 : i64, tpu.core_type = #tpu.core_type<tc>, window_params = [{transform_indices = @transform_0, window_bounds = array<i64: 176, 512>}, {pipeline_mode = #tpu.pipeline_mode<synchronous>, transform_indices = @transform_1, window_bounds = array<i64: 512, 128>}, {pipeline_mode = #tpu.pipeline_mode<synchronous>, transform_indices = @transform_2, window_bounds = array<i64: 1, 128>}, {transform_indices = @transform_3, window_bounds = array<i64: 176, 128>}]} {
    %c0 = arith.constant 0 : index
    %c0_0 = arith.constant 0 : index
    %0 = vector.load %arg1[%c0, %c0_0] : memref<176x512xbf16, #tpu.memory_space<vmem>>, vector<176x512xbf16>
    %c0_1 = arith.constant 0 : index
    %c0_2 = arith.constant 0 : index
    %1 = vector.load %arg2[%c0_1, %c0_2] : memref<512x128xbf16, #tpu.memory_space<vmem>>, vector<512x128xbf16>
    %cst = arith.constant dense<0.000000e+00> : vector<176x128xf32>
    %2 = tpu.matmul %0, %1, %cst {dimension_numbers = #tpu.dot_dimension_numbers<[1], [0], [0], [1], [0, 0, 1, 1], [], []>} : vector<176x512xbf16>, vector<512x128xbf16>, vector<176x128xf32> -> vector<176x128xf32>
    %c0_3 = arith.constant 0 : index
    %c0_4 = arith.constant 0 : index
    %3 = vector.load %arg3[%c0_3, %c0_4] : memref<1x128xf32, #tpu.memory_space<vmem>>, vector<1x128xf32>
    %4 = vector.broadcast %3 : vector<1x128xf32> to vector<176x128xf32>
    %5 = arith.addf %2, %4 : vector<176x128xf32>
    %cst_5 = arith.constant 0.000000e+00 : f32
    %6 = vector.broadcast %cst_5 : f32 to vector<176x128xf32>
    %7 = arith.maximumf %5, %6 : vector<176x128xf32>
    %8 = arith.truncf %7 : vector<176x128xf32> to vector<176x128xbf16>
    %c0_6 = arith.constant 0 : index
    %c0_7 = arith.constant 0 : index
    %9 = vector.load %arg4[%c0_6, %c0_7] : memref<176x128xbf16, #tpu.memory_space<vmem>>, vector<176x128xbf16>
    tpu.vector_store %arg4[%c0_6, %c0_7], %8 {strides = array<i32>} : memref<176x128xbf16, #tpu.memory_space<vmem>>, vector<176x128xbf16>,
    return
  }
  func.func @transform_0(%arg0: i32) -> (i32, i32) {
    %c0_i32 = arith.constant 0 : i32
    %c0_i32_0 = arith.constant 0 : i32
    return %arg0, %c0_i32 : i32, i32
  }
  func.func @transform_1(%arg0: i32) -> (i32, i32) {
    %c0_i32 = arith.constant 0 : i32
    %c0_i32_0 = arith.constant 0 : i32
    %c0_i32_1 = arith.constant 0 : i32
    return %c0_i32, %c0_i32_0 : i32, i32
  }
  func.func @transform_2(%arg0: i32) -> (i32, i32) {
    %c0_i32 = arith.constant 0 : i32
    %c0_i32_0 = arith.constant 0 : i32
    %c0_i32_1 = arith.constant 0 : i32
    return %c0_i32, %c0_i32_0 : i32, i32
  }
  func.func @transform_3(%arg0: i32) -> (i32, i32) {
    %c0_i32 = arith.constant 0 : i32
    %c0_i32_0 = arith.constant 0 : i32
    return %arg0, %c0_i32 : i32, i32
  }
}

module attributes {stable_mosaic.version = 11 : i64} {
  func.func @_matmul_bias_relu_kernel(%arg0: i32, %arg1: memref<112x576xbf16, #tpu.memory_space<vmem>>, %arg2: memref<576x128xbf16, #tpu.memory_space<vmem>>, %arg3: memref<1x128xf32, #tpu.memory_space<vmem>>, %arg4: memref<112x128xbf16, #tpu.memory_space<vmem>>) attributes {dimension_semantics = [#tpu.dimension_semantics<parallel>], iteration_bounds = array<i64: 1>, scalar_prefetch = 0 : i64, scratch_operands = 0 : i64, tpu.core_type = #tpu.core_type<tc>, window_params = [{transform_indices = @transform_0, window_bounds = array<i64: 112, 576>}, {pipeline_mode = #tpu.pipeline_mode<synchronous>, transform_indices = @transform_1, window_bounds = array<i64: 576, 128>}, {pipeline_mode = #tpu.pipeline_mode<synchronous>, transform_indices = @transform_2, window_bounds = array<i64: 1, 128>}, {transform_indices = @transform_3, window_bounds = array<i64: 112, 128>}]} {
    %c0 = arith.constant 0 : index
    %c0_0 = arith.constant 0 : index
    %0 = vector.load %arg1[%c0, %c0_0] : memref<112x576xbf16, #tpu.memory_space<vmem>>, vector<112x576xbf16>
    %c0_1 = arith.constant 0 : index
    %c0_2 = arith.constant 0 : index
    %1 = vector.load %arg2[%c0_1, %c0_2] : memref<576x128xbf16, #tpu.memory_space<vmem>>, vector<576x128xbf16>
    %cst = arith.constant dense<0.000000e+00> : vector<112x128xf32>
    %2 = tpu.matmul %0, %1, %cst {dimension_numbers = #tpu.dot_dimension_numbers<[1], [0], [0], [1], [0, 0, 1, 1], [], []>} : vector<112x576xbf16>, vector<576x128xbf16>, vector<112x128xf32> -> vector<112x128xf32>
    %c0_3 = arith.constant 0 : index
    %c0_4 = arith.constant 0 : index
    %3 = vector.load %arg3[%c0_3, %c0_4] : memref<1x128xf32, #tpu.memory_space<vmem>>, vector<1x128xf32>
    %4 = vector.broadcast %3 : vector<1x128xf32> to vector<112x128xf32>
    %5 = arith.addf %2, %4 : vector<112x128xf32>
    %cst_5 = arith.constant 0.000000e+00 : f32
    %6 = vector.broadcast %cst_5 : f32 to vector<112x128xf32>
    %7 = arith.maximumf %5, %6 : vector<112x128xf32>
    %8 = arith.truncf %7 : vector<112x128xf32> to vector<112x128xbf16>
    %c0_6 = arith.constant 0 : index
    %c0_7 = arith.constant 0 : index
    %9 = vector.load %arg4[%c0_6, %c0_7] : memref<112x128xbf16, #tpu.memory_space<vmem>>, vector<112x128xbf16>
    tpu.vector_store %arg4[%c0_6, %c0_7], %8 {strides = array<i32>} : memref<112x128xbf16, #tpu.memory_space<vmem>>, vector<112x128xbf16>,
    return
  }
  func.func @transform_0(%arg0: i32) -> (i32, i32) {
    %c0_i32 = arith.constant 0 : i32
    %c0_i32_0 = arith.constant 0 : i32
    return %arg0, %c0_i32 : i32, i32
  }
  func.func @transform_1(%arg0: i32) -> (i32, i32) {
    %c0_i32 = arith.constant 0 : i32
    %c0_i32_0 = arith.constant 0 : i32
    %c0_i32_1 = arith.constant 0 : i32
    return %c0_i32, %c0_i32_0 : i32, i32
  }
  func.func @transform_2(%arg0: i32) -> (i32, i32) {
    %c0_i32 = arith.constant 0 : i32
    %c0_i32_0 = arith.constant 0 : i32
    %c0_i32_1 = arith.constant 0 : i32
    return %c0_i32, %c0_i32_0 : i32, i32
  }
  func.func @transform_3(%arg0: i32) -> (i32, i32) {
    %c0_i32 = arith.constant 0 : i32
    %c0_i32_0 = arith.constant 0 : i32
    return %arg0, %c0_i32 : i32, i32
  }
}

module attributes {stable_mosaic.version = 11 : i64} {
  func.func @_fc_tail_kernel(%arg0: i32, %arg1: memref<2x896xbf16, #tpu.memory_space<vmem>>, %arg2: memref<896x512xbf16, #tpu.memory_space<vmem>>, %arg3: memref<1x512xf32, #tpu.memory_space<vmem>>, %arg4: memref<512x128xbf16, #tpu.memory_space<vmem>>, %arg5: memref<1x128xf32, #tpu.memory_space<vmem>>, %arg6: memref<2x128xf32, #tpu.memory_space<vmem>>, %arg7: memref<2x512xf32, #tpu.memory_space<vmem>>) attributes {dimension_semantics = [#tpu.dimension_semantics<arbitrary>], iteration_bounds = array<i64: 7>, scalar_prefetch = 0 : i64, scratch_operands = 1 : i64, tpu.core_type = #tpu.core_type<tc>, window_params = [{transform_indices = @transform_0, window_bounds = array<i64: 2, 896>}, {transform_indices = @transform_1, window_bounds = array<i64: 896, 512>}, {pipeline_mode = #tpu.pipeline_mode<synchronous>, transform_indices = @transform_2, window_bounds = array<i64: 1, 512>}, {pipeline_mode = #tpu.pipeline_mode<synchronous>, transform_indices = @transform_3, window_bounds = array<i64: 512, 128>}, {pipeline_mode = #tpu.pipeline_mode<synchronous>, transform_indices = @transform_4, window_bounds = array<i64: 1, 128>}, {pipeline_mode = #tpu.pipeline_mode<synchronous>, transform_indices = @transform_5, window_bounds = array<i64: 2, 128>}]} {
    %c0_i32 = arith.constant 0 : i32
    %0 = arith.cmpi eq, %arg0, %c0_i32 : i32
    %1 = arith.extui %0 : i1 to i32
    %c0_i32_0 = arith.constant 0 : i32
    %2 = arith.cmpi ne, %1, %c0_i32_0 : i32
    scf.if %2 {
      %cst_9 = arith.constant 0.000000e+00 : f32
      %12 = vector.broadcast %cst_9 : f32 to vector<2x512xf32>
      %c0_10 = arith.constant 0 : index
      %c0_11 = arith.constant 0 : index
      %13 = vector.load %arg7[%c0_10, %c0_11] : memref<2x512xf32, #tpu.memory_space<vmem>>, vector<2x512xf32>
      tpu.vector_store %arg7[%c0_10, %c0_11], %12 {strides = array<i32>} : memref<2x512xf32, #tpu.memory_space<vmem>>, vector<2x512xf32>,
    } else {
    }
    %c0 = arith.constant 0 : index
    %c0_1 = arith.constant 0 : index
    %3 = vector.load %arg7[%c0, %c0_1] : memref<2x512xf32, #tpu.memory_space<vmem>>, vector<2x512xf32>
    %c0_2 = arith.constant 0 : index
    %c0_3 = arith.constant 0 : index
    %4 = vector.load %arg1[%c0_2, %c0_3] : memref<2x896xbf16, #tpu.memory_space<vmem>>, vector<2x896xbf16>
    %c0_4 = arith.constant 0 : index
    %c0_5 = arith.constant 0 : index
    %5 = vector.load %arg2[%c0_4, %c0_5] : memref<896x512xbf16, #tpu.memory_space<vmem>>, vector<896x512xbf16>
    %cst = arith.constant dense<0.000000e+00> : vector<2x512xf32>
    %6 = tpu.matmul %4, %5, %cst {dimension_numbers = #tpu.dot_dimension_numbers<[1], [0], [0], [1], [0, 0, 1, 1], [], []>} : vector<2x896xbf16>, vector<896x512xbf16>, vector<2x512xf32> -> vector<2x512xf32>
    %7 = arith.addf %3, %6 : vector<2x512xf32>
    %c0_6 = arith.constant 0 : index
    %c0_7 = arith.constant 0 : index
    %8 = vector.load %arg7[%c0_6, %c0_7] : memref<2x512xf32, #tpu.memory_space<vmem>>, vector<2x512xf32>
    tpu.vector_store %arg7[%c0_6, %c0_7], %7 {strides = array<i32>} : memref<2x512xf32, #tpu.memory_space<vmem>>, vector<2x512xf32>,
    %c6_i32 = arith.constant 6 : i32
    %9 = arith.cmpi eq, %arg0, %c6_i32 : i32
    %10 = arith.extui %9 : i1 to i32
    %c0_i32_8 = arith.constant 0 : i32
    %11 = arith.cmpi ne, %10, %c0_i32_8 : i32
    scf.if %11 {
      %c0_9 = arith.constant 0 : index
      %c0_10 = arith.constant 0 : index
      %12 = vector.load %arg7[%c0_9, %c0_10] : memref<2x512xf32, #tpu.memory_space<vmem>>, vector<2x512xf32>
      %c0_11 = arith.constant 0 : index
      %c0_12 = arith.constant 0 : index
      %13 = vector.load %arg3[%c0_11, %c0_12] : memref<1x512xf32, #tpu.memory_space<vmem>>, vector<1x512xf32>
      %14 = vector.broadcast %13 : vector<1x512xf32> to vector<2x512xf32>
      %15 = arith.addf %12, %14 : vector<2x512xf32>
      %cst_13 = arith.constant 0.000000e+00 : f32
      %16 = vector.broadcast %cst_13 : f32 to vector<2x512xf32>
      %17 = arith.maximumf %15, %16 : vector<2x512xf32>
      %18 = arith.truncf %17 : vector<2x512xf32> to vector<2x512xbf16>
      %c0_14 = arith.constant 0 : index
      %c0_15 = arith.constant 0 : index
      %19 = vector.load %arg4[%c0_14, %c0_15] : memref<512x128xbf16, #tpu.memory_space<vmem>>, vector<512x128xbf16>
      %cst_16 = arith.constant dense<0.000000e+00> : vector<2x128xf32>
      %20 = tpu.matmul %18, %19, %cst_16 {dimension_numbers = #tpu.dot_dimension_numbers<[1], [0], [0], [1], [0, 0, 1, 1], [], []>} : vector<2x512xbf16>, vector<512x128xbf16>, vector<2x128xf32> -> vector<2x128xf32>
      %c0_17 = arith.constant 0 : index
      %c0_18 = arith.constant 0 : index
      %21 = vector.load %arg5[%c0_17, %c0_18] : memref<1x128xf32, #tpu.memory_space<vmem>>, vector<1x128xf32>
      %22 = vector.broadcast %21 : vector<1x128xf32> to vector<2x128xf32>
      %23 = arith.addf %20, %22 : vector<2x128xf32>
      %c0_19 = arith.constant 0 : index
      %c0_20 = arith.constant 0 : index
      %24 = vector.load %arg6[%c0_19, %c0_20] : memref<2x128xf32, #tpu.memory_space<vmem>>, vector<2x128xf32>
      tpu.vector_store %arg6[%c0_19, %c0_20], %23 {strides = array<i32>} : memref<2x128xf32, #tpu.memory_space<vmem>>, vector<2x128xf32>,
    } else {
    }
    return
  }
  func.func @transform_0(%arg0: i32) -> (i32, i32) {
    %c0_i32 = arith.constant 0 : i32
    %c0_i32_0 = arith.constant 0 : i32
    return %c0_i32, %arg0 : i32, i32
  }
  func.func @transform_1(%arg0: i32) -> (i32, i32) {
    %c0_i32 = arith.constant 0 : i32
    %c0_i32_0 = arith.constant 0 : i32
    return %arg0, %c0_i32 : i32, i32
  }
  func.func @transform_2(%arg0: i32) -> (i32, i32) {
    %c0_i32 = arith.constant 0 : i32
    %c0_i32_0 = arith.constant 0 : i32
    %c0_i32_1 = arith.constant 0 : i32
    return %c0_i32, %c0_i32_0 : i32, i32
  }
  func.func @transform_3(%arg0: i32) -> (i32, i32) {
    %c0_i32 = arith.constant 0 : i32
    %c0_i32_0 = arith.constant 0 : i32
    %c0_i32_1 = arith.constant 0 : i32
    return %c0_i32, %c0_i32_0 : i32, i32
  }
  func.func @transform_4(%arg0: i32) -> (i32, i32) {
    %c0_i32 = arith.constant 0 : i32
    %c0_i32_0 = arith.constant 0 : i32
    %c0_i32_1 = arith.constant 0 : i32
    return %c0_i32, %c0_i32_0 : i32, i32
  }
  func.func @transform_5(%arg0: i32) -> (i32, i32) {
    %c0_i32 = arith.constant 0 : i32
    %c0_i32_0 = arith.constant 0 : i32
    %c0_i32_1 = arith.constant 0 : i32
    return %c0_i32, %c0_i32_0 : i32, i32
  }
}

</mosaic_0001>

<bundles_post_ra>
// kernel: qnetwork_forward.4
= control target key start
LH: loop header
LB: loop body
LE: loop exit
PB: predicated region body
PF: predicated region fallthrough
CT: control target
= control target key end

     0   :  { %s1626_s12 = smov 0   ;;  %s1885_s0 = inlined_call_operand.vmem [shape: bf16[800,256], index: 0, kind: input, shape index: {}]   ;;  %s1886_s1 = inlined_call_operand.vmem [shape: bf16[256,128], index: 1, kind: input, shape index: {}]   ;;  %s1887_s2 = inlined_call_operand.vmem [shape: f32[1,128], index: 2, kind: input, shape index: {}]   ;;  %s1888_s3 = inlined_call_operand.vmem [shape: bf16[800,128], index: 3, kind: output, shape index: {}]  }
   0x1 LB: > { %s1083_s13 = sadd.s32 4294967295, %s1604_s12   ;;  %p1087_p0 = scmp.ge.s32.totalorder %s1604_s12, 1  ;;  %s1604_s12 = sphi %s1626_s12, %s13_s12  }
   0x2   : > { %p139_p1 = scmp.lt.s32.totalorder %s1604_s12, 3 }
   0x4   : > { %p140_p2 = pnand %p1087_p0, %p139_p1 }
   0x5   : > { %s164_s26 = smul.u32 (!%p140_p2), 50, %s1083_s13 }
   0x6   : > { %143 = sbr.rel (%p140_p2) target bundleno = 384 (0x180), region = 32 }
   0x7   : > { %p165_p3 = scmp.lt.s32.totalorder (!%p140_p2), %s164_s26, 99 }
   0xb   : > { %v1415_v0 = vld [vmem:[%s1886_s1 + $0x38] sm:$0xff]  ;;  %v1414_v2 = vld [vmem:[%s1886_s1 + $0x30] sm:$0xff]  ;;  %v1413_v4 = vld [vmem:[%s1886_s1 + $0x28] sm:$0xff]  ;;  %s1890_s26 = smov (!%p165_p3, %s164_s26), 99 }
   0xc   : > { %v1423_v1 = vld [vmem:[%s1886_s1 + $0x78] sm:$0xff]  ;;  %609 = vmatpush.bf16.msra.mxu0 %v1415_v0  ;;  %1573 = vmatpush.bf16.msra.mxu2 %v1415_v0  ;;  %v1422_v3 = vld [vmem:[%s1886_s1 + $0x70] sm:$0xff]  ;;  %v1421_v5 = vld [vmem:[%s1886_s1 + $0x68] sm:$0xff]  ;;  %s1357_s13 = sshll.u32 %s1890_s26, 3  ;;  %s1090_s28 = sshll.u32 %s1890_s26, 2 }
   0xd   : > { %743 = vmatpush.bf16.msra.mxu1 %v1423_v1  ;;  %1581 = vmatpush.bf16.msra.mxu3 %v1423_v1  ;;  %v1412_v6 = vld [vmem:[%s1886_s1 + $0x20] sm:$0xff]  ;;  %v1411_v8 = vld [vmem:[%s1886_s1 + $0x18] sm:$0xff]  ;;  %v1410_v10 = vld [vmem:[%s1886_s1 + $0x10] sm:$0xff]  ;;  %s1679_s18 = scalar_lea.vmem %s1885_s0, %s1357_s13  ;;  %s1783_s4 = scalar_lea.vmem %s1888_s3, %s1090_s28 }
   0xe   : > { %v1420_v7 = vld [vmem:[%s1886_s1 + $0x60] sm:$0xff]  ;;  %v1419_v9 = vld [vmem:[%s1886_s1 + $0x58] sm:$0xff]  ;;  %v1418_v11 = vld [vmem:[%s1886_s1 + $0x50] sm:$0xff] }
   0xf   : > { %v1409_v12 = vld [vmem:[%s1886_s1 + $0x8] sm:$0xff]  ;;  %v1408_v14 = vld [vmem:[%s1886_s1] sm:$0xff]  ;;  %v1384_v22 = vld [vmem:[%s1679_s18 + $0xd4] sm:$0xf] }
  0x10   : > { %610 = vmatpush.bf16.msra.mxu0 %v1414_v2  ;;  %1574 = vmatpush.bf16.msra.mxu2 %v1414_v2  ;;  %v1417_v13 = vld [vmem:[%s1886_s1 + $0x48] sm:$0xff]  ;;  %v1416_v15 = vld [vmem:[%s1886_s1 + $0x40] sm:$0xff]  ;;  %v1199_v23 = vld [vmem:[%s1679_s18 + $0xd8] sm:$0xf0] }
  0x11   : > { %744 = vmatpush.bf16.msra.mxu1 %v1422_v3  ;;  %1582 = vmatpush.bf16.msra.mxu3 %v1422_v3  ;;  %v1093_v16 = vld [vmem:[%s1679_s18] sm:$0xf]  ;;  %v1359_v17 = vld [vmem:[%s1679_s18 + $0x4] sm:$0xf0]  ;;  %v1358_v20 = vld [vmem:[%s1679_s18 + $0x4] sm:$0xf]  ;;  %v1202_v27 = vor.u32 %v1384_v22, %v1199_v23 }
  0x12   : > { %v1189_v18 = vld [vmem:[%s1679_s18 + $0xc0] sm:$0xf]  ;;  %v1383_v19 = vld [vmem:[%s1679_s18 + $0xc4] sm:$0xf0]  ;;  %v1095_v21 = vld [vmem:[%s1679_s18 + $0x8] sm:$0xf0]  ;;  %v1094_v24 = vor.u32 %v1359_v17, %v1093_v16 }
  0x13   : > { %v1190_v25 = vor.u32 %v1383_v19, %v1189_v18  ;;  %v1098_v26 = vor.u32 %v1358_v20, %v1095_v21  ;;  %v1101_v28 = vld [vmem:[%s1679_s18 + $0x10] sm:$0xf]  ;;  %v1361_v29 = vld [vmem:[%s1679_s18 + $0x14] sm:$0xf0]  ;;  %v1360_v32 = vld [vmem:[%s1679_s18 + $0x14] sm:$0xf] }
  0x14   : > { %611 = vmatpush.bf16.msra.mxu0 %v1413_v4  ;;  %1575 = vmatpush.bf16.msra.mxu2 %v1413_v4  ;;  %v1197_v30 = vld [vmem:[%s1679_s18 + $0xd0] sm:$0xf]  ;;  %v1385_v31 = vld [vmem:[%s1679_s18 + $0xd4] sm:$0xf0]  ;;  %v1103_v33 = vld [vmem:[%s1679_s18 + $0x18] sm:$0xf0]  ;;  %v1102_v36 = vor.u32 %v1361_v29, %v1101_v28 }
  0x15   : > { %745 = vmatpush.bf16.msra.mxu1 %v1421_v5  ;;  %1583 = vmatpush.bf16.msra.mxu3 %v1421_v5  ;;  %v1386_v34 = vld [vmem:[%s1679_s18 + $0xe4] sm:$0xf]  ;;  %v1207_v35 = vld [vmem:[%s1679_s18 + $0xe8] sm:$0xf0]  ;;  %v1198_v37 = vor.u32 %v1385_v31, %v1197_v30  ;;  %v1106_v38 = vor.u32 %v1360_v32, %v1103_v33  ;;  %v1109_v40 = vld [vmem:[%s1679_s18 + $0x20] sm:$0xf] }
  0x16   : > { %v1210_v39 = vor.u32 %v1386_v34, %v1207_v35  ;;  %v1363_v41 = vld [vmem:[%s1679_s18 + $0x24] sm:$0xf0]  ;;  %v1205_v42 = vld [vmem:[%s1679_s18 + $0xe0] sm:$0xf]  ;;  %v1362_v44 = vld [vmem:[%s1679_s18 + $0x24] sm:$0xf] }
  0x17   : > { %v1387_v43 = vld [vmem:[%s1679_s18 + $0xe4] sm:$0xf0]  ;;  %v1111_v45 = vld [vmem:[%s1679_s18 + $0x28] sm:$0xf0]  ;;  %v1388_v46 = vld [vmem:[%s1679_s18 + $0xf4] sm:$0xf]  ;;  %v1110_v48 = vor.u32 %v1363_v41, %v1109_v40 }
  0x18   : > { %612 = vmatpush.bf16.msra.mxu0 %v1412_v6  ;;  %1576 = vmatpush.bf16.msra.mxu2 %v1412_v6  ;;  %v1215_v47 = vld [vmem:[%s1679_s18 + $0xf8] sm:$0xf0]  ;;  %v1206_v49 = vor.u32 %v1387_v43, %v1205_v42  ;;  %v1114_v50 = vor.u32 %v1362_v44, %v1111_v45  ;;  %v1117_v52 = vld [vmem:[%s1679_s18 + $0x30] sm:$0xf]  ;;  %v1365_v53 = vld [vmem:[%s1679_s18 + $0x34] sm:$0xf0] }
  0x19   : > { %746 = vmatpush.bf16.msra.mxu1 %v1420_v7  ;;  %1584 = vmatpush.bf16.msra.mxu3 %v1420_v7  ;;  %v1218_v51 = vor.u32 %v1388_v46, %v1215_v47  ;;  %v1213_v54 = vld [vmem:[%s1679_s18 + $0xf0] sm:$0xf]  ;;  %v1389_v55 = vld [vmem:[%s1679_s18 + $0xf4] sm:$0xf0]  ;;  %v1364_v56 = vld [vmem:[%s1679_s18 + $0x34] sm:$0xf]  ;;  %v1118_v60 = vor.u32 %v1365_v53, %v1117_v52 }
  0x1a   : > { %v1119_v57 = vld [vmem:[%s1679_s18 + $0x38] sm:$0xf0]  ;;  %v1390_v58 = vld [vmem:[%s1679_s18 + $0x104] sm:$0xf]  ;;  %v1223_v59 = vld [vmem:[%s1679_s18 + $0x108] sm:$0xf0]  ;;  %v1214_v61 = vor.u32 %v1389_v55, %v1213_v54 }
  0x1b   : > { %v1122_v62 = vor.u32 %v1364_v56, %v1119_v57  ;;  %v1226_v63 = vor.u32 %v1390_v58, %v1223_v59  ;;  %v1125_v0 = vld [vmem:[%s1679_s18 + $0x40] sm:$0xf]  ;;  %v1367_v1 = vld [vmem:[%s1679_s18 + $0x44] sm:$0xf0]  ;;  %v1366_v4 = vld [vmem:[%s1679_s18 + $0x44] sm:$0xf] }
  0x1c   : > { %613 = vmatpush.bf16.msra.mxu0 %v1411_v8  ;;  %1577 = vmatpush.bf16.msra.mxu2 %v1411_v8  ;;  %v1221_v2 = vld [vmem:[%s1679_s18 + $0x100] sm:$0xf]  ;;  %v1391_v3 = vld [vmem:[%s1679_s18 + $0x104] sm:$0xf0]  ;;  %v1127_v5 = vld [vmem:[%s1679_s18 + $0x48] sm:$0xf0]  ;;  %v1126_v8 = vor.u32 %v1367_v1, %v1125_v0 }
  0x1d   : > { %747 = vmatpush.bf16.msra.mxu1 %v1419_v9  ;;  %1585 = vmatpush.bf16.msra.mxu3 %v1419_v9  ;;  %v1392_v6 = vld [vmem:[%s1679_s18 + $0x114] sm:$0xf]  ;;  %v1231_v7 = vld [vmem:[%s1679_s18 + $0x118] sm:$0xf0]  ;;  %v1222_v9 = vor.u32 %v1391_v3, %v1221_v2  ;;  %v1394_v18 = vld [vmem:[%s1679_s18 + $0x124] sm:$0xf] }
  0x1e   : > { %v1368_v16 = vld [vmem:[%s1679_s18 + $0x54] sm:$0xf]  ;;  %v1135_v17 = vld [vmem:[%s1679_s18 + $0x58] sm:$0xf0]  ;;  %v1239_v19 = vld [vmem:[%s1679_s18 + $0x128] sm:$0xf0] }
  0x1f   : > { %v1138_v22 = vor.u32 %v1368_v16, %v1135_v17  ;;  %v1242_v23 = vor.u32 %v1394_v18, %v1239_v19  ;;  %v1370_v28 = vld [vmem:[%s1679_s18 + $0x64] sm:$0xf]  ;;  %v1143_v29 = vld [vmem:[%s1679_s18 + $0x68] sm:$0xf0]  ;;  %v1396_v30 = vld [vmem:[%s1679_s18 + $0x134] sm:$0xf] }
  0x20   : > { %614 = vmatpush.bf16.msra.mxu0 %v1410_v10  ;;  %1578 = vmatpush.bf16.msra.mxu2 %v1410_v10  ;;  %v1130_v10 = vor.u32 %v1366_v4, %v1127_v5  ;;  %v1247_v31 = vld [vmem:[%s1679_s18 + $0x138] sm:$0xf0]  ;;  %v1146_v34 = vor.u32 %v1370_v28, %v1143_v29  ;;  %v1372_v40 = vld [vmem:[%s1679_s18 + $0x74] sm:$0xf]  ;;  %v1398_v42 = vld [vmem:[%s1679_s18 + $0x144] sm:$0xf] }
  0x21   : > { %748 = vmatpush.bf16.msra.mxu1 %v1418_v11  ;;  %1586 = vmatpush.bf16.msra.mxu3 %v1418_v11  ;;  %v1234_v11 = vor.u32 %v1392_v6, %v1231_v7  ;;  %v1250_v35 = vor.u32 %v1396_v30, %v1247_v31  ;;  %v1151_v41 = vld [vmem:[%s1679_s18 + $0x78] sm:$0xf0]  ;;  %v1255_v43 = vld [vmem:[%s1679_s18 + $0x148] sm:$0xf0]  ;;  %v1374_v52 = vld [vmem:[%s1679_s18 + $0x84] sm:$0xf] }
  0x22   : > { %v1154_v46 = vor.u32 %v1372_v40, %v1151_v41  ;;  %v1258_v47 = vor.u32 %v1398_v42, %v1255_v43  ;;  %v1159_v53 = vld [vmem:[%s1679_s18 + $0x88] sm:$0xf0]  ;;  %v1400_v54 = vld [vmem:[%s1679_s18 + $0x154] sm:$0xf]  ;;  %v1263_v55 = vld [vmem:[%s1679_s18 + $0x158] sm:$0xf0] }
  0x23   : > { %v1162_v59 = vor.u32 %v1374_v52, %v1159_v53  ;;  %v1165_v7 = vld [vmem:[%s1679_s18 + $0x90] sm:$0xf]  ;;  %v1271_v16 = vld [vmem:[%s1679_s18 + $0x168] sm:$0xf0]  ;;  %v1404_v43 = vld [vmem:[%s1679_s18 + $0x174] sm:$0xf] }
  0x24   : > { %615 = vmatpush.bf16.msra.mxu0 %v1409_v12  ;;  %1579 = vmatpush.bf16.msra.mxu2 %v1409_v12  ;;  %v1133_v12 = vld [vmem:[%s1679_s18 + $0x50] sm:$0xf]  ;;  %v1175_v40 = vld [vmem:[%s1679_s18 + $0xa8] sm:$0xf0] }
  0x25   : > { %749 = vmatpush.bf16.msra.mxu1 %v1417_v13  ;;  %1587 = vmatpush.bf16.msra.mxu3 %v1417_v13  ;;  %v1369_v13 = vld [vmem:[%s1679_s18 + $0x54] sm:$0xf0] }
  0x26   : > { %v1134_v20 = vor.u32 %v1369_v13, %v1133_v12  ;;  %v1167_v12 = vld [vmem:[%s1679_s18 + $0x98] sm:$0xf0] }
  0x28   : > { %616 = vmatpush.bf16.msra.mxu0 %v1408_v14  ;;  %1580 = vmatpush.bf16.msra.mxu2 %v1408_v14  ;;  %v1229_v14 = vld [vmem:[%s1679_s18 + $0x110] sm:$0xf] }
  0x29   : > { %750 = vmatpush.bf16.msra.mxu1 %v1416_v15  ;;  %1588 = vmatpush.bf16.msra.mxu3 %v1416_v15  ;;  %v1393_v15 = vld [vmem:[%s1679_s18 + $0x114] sm:$0xf0] }
  0x2a   : > { %v1230_v21 = vor.u32 %v1393_v15, %v1229_v14  ;;  %v1402_v15 = vld [vmem:[%s1679_s18 + $0x164] sm:$0xf] }
  0x2b   : > { %617 = vmatmul.bf16.vlgmr.msra.gmra.mxu0 %v1094_v24  ;;  %677 = vmatmul.bf16.vlgmr.msra.gmra.mxu2 %v1190_v25  ;;  %v1141_v24 = vld [vmem:[%s1679_s18 + $0x60] sm:$0xf]  ;;  %v1371_v25 = vld [vmem:[%s1679_s18 + $0x64] sm:$0xf0] }
  0x2c   : > { %751 = vmatmul.bf16.vlgmr.msra.gmra.mxu1 %v1098_v26  ;;  %816 = vmatmul.bf16.vlgmr.msra.gmra.mxu3 %v1202_v27  ;;  %v1237_v26 = vld [vmem:[%s1679_s18 + $0x120] sm:$0xf]  ;;  %v1395_v27 = vld [vmem:[%s1679_s18 + $0x124] sm:$0xf0]  ;;  %v1142_v32 = vor.u32 %v1371_v25, %v1141_v24  ;;  %v1274_v24 = vor.u32 %v1402_v15, %v1271_v16  ;;  %v1406_v15 = vld [vmem:[%s1679_s18 + $0x184] sm:$0xf] }
  0x2d   : > { %v1238_v33 = vor.u32 %v1395_v27, %v1237_v26  ;;  %v1287_v16 = vld [vmem:[%s1679_s18 + $0x188] sm:$0xf0] }
  0x3b   : > { %622 = vmatmul.bf16.gmra.mxu0 %v1102_v36  ;;  %682 = vmatmul.bf16.gmra.mxu2 %v1198_v37  ;;  %v1149_v36 = vld [vmem:[%s1679_s18 + $0x70] sm:$0xf]  ;;  %v1373_v37 = vld [vmem:[%s1679_s18 + $0x74] sm:$0xf0] }
  0x3c   : > { %756 = vmatmul.bf16.gmra.mxu1 %v1106_v38  ;;  %821 = vmatmul.bf16.gmra.mxu3 %v1210_v39  ;;  %v1245_v38 = vld [vmem:[%s1679_s18 + $0x130] sm:$0xf]  ;;  %v1397_v39 = vld [vmem:[%s1679_s18 + $0x134] sm:$0xf0]  ;;  %v1150_v44 = vor.u32 %v1373_v37, %v1149_v36  ;;  %v1379_v36 = vld [vmem:[%s1679_s18 + $0xa4] sm:$0xf0] }
  0x3d   : > { %v1246_v45 = vor.u32 %v1397_v39, %v1245_v38  ;;  %v1269_v37 = vld [vmem:[%s1679_s18 + $0x160] sm:$0xf]  ;;  %v1403_v38 = vld [vmem:[%s1679_s18 + $0x164] sm:$0xf0]  ;;  %v1378_v39 = vld [vmem:[%s1679_s18 + $0xa4] sm:$0xf] }
  0x3e   : > { %v1178_v53 = vor.u32 %v1378_v39, %v1175_v40 }
  0x4b   : > { %627 = vmatmul.bf16.gmra.mxu0 %v1110_v48  ;;  %687 = vmatmul.bf16.gmra.mxu2 %v1206_v49  ;;  %v1157_v48 = vld [vmem:[%s1679_s18 + $0x80] sm:$0xf]  ;;  %v1375_v49 = vld [vmem:[%s1679_s18 + $0x84] sm:$0xf0] }
  0x4c   : > { %761 = vmatmul.bf16.gmra.mxu1 %v1114_v50  ;;  %826 = vmatmul.bf16.gmra.mxu3 %v1218_v51  ;;  %v1253_v50 = vld [vmem:[%s1679_s18 + $0x140] sm:$0xf]  ;;  %v1399_v51 = vld [vmem:[%s1679_s18 + $0x144] sm:$0xf0]  ;;  %v1158_v56 = vor.u32 %v1375_v49, %v1157_v48 }
  0x4d   : > { %v1254_v57 = vor.u32 %v1399_v51, %v1253_v50  ;;  %v1270_v50 = vor.u32 %v1403_v38, %v1269_v37 }
  0x5b   : > { %632 = vmatmul.bf16.gmra.mxu0 %v1118_v60  ;;  %692 = vmatmul.bf16.gmra.mxu2 %v1214_v61  ;;  %v1266_v60 = vor.u32 %v1400_v54, %v1263_v55  ;;  %v1765_v61 = vld [vmem:[%s1887_s2] ss:$0 sm:$0xff] }
  0x5c   : > { %766 = vmatmul.bf16.gmra.mxu1 %v1122_v62  ;;  %831 = vmatmul.bf16.gmra.mxu3 %v1226_v63 }
  0x6b   : > { %637 = vmatmul.bf16.gmra.mxu0 %v1126_v8  ;;  %697 = vmatmul.bf16.gmra.mxu2 %v1222_v9  ;;  %v1377_v8 = vld [vmem:[%s1679_s18 + $0x94] sm:$0xf0]  ;;  %v1261_v9 = vld [vmem:[%s1679_s18 + $0x150] sm:$0xf] }
  0x6c   : > { %771 = vmatmul.bf16.gmra.mxu1 %v1130_v10  ;;  %836 = vmatmul.bf16.gmra.mxu3 %v1234_v11  ;;  %v1401_v10 = vld [vmem:[%s1679_s18 + $0x154] sm:$0xf0]  ;;  %v1376_v11 = vld [vmem:[%s1679_s18 + $0x94] sm:$0xf]  ;;  %v1166_v19 = vor.u32 %v1377_v8, %v1165_v7  ;;  %v1181_v7 = vld [vmem:[%s1679_s18 + $0xb0] sm:$0xf] }
  0x6d   : > { %v1381_v8 = vld [vmem:[%s1679_s18 + $0xb4] sm:$0xf0] }
  0x7b   : > { %642 = vmatmul.bf16.gmra.mxu0 %v1134_v20  ;;  %702 = vmatmul.bf16.gmra.mxu2 %v1230_v21  ;;  %v1262_v20 = vor.u32 %v1401_v10, %v1261_v9  ;;  %v1277_v9 = vld [vmem:[%s1679_s18 + $0x170] sm:$0xf]  ;;  %v1405_v10 = vld [vmem:[%s1679_s18 + $0x174] sm:$0xf0] }
  0x7c   : > { %776 = vmatmul.bf16.gmra.mxu1 %v1138_v22  ;;  %841 = vmatmul.bf16.gmra.mxu3 %v1242_v23  ;;  %v1170_v23 = vor.u32 %v1376_v11, %v1167_v12  ;;  %v1380_v11 = vld [vmem:[%s1679_s18 + $0xb4] sm:$0xf]  ;;  %v1183_v12 = vld [vmem:[%s1679_s18 + $0xb8] sm:$0xf0] }
  0x8b   : > { %647 = vmatmul.bf16.gmra.mxu0 %v1142_v32  ;;  %707 = vmatmul.bf16.gmra.mxu2 %v1238_v33 }
  0x8c   : > { %781 = vmatmul.bf16.gmra.mxu1 %v1146_v34  ;;  %846 = vmatmul.bf16.gmra.mxu3 %v1250_v35  ;;  %v1173_v35 = vld [vmem:[%s1679_s18 + $0xa0] sm:$0xf] }
  0x9b   : > { %652 = vmatmul.bf16.gmra.mxu0 %v1150_v44  ;;  %712 = vmatmul.bf16.gmra.mxu2 %v1246_v45  ;;  %v1279_v44 = vld [vmem:[%s1679_s18 + $0x178] sm:$0xf0] }
  0x9c   : > { %786 = vmatmul.bf16.gmra.mxu1 %v1154_v46  ;;  %851 = vmatmul.bf16.gmra.mxu3 %v1258_v47  ;;  %v1174_v46 = vor.u32 %v1379_v36, %v1173_v35  ;;  %v1282_v54 = vor.u32 %v1404_v43, %v1279_v44  ;;  %v1407_v43 = vld [vmem:[%s1679_s18 + $0x184] sm:$0xf0] }
  0xa8   : > { %v618_v58 = vpop.f32.mrf.mxu0 }
  0xa9   : > { %v752_v62 = vpop.f32.mrf.mxu1  ;;  %v619_v63 = vadd.f32 %v1765_v61, %v618_v58 }
  0xab   : > { %657 = vmatmul.bf16.gmra.mxu0 %v1158_v56  ;;  %717 = vmatmul.bf16.gmra.mxu2 %v1254_v57  ;;  %v753_v3 = vadd.f32 %v752_v62, %v619_v63 }
  0xac   : > { %791 = vmatmul.bf16.gmra.mxu1 %v1162_v59  ;;  %856 = vmatmul.bf16.gmra.mxu3 %v1266_v60 }
  0xad   : > { %v877_v13 = vmax.f32 %v753_v3, 0.0 }
  0xae   : > { %v1768_v0 = vpop.f32.mrf.mxu2 }
  0xaf   : > { %v817_v1 = vpop.f32.mrf.mxu3 }
  0xb0   : > { %v620_v2 = vpop.f32.mrf.mxu0 }
  0xb1   : > { %v621_v4 = vadd.f32 %v1765_v61, %v620_v2  ;;  %v754_v5 = vpop.f32.mrf.mxu1 }
  0xb3   : > { %v755_v6 = vadd.f32 %v754_v5, %v621_v4 }
  0xb5   : > { %v878_v14 = vmax.f32 %v755_v6, 0.0 }
  0xb6   : > { %v1785_v17 = vpop.f32.mrf.mxu2 }
  0xb7   : > { %v1427_v18 = vpack.c.bf16 %v878_v14, %v877_v13  ;;  %v819_v21 = vpop.f32.mrf.mxu3 }
  0xb8   : > { %v623_v22 = vpop.f32.mrf.mxu0 }
  0xb9   : > { %1428 = vst [vmem:[%s1783_s4] sm:$0xff] %v1427_v18   ;;  %v757_v25 = vpop.f32.mrf.mxu1  ;;  %v624_v26 = vadd.f32 %v1765_v61, %v623_v22 }
  0xbb   : > { %662 = vmatmul.bf16.gmra.mxu0 %v1166_v19  ;;  %722 = vmatmul.bf16.gmra.mxu2 %v1262_v20  ;;  %v758_v30 = vadd.f32 %v757_v25, %v624_v26  ;;  %v1182_v19 = vor.u32 %v1381_v8, %v1181_v7  ;;  %v1186_v26 = vor.u32 %v1380_v11, %v1183_v12 }
  0xbc   : > { %796 = vmatmul.bf16.gmra.mxu1 %v1170_v23  ;;  %861 = vmatmul.bf16.gmra.mxu3 %v1274_v24  ;;  %v1278_v23 = vor.u32 %v1405_v10, %v1277_v9 }
  0xbd   : > { %v879_v41 = vmax.f32 %v758_v30, 0.0 }
  0xbe   : > { %v683_v27 = vpop.f32.mrf.mxu2 }
  0xbf   : > { %v822_v28 = vpop.f32.mrf.mxu3  ;;  %v684_v33 = vadd.f32 %v1765_v61, %v683_v27  ;;  %v1290_v27 = vor.u32 %v1406_v15, %v1287_v16 }
  0xc0   : > { %v625_v29 = vpop.f32.mrf.mxu0 }
  0xc1   : > { %v626_v31 = vadd.f32 %v1765_v61, %v625_v29  ;;  %v759_v32 = vpop.f32.mrf.mxu1  ;;  %v818_v47 = vadd.f32 %v817_v1, %v684_v33 }
  0xc3   : > { %v760_v34 = vadd.f32 %v759_v32, %v626_v31  ;;  %v903_v57 = vmax.f32 %v818_v47, 0.0  ;;  %v1191_v47 = vld [vmem:[%s1679_s18 + $0xc8] sm:$0xf0] }
  0xc5   : > { %v880_v42 = vmax.f32 %v760_v34, 0.0 }
  0xc6   : > { %v685_v45 = vpop.f32.mrf.mxu2 }
  0xc7   : > { %v1432_v48 = vpack.c.bf16 %v880_v42, %v879_v41  ;;  %v686_v49 = vadd.f32 %v1765_v61, %v685_v45  ;;  %v824_v51 = vpop.f32.mrf.mxu3  ;;  %v1285_v42 = vld [vmem:[%s1679_s18 + $0x180] sm:$0xf] }
  0xc8   : > { %v628_v52 = vpop.f32.mrf.mxu0 }
  0xc9   : > { %1549 = vst [vmem:[%s1783_s4 + $0x8] sm:$0xff] %v1432_v48   ;;  %v820_v55 = vadd.f32 %v819_v21, %v686_v49  ;;  %v762_v56 = vpop.f32.mrf.mxu1  ;;  %v629_v60 = vadd.f32 %v1765_v61, %v628_v52  ;;  %v1286_v52 = vor.u32 %v1407_v43, %v1285_v42 }
  0xcb   : > { %v904_v58 = vmax.f32 %v820_v55, 0.0  ;;  %667 = vmatmul.bf16.gmra.mxu0 %v1174_v46  ;;  %727 = vmatmul.bf16.gmra.mxu2 %v1270_v50  ;;  %v763_v2 = vadd.f32 %v762_v56, %v629_v60  ;;  %v1382_v46 = vld [vmem:[%s1679_s18 + $0xc4] sm:$0xf] }
  0xcc   : > { %801 = vmatmul.bf16.gmra.mxu1 %v1178_v53  ;;  %866 = vmatmul.bf16.gmra.mxu3 %v1282_v54  ;;  %v1194_v55 = vor.u32 %v1382_v46, %v1191_v47 }
  0xcd   : > { %v1492_v59 = vpack.c.bf16 %v904_v58, %v903_v57  ;;  %v881_v13 = vmax.f32 %v763_v2, 0.0 }
  0xce   : > { %v688_v62 = vpop.f32.mrf.mxu2 }
  0xcf   : > { %1561 = vst [vmem:[%s1783_s4 + $0x68] sm:$0xff] %v1492_v59   ;;  %v827_v63 = vpop.f32.mrf.mxu3  ;;  %v689_v5 = vadd.f32 %v1765_v61, %v688_v62 }
  0xd0   : > { %v630_v1 = vpop.f32.mrf.mxu0 }
  0xd1   : > { %v631_v3 = vadd.f32 %v1765_v61, %v630_v1  ;;  %v764_v4 = vpop.f32.mrf.mxu1  ;;  %v823_v20 = vadd.f32 %v822_v28, %v689_v5 }
  0xd3   : > { %v765_v6 = vadd.f32 %v764_v4, %v631_v3  ;;  %v905_v31 = vmax.f32 %v823_v20, 0.0 }
  0xd5   : > { %v882_v14 = vmax.f32 %v765_v6, 0.0 }
  0xd6   : > { %v690_v18 = vpop.f32.mrf.mxu2 }
  0xd7   : > { %v1437_v21 = vpack.c.bf16 %v882_v14, %v881_v13  ;;  %v691_v22 = vadd.f32 %v1765_v61, %v690_v18  ;;  %v829_v24 = vpop.f32.mrf.mxu3 }
  0xd8   : > { %v633_v25 = vpop.f32.mrf.mxu0 }
  0xd9   : > { %1550 = vst [vmem:[%s1783_s4 + $0x10] sm:$0xff] %v1437_v21   ;;  %v825_v29 = vadd.f32 %v824_v51, %v691_v22  ;;  %v767_v30 = vpop.f32.mrf.mxu1  ;;  %v634_v33 = vadd.f32 %v1765_v61, %v633_v25 }
  0xdb   : > { %v906_v32 = vmax.f32 %v825_v29, 0.0  ;;  %672 = vmatmul.bf16.gmra.mxu0 %v1182_v19  ;;  %732 = vmatmul.bf16.gmra.mxu2 %v1278_v23  ;;  %v768_v37 = vadd.f32 %v767_v30, %v634_v33 }
  0xdc   : > { %806 = vmatmul.bf16.gmra.mxu1 %v1186_v26  ;;  %871 = vmatmul.bf16.gmra.mxu3 %v1290_v27 }
  0xdd   : > { %v1497_v28 = vpack.c.bf16 %v906_v32, %v905_v31  ;;  %v883_v44 = vmax.f32 %v768_v37, 0.0 }
  0xde   : > { %v693_v34 = vpop.f32.mrf.mxu2 }
  0xdf   : > { %1562 = vst [vmem:[%s1783_s4 + $0x70] sm:$0xff] %v1497_v28   ;;  %v832_v35 = vpop.f32.mrf.mxu3  ;;  %v694_v40 = vadd.f32 %v1765_v61, %v693_v34 }
  0xe0   : > { %v635_v36 = vpop.f32.mrf.mxu0 }
  0xe1   : > { %v636_v38 = vadd.f32 %v1765_v61, %v635_v36  ;;  %v769_v39 = vpop.f32.mrf.mxu1  ;;  %v828_v49 = vadd.f32 %v827_v63, %v694_v40 }
  0xe3   : > { %v770_v41 = vadd.f32 %v769_v39, %v636_v38  ;;  %v907_v58 = vmax.f32 %v828_v49, 0.0 }
  0xe5   : > { %v884_v45 = vmax.f32 %v770_v41, 0.0 }
  0xe6   : > { %v695_v48 = vpop.f32.mrf.mxu2 }
  0xe7   : > { %v1442_v50 = vpack.c.bf16 %v884_v45, %v883_v44  ;;  %v696_v51 = vadd.f32 %v1765_v61, %v695_v48  ;;  %v834_v53 = vpop.f32.mrf.mxu3 }
  0xe8   : > { %v638_v54 = vpop.f32.mrf.mxu0 }
  0xe9   : > { %1551 = vst [vmem:[%s1783_s4 + $0x18] sm:$0xff] %v1442_v50   ;;  %v830_v56 = vadd.f32 %v829_v24, %v696_v51  ;;  %v772_v57 = vpop.f32.mrf.mxu1  ;;  %v639_v62 = vadd.f32 %v1765_v61, %v638_v54 }
  0xeb   : > { %v908_v59 = vmax.f32 %v830_v56, 0.0  ;;  %737 = vmatmul.bf16.gmra.mxu2 %v1286_v52  ;;  %v773_v3 = vadd.f32 %v772_v57, %v639_v62 }
  0xec   : > { %811 = vmatmul.bf16.gmra.mxu1 %v1194_v55 }
  0xed   : > { %v1502_v60 = vpack.c.bf16 %v908_v59, %v907_v58  ;;  %v885_v8 = vmax.f32 %v773_v3, 0.0 }
  0xee   : > { %v698_v1 = vpop.f32.mrf.mxu2 }
  0xef   : > { %1563 = vst [vmem:[%s1783_s4 + $0x78] sm:$0xff] %v1502_v60   ;;  %v837_v63 = vpop.f32.mrf.mxu3  ;;  %v699_v6 = vadd.f32 %v1765_v61, %v698_v1 }
  0xf0   : > { %v640_v2 = vpop.f32.mrf.mxu0 }
  0xf1   : > { %v641_v4 = vadd.f32 %v1765_v61, %v640_v2  ;;  %v774_v5 = vpop.f32.mrf.mxu1  ;;  %v833_v11 = vadd.f32 %v832_v35, %v699_v6 }
  0xf3   : > { %v775_v7 = vadd.f32 %v774_v5, %v641_v4  ;;  %v909_v19 = vmax.f32 %v833_v11, 0.0 }
  0xf5   : > { %v886_v9 = vmax.f32 %v775_v7, 0.0 }
  0xf6   : > { %v700_v10 = vpop.f32.mrf.mxu2 }
  0xf7   : > { %v1447_v12 = vpack.c.bf16 %v886_v9, %v885_v8  ;;  %v701_v13 = vadd.f32 %v1765_v61, %v700_v10  ;;  %v839_v14 = vpop.f32.mrf.mxu3 }
  0xf8   : > { %v643_v15 = vpop.f32.mrf.mxu0 }
  0xf9   : > { %1552 = vst [vmem:[%s1783_s4 + $0x20] sm:$0xff] %v1447_v12   ;;  %v835_v16 = vadd.f32 %v834_v53, %v701_v13  ;;  %v777_v18 = vpop.f32.mrf.mxu1  ;;  %v644_v22 = vadd.f32 %v1765_v61, %v643_v15 }
  0xfb   : > { %v910_v20 = vmax.f32 %v835_v16, 0.0  ;;  %v778_v26 = vadd.f32 %v777_v18, %v644_v22 }
  0xfd   : > { %v1507_v21 = vpack.c.bf16 %v910_v20, %v909_v19  ;;  %v887_v32 = vmax.f32 %v778_v26, 0.0 }
  0xfe   : > { %v703_v23 = vpop.f32.mrf.mxu2 }
  0xff   : > { %1564 = vst [vmem:[%s1783_s4 + $0x80] sm:$0xff] %v1507_v21   ;;  %v842_v24 = vpop.f32.mrf.mxu3  ;;  %v704_v30 = vadd.f32 %v1765_v61, %v703_v23 }
 0x100   : > { %v645_v25 = vpop.f32.mrf.mxu0 }
 0x101   : > { %v646_v27 = vadd.f32 %v1765_v61, %v645_v25  ;;  %v779_v29 = vpop.f32.mrf.mxu1  ;;  %v838_v34 = vadd.f32 %v837_v63, %v704_v30 }
 0x103   : > { %v780_v31 = vadd.f32 %v779_v29, %v646_v27  ;;  %v911_v41 = vmax.f32 %v838_v34, 0.0 }
 0x105   : > { %v888_v28 = vmax.f32 %v780_v31, 0.0 }
 0x106   : > { %v705_v33 = vpop.f32.mrf.mxu2 }
 0x107   : > { %v1452_v35 = vpack.c.bf16 %v888_v28, %v887_v32  ;;  %v706_v36 = vadd.f32 %v1765_v61, %v705_v33  ;;  %v844_v37 = vpop.f32.mrf.mxu3 }
 0x108   : > { %v648_v38 = vpop.f32.mrf.mxu0 }
 0x109   : > { %1553 = vst [vmem:[%s1783_s4 + $0x28] sm:$0xff] %v1452_v35   ;;  %v840_v39 = vadd.f32 %v839_v14, %v706_v36  ;;  %v782_v40 = vpop.f32.mrf.mxu1  ;;  %v649_v44 = vadd.f32 %v1765_v61, %v648_v38 }
 0x10b   : > { %v912_v42 = vmax.f32 %v840_v39, 0.0  ;;  %v783_v48 = vadd.f32 %v782_v40, %v649_v44 }
 0x10d   : > { %v1512_v43 = vpack.c.bf16 %v912_v42, %v911_v41  ;;  %v889_v53 = vmax.f32 %v783_v48, 0.0 }
 0x10e   : > { %v708_v45 = vpop.f32.mrf.mxu2 }
 0x10f   : > { %1565 = vst [vmem:[%s1783_s4 + $0x88] sm:$0xff] %v1512_v43   ;;  %v847_v46 = vpop.f32.mrf.mxu3  ;;  %v709_v51 = vadd.f32 %v1765_v61, %v708_v45 }
 0x110   : > { %v650_v47 = vpop.f32.mrf.mxu0 }
 0x111   : > { %v651_v49 = vadd.f32 %v1765_v61, %v650_v47  ;;  %v784_v50 = vpop.f32.mrf.mxu1  ;;  %v843_v56 = vadd.f32 %v842_v24, %v709_v51 }
 0x113   : > { %v785_v52 = vadd.f32 %v784_v50, %v651_v49  ;;  %v913_v63 = vmax.f32 %v843_v56, 0.0 }
 0x115   : > { %v890_v54 = vmax.f32 %v785_v52, 0.0 }
 0x116   : > { %v710_v55 = vpop.f32.mrf.mxu2 }
 0x117   : > { %v1457_v57 = vpack.c.bf16 %v890_v54, %v889_v53  ;;  %v711_v58 = vadd.f32 %v1765_v61, %v710_v55  ;;  %v849_v59 = vpop.f32.mrf.mxu3 }
 0x118   : > { %v653_v60 = vpop.f32.mrf.mxu0 }
 0x119   : > { %1554 = vst [vmem:[%s1783_s4 + $0x30] sm:$0xff] %v1457_v57   ;;  %v845_v62 = vadd.f32 %v844_v37, %v711_v58  ;;  %v787_v1 = vpop.f32.mrf.mxu1  ;;  %v654_v4 = vadd.f32 %v1765_v61, %v653_v60 }
 0x11b   : > { %v914_v2 = vmax.f32 %v845_v62, 0.0  ;;  %v788_v8 = vadd.f32 %v787_v1, %v654_v4 }
 0x11d   : > { %v1517_v3 = vpack.c.bf16 %v914_v2, %v913_v63  ;;  %v891_v13 = vmax.f32 %v788_v8, 0.0 }
 0x11e   : > { %v713_v5 = vpop.f32.mrf.mxu2 }
 0x11f   : > { %1566 = vst [vmem:[%s1783_s4 + $0x90] sm:$0xff] %v1517_v3   ;;  %v852_v6 = vpop.f32.mrf.mxu3  ;;  %v714_v11 = vadd.f32 %v1765_v61, %v713_v5 }
 0x120   : > { %v655_v7 = vpop.f32.mrf.mxu0 }
 0x121   : > { %v656_v9 = vadd.f32 %v1765_v61, %v655_v7  ;;  %v789_v10 = vpop.f32.mrf.mxu1  ;;  %v848_v16 = vadd.f32 %v847_v46, %v714_v11 }
 0x123   : > { %v790_v12 = vadd.f32 %v789_v10, %v656_v9  ;;  %v915_v24 = vmax.f32 %v848_v16, 0.0 }
 0x125   : > { %v892_v14 = vmax.f32 %v790_v12, 0.0 }
 0x126   : > { %v715_v15 = vpop.f32.mrf.mxu2 }
 0x127   : > { %v1462_v18 = vpack.c.bf16 %v892_v14, %v891_v13  ;;  %v716_v19 = vadd.f32 %v1765_v61, %v715_v15  ;;  %v854_v21 = vpop.f32.mrf.mxu3 }
 0x128   : > { %v658_v20 = vpop.f32.mrf.mxu0 }
 0x129   : > { %1555 = vst [vmem:[%s1783_s4 + $0x38] sm:$0xff] %v1462_v18   ;;  %v850_v22 = vadd.f32 %v849_v59, %v716_v19  ;;  %v792_v23 = vpop.f32.mrf.mxu1  ;;  %v659_v27 = vadd.f32 %v1765_v61, %v658_v20 }
 0x12b   : > { %v916_v25 = vmax.f32 %v850_v22, 0.0  ;;  %v793_v31 = vadd.f32 %v792_v23, %v659_v27 }
 0x12d   : > { %v1522_v26 = vpack.c.bf16 %v916_v25, %v915_v24  ;;  %v893_v36 = vmax.f32 %v793_v31, 0.0 }
 0x12e   : > { %v718_v29 = vpop.f32.mrf.mxu2 }
 0x12f   : > { %1567 = vst [vmem:[%s1783_s4 + $0x98] sm:$0xff] %v1522_v26   ;;  %v857_v33 = vpop.f32.mrf.mxu3  ;;  %v719_v34 = vadd.f32 %v1765_v61, %v718_v29 }
 0x130   : > { %v660_v30 = vpop.f32.mrf.mxu0 }
 0x131   : > { %v661_v32 = vadd.f32 %v1765_v61, %v660_v30  ;;  %v794_v28 = vpop.f32.mrf.mxu1  ;;  %v853_v39 = vadd.f32 %v852_v6, %v719_v34 }
 0x133   : > { %v795_v35 = vadd.f32 %v794_v28, %v661_v32  ;;  %v917_v45 = vmax.f32 %v853_v39, 0.0 }
 0x135   : > { %v894_v37 = vmax.f32 %v795_v35, 0.0 }
 0x136   : > { %v720_v38 = vpop.f32.mrf.mxu2 }
 0x137   : > { %v1467_v40 = vpack.c.bf16 %v894_v37, %v893_v36  ;;  %v721_v41 = vadd.f32 %v1765_v61, %v720_v38  ;;  %v859_v47 = vpop.f32.mrf.mxu3 }
 0x138   : > { %v663_v42 = vpop.f32.mrf.mxu0 }
 0x139   : > { %1556 = vst [vmem:[%s1783_s4 + $0x40] sm:$0xff] %v1467_v40   ;;  %v855_v43 = vadd.f32 %v854_v21, %v721_v41  ;;  %v797_v44 = vpop.f32.mrf.mxu1  ;;  %v664_v49 = vadd.f32 %v1765_v61, %v663_v42 }
 0x13b   : > { %v918_v46 = vmax.f32 %v855_v43, 0.0  ;;  %v798_v52 = vadd.f32 %v797_v44, %v664_v49 }
 0x13d   : > { %v1527_v48 = vpack.c.bf16 %v918_v46, %v917_v45  ;;  %v895_v57 = vmax.f32 %v798_v52, 0.0 }
 0x13e   : > { %v723_v50 = vpop.f32.mrf.mxu2 }
 0x13f   : > { %1568 = vst [vmem:[%s1783_s4 + $0xa0] sm:$0xff] %v1527_v48   ;;  %v724_v55 = vadd.f32 %v1765_v61, %v723_v50  ;;  %v862_v60 = vpop.f32.mrf.mxu3 }
 0x140   : > { %v665_v51 = vpop.f32.mrf.mxu0 }
 0x141   : > { %v666_v53 = vadd.f32 %v1765_v61, %v665_v51  ;;  %v799_v54 = vpop.f32.mrf.mxu1  ;;  %v858_v62 = vadd.f32 %v857_v33, %v724_v55  ;;  %v679_v51 = vadd.f32 %v1765_v61, %v1768_v0 }
 0x143   : > { %v800_v56 = vadd.f32 %v799_v54, %v666_v53  ;;  %v919_v5 = vmax.f32 %v858_v62, 0.0  ;;  %v681_v54 = vadd.f32 %v1765_v61, %v1785_v17 }
 0x145   : > { %v896_v58 = vmax.f32 %v800_v56, 0.0 }
 0x146   : > { %v725_v59 = vpop.f32.mrf.mxu2 }
 0x147   : > { %v1472_v1 = vpack.c.bf16 %v896_v58, %v895_v57  ;;  %v726_v63 = vadd.f32 %v1765_v61, %v725_v59  ;;  %v864_v11 = vpop.f32.mrf.mxu3 }
 0x148   : > { %v668_v2 = vpop.f32.mrf.mxu0 }
 0x149   : > { %1557 = vst [vmem:[%s1783_s4 + $0x48] sm:$0xff] %v1472_v1   ;;  %v860_v3 = vadd.f32 %v859_v47, %v726_v63  ;;  %v802_v4 = vpop.f32.mrf.mxu1  ;;  %v669_v8 = vadd.f32 %v1765_v61, %v668_v2 }
 0x14b   : > { %v920_v6 = vmax.f32 %v860_v3, 0.0  ;;  %v803_v12 = vadd.f32 %v802_v4, %v669_v8 }
 0x14d   : > { %v1532_v7 = vpack.c.bf16 %v920_v6, %v919_v5  ;;  %v897_v18 = vmax.f32 %v803_v12, 0.0 }
 0x14e   : > { %v728_v9 = vpop.f32.mrf.mxu2 }
 0x14f   : > { %1569 = vst [vmem:[%s1783_s4 + $0xa8] sm:$0xff] %v1532_v7   ;;  %v729_v15 = vadd.f32 %v1765_v61, %v728_v9  ;;  %v867_v27 = vpop.f32.mrf.mxu3 }
 0x150   : > { %v670_v10 = vpop.f32.mrf.mxu0 }
 0x151   : > { %v671_v13 = vadd.f32 %v1765_v61, %v670_v10  ;;  %v804_v14 = vpop.f32.mrf.mxu1  ;;  %v863_v21 = vadd.f32 %v862_v60, %v729_v15 }
 0x153   : > { %v805_v16 = vadd.f32 %v804_v14, %v671_v13  ;;  %v921_v29 = vmax.f32 %v863_v21, 0.0 }
 0x155   : > { %v898_v19 = vmax.f32 %v805_v16, 0.0 }
 0x156   : > { %v730_v20 = vpop.f32.mrf.mxu2 }
 0x157   : > { %v1477_v22 = vpack.c.bf16 %v898_v19, %v897_v18  ;;  %v731_v23 = vadd.f32 %v1765_v61, %v730_v20  ;;  %v869_v39 = vpop.f32.mrf.mxu3 }
 0x158   : > { %v673_v24 = vpop.f32.mrf.mxu0 }
 0x159   : > { %1558 = vst [vmem:[%s1783_s4 + $0x50] sm:$0xff] %v1477_v22   ;;  %v865_v25 = vadd.f32 %v864_v11, %v731_v23  ;;  %v807_v26 = vpop.f32.mrf.mxu1  ;;  %v674_v32 = vadd.f32 %v1765_v61, %v673_v24 }
 0x15b   : > { %v922_v30 = vmax.f32 %v865_v25, 0.0  ;;  %v808_v34 = vadd.f32 %v807_v26, %v674_v32 }
 0x15d   : > { %v1537_v31 = vpack.c.bf16 %v922_v30, %v921_v29  ;;  %v899_v40 = vmax.f32 %v808_v34, 0.0 }
 0x15e   : > { %v733_v28 = vpop.f32.mrf.mxu2 }
 0x15f   : > { %1570 = vst [vmem:[%s1783_s4 + $0xb0] sm:$0xff] %v1537_v31   ;;  %v734_v37 = vadd.f32 %v1765_v61, %v733_v28  ;;  %v872_v52 = vpop.f32.mrf.mxu3 }
 0x160   : > { %v675_v33 = vpop.f32.mrf.mxu0 }
 0x161   : > { %v676_v35 = vadd.f32 %v1765_v61, %v675_v33  ;;  %v809_v36 = vpop.f32.mrf.mxu1  ;;  %v868_v43 = vadd.f32 %v867_v27, %v734_v37 }
 0x163   : > { %v810_v38 = vadd.f32 %v809_v36, %v676_v35  ;;  %v923_v48 = vmax.f32 %v868_v43, 0.0 }
 0x165   : > { %v900_v41 = vmax.f32 %v810_v38, 0.0 }
 0x166   : > { %v735_v42 = vpop.f32.mrf.mxu2 }
 0x167   : > { %v1482_v44 = vpack.c.bf16 %v900_v41, %v899_v40  ;;  %v736_v45 = vadd.f32 %v1765_v61, %v735_v42  ;;  %v874_v0 = vpop.f32.mrf.mxu3 }
 0x169   : > { %1559 = vst [vmem:[%s1783_s4 + $0x58] sm:$0xff] %v1482_v44   ;;  %v870_v46 = vadd.f32 %v869_v39, %v736_v45  ;;  %v812_v47 = vpop.f32.mrf.mxu1 }
 0x16a   : > { %v813_v55 = vadd.f32 %v812_v47, %v679_v51 }
 0x16b   : > { %v924_v49 = vmax.f32 %v870_v46, 0.0 }
 0x16c   : > { %v901_v59 = vmax.f32 %v813_v55, 0.0 }
 0x16d   : > { %v1542_v50 = vpack.c.bf16 %v924_v49, %v923_v48 }
 0x16e   : > { %v738_v53 = vpop.f32.mrf.mxu2 }
 0x16f   : > { %1571 = vst [vmem:[%s1783_s4 + $0xb8] sm:$0xff] %v1542_v50   ;;  %v739_v58 = vadd.f32 %v1765_v61, %v738_v53 }
 0x171   : > { %v814_v56 = vpop.f32.mrf.mxu1  ;;  %v873_v63 = vadd.f32 %v872_v52, %v739_v58 }
 0x172   : > { %v815_v57 = vadd.f32 %v814_v56, %v681_v54 }
 0x173   : > { %v925_v4 = vmax.f32 %v873_v63, 0.0 }
 0x174   : > { %v902_v60 = vmax.f32 %v815_v57, 0.0 }
 0x176   : > { %v1487_v62 = vpack.c.bf16 %v902_v60, %v901_v59  ;;  %v740_v1 = vpop.f32.mrf.mxu2 }
 0x177   : > { %v741_v2 = vadd.f32 %v1765_v61, %v740_v1 }
 0x178   : > { %1560 = vst [vmem:[%s1783_s4 + $0x60] sm:$0xff] %v1487_v62  }
 0x179   : > { %v875_v3 = vadd.f32 %v874_v0, %v741_v2 }
 0x17b   : > { %v926_v5 = vmax.f32 %v875_v3, 0.0 }
 0x17d   : > { %v1547_v6 = vpack.c.bf16 %v926_v5, %v925_v4 }
 0x17f   : > { %1572 = vst [vmem:[%s1783_s4 + $0xc0] sm:$0xff] %v1547_v6  }
 0x180 PF: > { %s13_s12 = sadd.s32 1, %s1604_s12  }
 0x181   : > { %p10_p4 = scmp.ge.s32.totalorder %s13_s12, 4  }
 0x183   :  { %12 = sbr.rel (!%p10_p4) target bundleno = 1 (0x1), region = 62 }

// kernel: qnetwork_forward.5
= control target key start
LH: loop header
LB: loop body
LE: loop exit
PB: predicated region body
PF: predicated region fallthrough
CT: control target
= control target key end

     0   :  { %s1750_s1 = inlined_call_operand.vmem [shape: bf16[512,128], index: 1, kind: input, shape index: {}]   ;;  %s1751_s2 = inlined_call_operand.vmem [shape: f32[1,128], index: 2, kind: input, shape index: {}]   ;;  %s1752_s0 = inlined_call_operand.vmem [shape: bf16[176,512], index: 0, kind: input, shape index: {}]   ;;  %s1753_s3 = inlined_call_operand.vmem [shape: bf16[176,128], index: 3, kind: output, shape index: {}]  }
   0x1   :  { %v1219_v0 = vld [vmem:[%s1750_s1 + $0x38] sm:$0xff]  ;;  %v1218_v4 = vld [vmem:[%s1750_s1 + $0x30] sm:$0xff]  ;;  %v1217_v8 = vld [vmem:[%s1750_s1 + $0x28] sm:$0xff] }
   0x2   :  { %v1227_v1 = vld [vmem:[%s1750_s1 + $0x78] sm:$0xff]  ;;  %538 = vmatpush.bf16.msra.mxu0 %v1219_v0  ;;  %v1226_v5 = vld [vmem:[%s1750_s1 + $0x70] sm:$0xff]  ;;  %v1225_v9 = vld [vmem:[%s1750_s1 + $0x68] sm:$0xff] }
   0x3   :  { %v1235_v2 = vld [vmem:[%s1750_s1 + $0xb8] sm:$0xff]  ;;  %602 = vmatpush.bf16.msra.mxu1 %v1227_v1  ;;  %v1234_v6 = vld [vmem:[%s1750_s1 + $0xb0] sm:$0xff]  ;;  %v1233_v10 = vld [vmem:[%s1750_s1 + $0xa8] sm:$0xff] }
   0x4   :  { %v1243_v3 = vld [vmem:[%s1750_s1 + $0xf8] sm:$0xff]  ;;  %666 = vmatpush.bf16.msra.mxu2 %v1235_v2  ;;  %v1242_v7 = vld [vmem:[%s1750_s1 + $0xf0] sm:$0xff]  ;;  %v1241_v11 = vld [vmem:[%s1750_s1 + $0xe8] sm:$0xff] }
   0x5   :  { %730 = vmatpush.bf16.msra.mxu3 %v1243_v3  ;;  %v1216_v12 = vld [vmem:[%s1750_s1 + $0x20] sm:$0xff]  ;;  %v1215_v16 = vld [vmem:[%s1750_s1 + $0x18] sm:$0xff]  ;;  %v1214_v20 = vld [vmem:[%s1750_s1 + $0x10] sm:$0xff] }
   0x6   :  { %539 = vmatpush.bf16.msra.mxu0 %v1218_v4  ;;  %v1224_v13 = vld [vmem:[%s1750_s1 + $0x60] sm:$0xff]  ;;  %v1223_v17 = vld [vmem:[%s1750_s1 + $0x58] sm:$0xff]  ;;  %v1222_v21 = vld [vmem:[%s1750_s1 + $0x50] sm:$0xff] }
   0x7   :  { %603 = vmatpush.bf16.msra.mxu1 %v1226_v5  ;;  %v1232_v14 = vld [vmem:[%s1750_s1 + $0xa0] sm:$0xff]  ;;  %v1231_v18 = vld [vmem:[%s1750_s1 + $0x98] sm:$0xff]  ;;  %v1230_v22 = vld [vmem:[%s1750_s1 + $0x90] sm:$0xff] }
   0x8   :  { %667 = vmatpush.bf16.msra.mxu2 %v1234_v6  ;;  %v1240_v15 = vld [vmem:[%s1750_s1 + $0xe0] sm:$0xff]  ;;  %v1239_v19 = vld [vmem:[%s1750_s1 + $0xd8] sm:$0xff]  ;;  %v1238_v23 = vld [vmem:[%s1750_s1 + $0xd0] sm:$0xff] }
   0x9   :  { %731 = vmatpush.bf16.msra.mxu3 %v1242_v7  ;;  %v1213_v24 = vld [vmem:[%s1750_s1 + $0x8] sm:$0xff]  ;;  %v1212_v28 = vld [vmem:[%s1750_s1] sm:$0xff]  ;;  %v1170_v33 = vld [vmem:[%s1752_s0 + $0xc] sm:$0xf0] }
   0xa   :  { %540 = vmatpush.bf16.msra.mxu0 %v1217_v8  ;;  %v1221_v25 = vld [vmem:[%s1750_s1 + $0x48] sm:$0xff]  ;;  %v1220_v29 = vld [vmem:[%s1750_s1 + $0x40] sm:$0xff]  ;;  %v868_v35 = vld [vmem:[%s1752_s0 + $0x10] sm:$0xf0] }
   0xb   :  { %604 = vmatpush.bf16.msra.mxu1 %v1225_v9  ;;  %v1229_v26 = vld [vmem:[%s1750_s1 + $0x88] sm:$0xff]  ;;  %v1228_v30 = vld [vmem:[%s1750_s1 + $0x80] sm:$0xff]  ;;  %v1171_v37 = vld [vmem:[%s1752_s0 + $0x14] sm:$0xf0] }
   0xc   :  { %668 = vmatpush.bf16.msra.mxu2 %v1233_v10  ;;  %v1237_v27 = vld [vmem:[%s1750_s1 + $0xc8] sm:$0xff]  ;;  %v1236_v31 = vld [vmem:[%s1750_s1 + $0xc0] sm:$0xff]  ;;  %v876_v39 = vld [vmem:[%s1752_s0 + $0x18] sm:$0xf0] }
   0xd   :  { %732 = vmatpush.bf16.msra.mxu3 %v1241_v11  ;;  %v866_v32 = vld [vmem:[%s1752_s0] sm:$0xf]  ;;  %v1168_v34 = vld [vmem:[%s1752_s0 + $0x4] sm:$0xf]  ;;  %v874_v36 = vld [vmem:[%s1752_s0 + $0x8] sm:$0xf] }
   0xe   :  { %541 = vmatpush.bf16.msra.mxu0 %v1216_v12  ;;  %v1169_v38 = vld [vmem:[%s1752_s0 + $0xc] sm:$0xf]  ;;  %v867_v40 = vor.u32 %v1170_v33, %v866_v32  ;;  %v871_v41 = vor.u32 %v1168_v34, %v868_v35  ;;  %v875_v42 = vor.u32 %v1171_v37, %v874_v36  ;;  %v882_v44 = vld [vmem:[%s1752_s0 + $0x20] sm:$0xf]  ;;  %v1174_v45 = vld [vmem:[%s1752_s0 + $0x2c] sm:$0xf0] }
   0xf   :  { %605 = vmatpush.bf16.msra.mxu1 %v1224_v13  ;;  %v879_v43 = vor.u32 %v1169_v38, %v876_v39  ;;  %v1172_v46 = vld [vmem:[%s1752_s0 + $0x24] sm:$0xf]  ;;  %v884_v47 = vld [vmem:[%s1752_s0 + $0x30] sm:$0xf0]  ;;  %v890_v48 = vld [vmem:[%s1752_s0 + $0x28] sm:$0xf]  ;;  %v883_v52 = vor.u32 %v1174_v45, %v882_v44 }
  0x10   :  { %669 = vmatpush.bf16.msra.mxu2 %v1232_v14  ;;  %v1175_v49 = vld [vmem:[%s1752_s0 + $0x34] sm:$0xf0]  ;;  %v1173_v50 = vld [vmem:[%s1752_s0 + $0x2c] sm:$0xf]  ;;  %v892_v51 = vld [vmem:[%s1752_s0 + $0x38] sm:$0xf0]  ;;  %v887_v53 = vor.u32 %v1172_v46, %v884_v47 }
  0x11   :  { %733 = vmatpush.bf16.msra.mxu3 %v1240_v15  ;;  %v891_v54 = vor.u32 %v1175_v49, %v890_v48  ;;  %v895_v55 = vor.u32 %v1173_v50, %v892_v51  ;;  %v898_v56 = vld [vmem:[%s1752_s0 + $0x40] sm:$0xf]  ;;  %v1178_v57 = vld [vmem:[%s1752_s0 + $0x4c] sm:$0xf0]  ;;  %v1176_v58 = vld [vmem:[%s1752_s0 + $0x44] sm:$0xf] }
  0x12   :  { %542 = vmatpush.bf16.msra.mxu0 %v1215_v16  ;;  %v900_v59 = vld [vmem:[%s1752_s0 + $0x50] sm:$0xf0]  ;;  %v906_v60 = vld [vmem:[%s1752_s0 + $0x48] sm:$0xf]  ;;  %v1179_v61 = vld [vmem:[%s1752_s0 + $0x54] sm:$0xf0]  ;;  %v899_v0 = vor.u32 %v1178_v57, %v898_v56 }
  0x13   :  { %606 = vmatpush.bf16.msra.mxu1 %v1223_v17  ;;  %v1177_v62 = vld [vmem:[%s1752_s0 + $0x4c] sm:$0xf]  ;;  %v908_v63 = vld [vmem:[%s1752_s0 + $0x58] sm:$0xf0]  ;;  %v903_v1 = vor.u32 %v1176_v58, %v900_v59  ;;  %v907_v2 = vor.u32 %v1179_v61, %v906_v60  ;;  %v914_v4 = vld [vmem:[%s1752_s0 + $0x60] sm:$0xf] }
  0x14   :  { %670 = vmatpush.bf16.msra.mxu2 %v1231_v18  ;;  %v911_v3 = vor.u32 %v1177_v62, %v908_v63  ;;  %v1182_v5 = vld [vmem:[%s1752_s0 + $0x6c] sm:$0xf0]  ;;  %v1180_v6 = vld [vmem:[%s1752_s0 + $0x64] sm:$0xf]  ;;  %v916_v7 = vld [vmem:[%s1752_s0 + $0x70] sm:$0xf0] }
  0x15   :  { %734 = vmatpush.bf16.msra.mxu3 %v1239_v19  ;;  %v922_v8 = vld [vmem:[%s1752_s0 + $0x68] sm:$0xf]  ;;  %v1183_v9 = vld [vmem:[%s1752_s0 + $0x74] sm:$0xf0]  ;;  %v1181_v10 = vld [vmem:[%s1752_s0 + $0x6c] sm:$0xf]  ;;  %v915_v12 = vor.u32 %v1182_v5, %v914_v4  ;;  %v919_v13 = vor.u32 %v1180_v6, %v916_v7 }
  0x16   :  { %543 = vmatpush.bf16.msra.mxu0 %v1214_v20  ;;  %v924_v11 = vld [vmem:[%s1752_s0 + $0x78] sm:$0xf0]  ;;  %v923_v14 = vor.u32 %v1183_v9, %v922_v8  ;;  %v930_v16 = vld [vmem:[%s1752_s0 + $0x80] sm:$0xf]  ;;  %v1186_v17 = vld [vmem:[%s1752_s0 + $0x8c] sm:$0xf0] }
  0x17   :  { %607 = vmatpush.bf16.msra.mxu1 %v1222_v21  ;;  %v927_v15 = vor.u32 %v1181_v10, %v924_v11  ;;  %v1184_v18 = vld [vmem:[%s1752_s0 + $0x84] sm:$0xf]  ;;  %v932_v19 = vld [vmem:[%s1752_s0 + $0x90] sm:$0xf0]  ;;  %v938_v20 = vld [vmem:[%s1752_s0 + $0x88] sm:$0xf] }
  0x18   :  { %671 = vmatpush.bf16.msra.mxu2 %v1230_v22  ;;  %v1187_v21 = vld [vmem:[%s1752_s0 + $0x94] sm:$0xf0]  ;;  %v1185_v22 = vld [vmem:[%s1752_s0 + $0x8c] sm:$0xf]  ;;  %v954_v32 = vld [vmem:[%s1752_s0 + $0xa8] sm:$0xf] }
  0x19   :  { %735 = vmatpush.bf16.msra.mxu3 %v1238_v23  ;;  %v940_v23 = vld [vmem:[%s1752_s0 + $0x98] sm:$0xf0]  ;;  %v1191_v33 = vld [vmem:[%s1752_s0 + $0xb4] sm:$0xf0]  ;;  %v1189_v34 = vld [vmem:[%s1752_s0 + $0xac] sm:$0xf] }
  0x1a   :  { %544 = vmatpush.bf16.msra.mxu0 %v1213_v24  ;;  %v931_v24 = vor.u32 %v1186_v17, %v930_v16  ;;  %v956_v35 = vld [vmem:[%s1752_s0 + $0xb8] sm:$0xf0]  ;;  %v955_v38 = vor.u32 %v1191_v33, %v954_v32  ;;  %v970_v44 = vld [vmem:[%s1752_s0 + $0xc8] sm:$0xf]  ;;  %v1195_v45 = vld [vmem:[%s1752_s0 + $0xd4] sm:$0xf0] }
  0x1b   :  { %608 = vmatpush.bf16.msra.mxu1 %v1221_v25  ;;  %v935_v25 = vor.u32 %v1184_v18, %v932_v19  ;;  %v959_v39 = vor.u32 %v1189_v34, %v956_v35  ;;  %v1193_v46 = vld [vmem:[%s1752_s0 + $0xcc] sm:$0xf]  ;;  %v972_v47 = vld [vmem:[%s1752_s0 + $0xd8] sm:$0xf0]  ;;  %v971_v50 = vor.u32 %v1195_v45, %v970_v44  ;;  %v986_v56 = vld [vmem:[%s1752_s0 + $0xe8] sm:$0xf] }
  0x1c   :  { %672 = vmatpush.bf16.msra.mxu2 %v1229_v26  ;;  %v939_v26 = vor.u32 %v1187_v21, %v938_v20  ;;  %v975_v51 = vor.u32 %v1193_v46, %v972_v47  ;;  %v1199_v57 = vld [vmem:[%s1752_s0 + $0xf4] sm:$0xf0]  ;;  %v1197_v58 = vld [vmem:[%s1752_s0 + $0xec] sm:$0xf]  ;;  %v988_v59 = vld [vmem:[%s1752_s0 + $0xf8] sm:$0xf0] }
  0x1d   :  { %736 = vmatpush.bf16.msra.mxu3 %v1237_v27  ;;  %v943_v27 = vor.u32 %v1185_v22, %v940_v23  ;;  %v987_v62 = vor.u32 %v1199_v57, %v986_v56  ;;  %v991_v63 = vor.u32 %v1197_v58, %v988_v59  ;;  %v1002_v4 = vld [vmem:[%s1752_s0 + $0x108] sm:$0xf]  ;;  %v1203_v5 = vld [vmem:[%s1752_s0 + $0x114] sm:$0xf0]  ;;  %v1201_v6 = vld [vmem:[%s1752_s0 + $0x10c] sm:$0xf] }
  0x1e   :  { %545 = vmatpush.bf16.msra.mxu0 %v1212_v28  ;;  %v946_v28 = vld [vmem:[%s1752_s0 + $0xa0] sm:$0xf]  ;;  %v1004_v7 = vld [vmem:[%s1752_s0 + $0x118] sm:$0xf0]  ;;  %v1206_v23 = vld [vmem:[%s1752_s0 + $0x12c] sm:$0xf0] }
  0x1f   :  { %609 = vmatpush.bf16.msra.mxu1 %v1220_v29  ;;  %v1190_v29 = vld [vmem:[%s1752_s0 + $0xac] sm:$0xf0]  ;;  %v1645_v10 = vld [vmem:[%s1751_s2] ss:$0 sm:$0xff]  ;;  %v1208_v56 = vld [vmem:[%s1752_s0 + $0x144] sm:$0xf] }
  0x20   :  { %673 = vmatpush.bf16.msra.mxu2 %v1228_v30  ;;  %v1188_v30 = vld [vmem:[%s1752_s0 + $0xa4] sm:$0xf]  ;;  %v947_v36 = vor.u32 %v1190_v29, %v946_v28  ;;  %v1010_v22 = vld [vmem:[%s1752_s0 + $0x120] sm:$0xf]  ;;  %v1207_v28 = vld [vmem:[%s1752_s0 + $0x134] sm:$0xf0] }
  0x21   :  { %737 = vmatpush.bf16.msra.mxu3 %v1236_v31  ;;  %546 = vmatmul.bf16.vlgmr.msra.gmra.mxu0 %v867_v40  ;;  %v948_v31 = vld [vmem:[%s1752_s0 + $0xb0] sm:$0xf0]  ;;  %v962_v40 = vld [vmem:[%s1752_s0 + $0xc0] sm:$0xf]  ;;  %v1205_v29 = vld [vmem:[%s1752_s0 + $0x12c] sm:$0xf]  ;;  %v1011_v34 = vor.u32 %v1206_v23, %v1010_v22 }
  0x22   :  { %610 = vmatmul.bf16.vlgmr.msra.gmra.mxu1 %v871_v41  ;;  %v951_v37 = vor.u32 %v1188_v30, %v948_v31  ;;  %v1194_v41 = vld [vmem:[%s1752_s0 + $0xcc] sm:$0xf0]  ;;  %v1020_v30 = vld [vmem:[%s1752_s0 + $0x138] sm:$0xf0]  ;;  %v1028_v57 = vld [vmem:[%s1752_s0 + $0x150] sm:$0xf0] }
  0x23   :  { %674 = vmatmul.bf16.vlgmr.msra.gmra.mxu2 %v875_v42  ;;  %v1192_v42 = vld [vmem:[%s1752_s0 + $0xc4] sm:$0xf]  ;;  %v963_v48 = vor.u32 %v1194_v41, %v962_v40  ;;  %v1023_v41 = vor.u32 %v1205_v29, %v1020_v30  ;;  %v1034_v58 = vld [vmem:[%s1752_s0 + $0x148] sm:$0xf]  ;;  %v1211_v59 = vld [vmem:[%s1752_s0 + $0x154] sm:$0xf0] }
  0x24   :  { %738 = vmatmul.bf16.vlgmr.msra.gmra.mxu3 %v879_v43  ;;  %v964_v43 = vld [vmem:[%s1752_s0 + $0xd0] sm:$0xf0] }
  0x25   :  { %v967_v49 = vor.u32 %v1192_v42, %v964_v43 }
  0x31   :  { %551 = vmatmul.bf16.gmra.mxu0 %v883_v52  ;;  %v978_v52 = vld [vmem:[%s1752_s0 + $0xe0] sm:$0xf] }
  0x32   :  { %615 = vmatmul.bf16.gmra.mxu1 %v887_v53  ;;  %v1198_v53 = vld [vmem:[%s1752_s0 + $0xec] sm:$0xf0] }
  0x33   :  { %679 = vmatmul.bf16.gmra.mxu2 %v891_v54  ;;  %v1196_v54 = vld [vmem:[%s1752_s0 + $0xe4] sm:$0xf]  ;;  %v979_v60 = vor.u32 %v1198_v53, %v978_v52  ;;  %v1026_v53 = vld [vmem:[%s1752_s0 + $0x140] sm:$0xf] }
  0x34   :  { %743 = vmatmul.bf16.gmra.mxu3 %v895_v55  ;;  %v980_v55 = vld [vmem:[%s1752_s0 + $0xf0] sm:$0xf0] }
  0x35   :  { %v983_v61 = vor.u32 %v1196_v54, %v980_v55  ;;  %v1210_v54 = vld [vmem:[%s1752_s0 + $0x14c] sm:$0xf0] }
  0x41   :  { %556 = vmatmul.bf16.gmra.mxu0 %v899_v0  ;;  %v994_v0 = vld [vmem:[%s1752_s0 + $0x100] sm:$0xf] }
  0x42   :  { %620 = vmatmul.bf16.gmra.mxu1 %v903_v1  ;;  %v1202_v1 = vld [vmem:[%s1752_s0 + $0x10c] sm:$0xf0] }
  0x43   :  { %684 = vmatmul.bf16.gmra.mxu2 %v907_v2  ;;  %v1200_v2 = vld [vmem:[%s1752_s0 + $0x104] sm:$0xf]  ;;  %v995_v8 = vor.u32 %v1202_v1, %v994_v0  ;;  %v1027_v1 = vor.u32 %v1210_v54, %v1026_v53 }
  0x44   :  { %748 = vmatmul.bf16.gmra.mxu3 %v911_v3  ;;  %v996_v3 = vld [vmem:[%s1752_s0 + $0x110] sm:$0xf0] }
  0x45   :  { %v999_v9 = vor.u32 %v1200_v2, %v996_v3  ;;  %v1031_v2 = vor.u32 %v1208_v56, %v1028_v57 }
  0x51   :  { %561 = vmatmul.bf16.gmra.mxu0 %v915_v12 }
  0x52   :  { %625 = vmatmul.bf16.gmra.mxu1 %v919_v13  ;;  %v1003_v13 = vor.u32 %v1203_v5, %v1002_v4 }
  0x53   :  { %689 = vmatmul.bf16.gmra.mxu2 %v923_v14  ;;  %v1007_v14 = vor.u32 %v1201_v6, %v1004_v7  ;;  %v1035_v7 = vor.u32 %v1211_v59, %v1034_v58 }
  0x54   :  { %753 = vmatmul.bf16.gmra.mxu3 %v927_v15 }
  0x61   :  { %566 = vmatmul.bf16.gmra.mxu0 %v931_v24 }
  0x62   :  { %630 = vmatmul.bf16.gmra.mxu1 %v935_v25  ;;  %v1204_v25 = vld [vmem:[%s1752_s0 + $0x124] sm:$0xf] }
  0x63   :  { %694 = vmatmul.bf16.gmra.mxu2 %v939_v26  ;;  %v1012_v26 = vld [vmem:[%s1752_s0 + $0x130] sm:$0xf0] }
  0x64   :  { %758 = vmatmul.bf16.gmra.mxu3 %v943_v27  ;;  %v1018_v27 = vld [vmem:[%s1752_s0 + $0x128] sm:$0xf]  ;;  %v1015_v35 = vor.u32 %v1204_v25, %v1012_v26 }
  0x65   :  { %v1019_v40 = vor.u32 %v1207_v28, %v1018_v27 }
  0x71   :  { %571 = vmatmul.bf16.gmra.mxu0 %v947_v36 }
  0x72   :  { %635 = vmatmul.bf16.gmra.mxu1 %v951_v37 }
  0x73   :  { %699 = vmatmul.bf16.gmra.mxu2 %v955_v38 }
  0x74   :  { %763 = vmatmul.bf16.gmra.mxu3 %v959_v39 }
  0x81   :  { %576 = vmatmul.bf16.gmra.mxu0 %v963_v48 }
  0x82   :  { %640 = vmatmul.bf16.gmra.mxu1 %v967_v49 }
  0x83   :  { %704 = vmatmul.bf16.gmra.mxu2 %v971_v50 }
  0x84   :  { %768 = vmatmul.bf16.gmra.mxu3 %v975_v51 }
  0x91   :  { %581 = vmatmul.bf16.gmra.mxu0 %v979_v60  ;;  %v1209_v60 = vld [vmem:[%s1752_s0 + $0x14c] sm:$0xf] }
  0x92   :  { %645 = vmatmul.bf16.gmra.mxu1 %v983_v61  ;;  %v1036_v61 = vld [vmem:[%s1752_s0 + $0x158] sm:$0xf0] }
  0x93   :  { %709 = vmatmul.bf16.gmra.mxu2 %v987_v62 }
  0x94   :  { %773 = vmatmul.bf16.gmra.mxu3 %v991_v63 }
  0x9e   :  { %v547_v11 = vpop.f32.mrf.mxu0 }
  0x9f   :  { %v611_v12 = vpop.f32.mrf.mxu1  ;;  %v548_v15 = vadd.f32 %v1645_v10, %v547_v11 }
  0xa1   :  { %586 = vmatmul.bf16.gmra.mxu0 %v995_v8  ;;  %v612_v18 = vadd.f32 %v611_v12, %v548_v15  ;;  %v1039_v8 = vor.u32 %v1209_v60, %v1036_v61 }
  0xa2   :  { %650 = vmatmul.bf16.gmra.mxu1 %v999_v9 }
  0xa3   :  { %714 = vmatmul.bf16.gmra.mxu2 %v1003_v13 }
  0xa4   :  { %778 = vmatmul.bf16.gmra.mxu3 %v1007_v14 }
  0xa6   :  { %v675_v16 = vpop.f32.mrf.mxu2  ;;  %v549_v19 = vpop.f32.mrf.mxu0 }
  0xa7   :  { %v739_v17 = vpop.f32.mrf.mxu3  ;;  %v613_v20 = vpop.f32.mrf.mxu1  ;;  %v550_v21 = vadd.f32 %v1645_v10, %v549_v19  ;;  %v676_v24 = vadd.f32 %v675_v16, %v612_v18 }
  0xa9   :  { %v614_v31 = vadd.f32 %v613_v20, %v550_v21  ;;  %v740_v36 = vadd.f32 %v739_v17, %v676_v24 }
  0xab   :  { %v794_v43 = vmax.f32 %v740_v36, 0.0 }
  0xae   :  { %v677_v32 = vpop.f32.mrf.mxu2  ;;  %v552_v38 = vpop.f32.mrf.mxu0 }
  0xaf   :  { %v741_v33 = vpop.f32.mrf.mxu3  ;;  %v678_v37 = vadd.f32 %v677_v32, %v614_v31  ;;  %v616_v39 = vpop.f32.mrf.mxu1  ;;  %v553_v45 = vadd.f32 %v1645_v10, %v552_v38 }
  0xb1   :  { %v742_v42 = vadd.f32 %v741_v33, %v678_v37  ;;  %591 = vmatmul.bf16.gmra.mxu0 %v1011_v34  ;;  %v617_v49 = vadd.f32 %v616_v39, %v553_v45 }
  0xb2   :  { %655 = vmatmul.bf16.gmra.mxu1 %v1015_v35 }
  0xb3   :  { %v795_v44 = vmax.f32 %v742_v42, 0.0  ;;  %719 = vmatmul.bf16.gmra.mxu2 %v1019_v40 }
  0xb4   :  { %783 = vmatmul.bf16.gmra.mxu3 %v1023_v41 }
  0xb5   :  { %v1247_v46 = vpack.c.bf16 %v795_v44, %v794_v43 }
  0xb6   :  { %v680_v47 = vpop.f32.mrf.mxu2  ;;  %v554_v50 = vpop.f32.mrf.mxu0 }
  0xb7   :  { %v744_v48 = vpop.f32.mrf.mxu3  ;;  %1248 = vst [vmem:[%s1753_s3] sm:$0xff] %v1247_v46   ;;  %v618_v51 = vpop.f32.mrf.mxu1  ;;  %v555_v52 = vadd.f32 %v1645_v10, %v554_v50  ;;  %v681_v55 = vadd.f32 %v680_v47, %v617_v49 }
  0xb9   :  { %v619_v62 = vadd.f32 %v618_v51, %v555_v52  ;;  %v745_v3 = vadd.f32 %v744_v48, %v681_v55 }
  0xbb   :  { %v796_v11 = vmax.f32 %v745_v3, 0.0 }
  0xbe   :  { %v682_v63 = vpop.f32.mrf.mxu2  ;;  %v557_v5 = vpop.f32.mrf.mxu0 }
  0xbf   :  { %v746_v0 = vpop.f32.mrf.mxu3  ;;  %v683_v4 = vadd.f32 %v682_v63, %v619_v62  ;;  %v621_v6 = vpop.f32.mrf.mxu1  ;;  %v558_v13 = vadd.f32 %v1645_v10, %v557_v5 }
  0xc1   :  { %v747_v9 = vadd.f32 %v746_v0, %v683_v4  ;;  %596 = vmatmul.bf16.gmra.mxu0 %v1027_v1  ;;  %v622_v17 = vadd.f32 %v621_v6, %v558_v13 }
  0xc2   :  { %660 = vmatmul.bf16.gmra.mxu1 %v1031_v2 }
  0xc3   :  { %v797_v12 = vmax.f32 %v747_v9, 0.0  ;;  %724 = vmatmul.bf16.gmra.mxu2 %v1035_v7 }
  0xc4   :  { %788 = vmatmul.bf16.gmra.mxu3 %v1039_v8 }
  0xc5   :  { %v1252_v14 = vpack.c.bf16 %v797_v12, %v796_v11 }
  0xc6   :  { %v685_v15 = vpop.f32.mrf.mxu2  ;;  %v559_v18 = vpop.f32.mrf.mxu0 }
  0xc7   :  { %v749_v16 = vpop.f32.mrf.mxu3  ;;  %1299 = vst [vmem:[%s1753_s3 + $0x8] sm:$0xff] %v1252_v14   ;;  %v623_v19 = vpop.f32.mrf.mxu1  ;;  %v560_v20 = vadd.f32 %v1645_v10, %v559_v18  ;;  %v686_v21 = vadd.f32 %v685_v15, %v622_v17 }
  0xc9   :  { %v624_v22 = vadd.f32 %v623_v19, %v560_v20  ;;  %v750_v25 = vadd.f32 %v749_v16, %v686_v21 }
  0xcb   :  { %v798_v30 = vmax.f32 %v750_v25, 0.0 }
  0xce   :  { %v687_v23 = vpop.f32.mrf.mxu2  ;;  %v562_v27 = vpop.f32.mrf.mxu0 }
  0xcf   :  { %v751_v24 = vpop.f32.mrf.mxu3  ;;  %v688_v26 = vadd.f32 %v687_v23, %v624_v22  ;;  %v626_v28 = vpop.f32.mrf.mxu1  ;;  %v563_v32 = vadd.f32 %v1645_v10, %v562_v27 }
  0xd1   :  { %v752_v29 = vadd.f32 %v751_v24, %v688_v26  ;;  %v627_v36 = vadd.f32 %v626_v28, %v563_v32 }
  0xd3   :  { %v799_v31 = vmax.f32 %v752_v29, 0.0 }
  0xd5   :  { %v1257_v33 = vpack.c.bf16 %v799_v31, %v798_v30 }
  0xd6   :  { %v690_v34 = vpop.f32.mrf.mxu2  ;;  %v564_v37 = vpop.f32.mrf.mxu0 }
  0xd7   :  { %v754_v35 = vpop.f32.mrf.mxu3  ;;  %1300 = vst [vmem:[%s1753_s3 + $0x10] sm:$0xff] %v1257_v33   ;;  %v628_v38 = vpop.f32.mrf.mxu1  ;;  %v565_v39 = vadd.f32 %v1645_v10, %v564_v37  ;;  %v691_v40 = vadd.f32 %v690_v34, %v627_v36 }
  0xd9   :  { %v629_v41 = vadd.f32 %v628_v38, %v565_v39  ;;  %v755_v44 = vadd.f32 %v754_v35, %v691_v40 }
  0xdb   :  { %v800_v49 = vmax.f32 %v755_v44, 0.0 }
  0xde   :  { %v692_v42 = vpop.f32.mrf.mxu2  ;;  %v567_v46 = vpop.f32.mrf.mxu0 }
  0xdf   :  { %v756_v43 = vpop.f32.mrf.mxu3  ;;  %v693_v45 = vadd.f32 %v692_v42, %v629_v41  ;;  %v631_v47 = vpop.f32.mrf.mxu1  ;;  %v568_v51 = vadd.f32 %v1645_v10, %v567_v46 }
  0xe1   :  { %v757_v48 = vadd.f32 %v756_v43, %v693_v45  ;;  %v632_v55 = vadd.f32 %v631_v47, %v568_v51 }
  0xe3   :  { %v801_v50 = vmax.f32 %v757_v48, 0.0 }
  0xe5   :  { %v1262_v52 = vpack.c.bf16 %v801_v50, %v800_v49 }
  0xe6   :  { %v695_v53 = vpop.f32.mrf.mxu2  ;;  %v569_v56 = vpop.f32.mrf.mxu0 }
  0xe7   :  { %v759_v54 = vpop.f32.mrf.mxu3  ;;  %1301 = vst [vmem:[%s1753_s3 + $0x18] sm:$0xff] %v1262_v52   ;;  %v633_v57 = vpop.f32.mrf.mxu1  ;;  %v570_v58 = vadd.f32 %v1645_v10, %v569_v56  ;;  %v696_v59 = vadd.f32 %v695_v53, %v632_v55 }
  0xe9   :  { %v634_v60 = vadd.f32 %v633_v57, %v570_v58  ;;  %v760_v63 = vadd.f32 %v759_v54, %v696_v59 }
  0xeb   :  { %v802_v4 = vmax.f32 %v760_v63, 0.0 }
  0xee   :  { %v697_v61 = vpop.f32.mrf.mxu2  ;;  %v572_v1 = vpop.f32.mrf.mxu0 }
  0xef   :  { %v761_v62 = vpop.f32.mrf.mxu3  ;;  %v698_v0 = vadd.f32 %v697_v61, %v634_v60  ;;  %v636_v2 = vpop.f32.mrf.mxu1  ;;  %v573_v6 = vadd.f32 %v1645_v10, %v572_v1 }
  0xf1   :  { %v762_v3 = vadd.f32 %v761_v62, %v698_v0  ;;  %v637_v11 = vadd.f32 %v636_v2, %v573_v6 }
  0xf3   :  { %v803_v5 = vmax.f32 %v762_v3, 0.0 }
  0xf5   :  { %v1267_v7 = vpack.c.bf16 %v803_v5, %v802_v4 }
  0xf6   :  { %v700_v8 = vpop.f32.mrf.mxu2  ;;  %v574_v12 = vpop.f32.mrf.mxu0 }
  0xf7   :  { %v764_v9 = vpop.f32.mrf.mxu3  ;;  %1302 = vst [vmem:[%s1753_s3 + $0x20] sm:$0xff] %v1267_v7   ;;  %v638_v13 = vpop.f32.mrf.mxu1  ;;  %v575_v14 = vadd.f32 %v1645_v10, %v574_v12  ;;  %v701_v15 = vadd.f32 %v700_v8, %v637_v11 }
  0xf9   :  { %v639_v16 = vadd.f32 %v638_v13, %v575_v14  ;;  %v765_v19 = vadd.f32 %v764_v9, %v701_v15 }
  0xfb   :  { %v804_v24 = vmax.f32 %v765_v19, 0.0 }
  0xfe   :  { %v702_v17 = vpop.f32.mrf.mxu2  ;;  %v577_v21 = vpop.f32.mrf.mxu0 }
  0xff   :  { %v766_v18 = vpop.f32.mrf.mxu3  ;;  %v703_v20 = vadd.f32 %v702_v17, %v639_v16  ;;  %v641_v22 = vpop.f32.mrf.mxu1  ;;  %v578_v26 = vadd.f32 %v1645_v10, %v577_v21 }
 0x101   :  { %v767_v23 = vadd.f32 %v766_v18, %v703_v20  ;;  %v642_v30 = vadd.f32 %v641_v22, %v578_v26 }
 0x103   :  { %v805_v25 = vmax.f32 %v767_v23, 0.0 }
 0x105   :  { %v1272_v27 = vpack.c.bf16 %v805_v25, %v804_v24 }
 0x106   :  { %v705_v28 = vpop.f32.mrf.mxu2  ;;  %v579_v31 = vpop.f32.mrf.mxu0 }
 0x107   :  { %v769_v29 = vpop.f32.mrf.mxu3  ;;  %1303 = vst [vmem:[%s1753_s3 + $0x28] sm:$0xff] %v1272_v27   ;;  %v643_v32 = vpop.f32.mrf.mxu1  ;;  %v580_v33 = vadd.f32 %v1645_v10, %v579_v31  ;;  %v706_v34 = vadd.f32 %v705_v28, %v642_v30 }
 0x109   :  { %v644_v35 = vadd.f32 %v643_v32, %v580_v33  ;;  %v770_v38 = vadd.f32 %v769_v29, %v706_v34 }
 0x10b   :  { %v806_v43 = vmax.f32 %v770_v38, 0.0 }
 0x10e   :  { %v707_v36 = vpop.f32.mrf.mxu2  ;;  %v582_v40 = vpop.f32.mrf.mxu0 }
 0x10f   :  { %v771_v37 = vpop.f32.mrf.mxu3  ;;  %v708_v39 = vadd.f32 %v707_v36, %v644_v35  ;;  %v646_v41 = vpop.f32.mrf.mxu1  ;;  %v583_v45 = vadd.f32 %v1645_v10, %v582_v40 }
 0x111   :  { %v772_v42 = vadd.f32 %v771_v37, %v708_v39  ;;  %v647_v49 = vadd.f32 %v646_v41, %v583_v45 }
 0x113   :  { %v807_v44 = vmax.f32 %v772_v42, 0.0 }
 0x115   :  { %v1277_v46 = vpack.c.bf16 %v807_v44, %v806_v43 }
 0x116   :  { %v710_v47 = vpop.f32.mrf.mxu2  ;;  %v584_v50 = vpop.f32.mrf.mxu0 }
 0x117   :  { %v774_v48 = vpop.f32.mrf.mxu3  ;;  %1304 = vst [vmem:[%s1753_s3 + $0x30] sm:$0xff] %v1277_v46   ;;  %v648_v51 = vpop.f32.mrf.mxu1  ;;  %v585_v52 = vadd.f32 %v1645_v10, %v584_v50  ;;  %v711_v53 = vadd.f32 %v710_v47, %v647_v49 }
 0x119   :  { %v649_v54 = vadd.f32 %v648_v51, %v585_v52  ;;  %v775_v57 = vadd.f32 %v774_v48, %v711_v53 }
 0x11b   :  { %v808_v62 = vmax.f32 %v775_v57, 0.0 }
 0x11e   :  { %v712_v55 = vpop.f32.mrf.mxu2  ;;  %v587_v59 = vpop.f32.mrf.mxu0 }
 0x11f   :  { %v776_v56 = vpop.f32.mrf.mxu3  ;;  %v713_v58 = vadd.f32 %v712_v55, %v649_v54  ;;  %v651_v60 = vpop.f32.mrf.mxu1  ;;  %v588_v0 = vadd.f32 %v1645_v10, %v587_v59 }
 0x121   :  { %v777_v61 = vadd.f32 %v776_v56, %v713_v58  ;;  %v652_v4 = vadd.f32 %v651_v60, %v588_v0 }
 0x123   :  { %v809_v63 = vmax.f32 %v777_v61, 0.0 }
 0x125   :  { %v1282_v1 = vpack.c.bf16 %v809_v63, %v808_v62 }
 0x126   :  { %v715_v2 = vpop.f32.mrf.mxu2  ;;  %v589_v5 = vpop.f32.mrf.mxu0 }
 0x127   :  { %v779_v3 = vpop.f32.mrf.mxu3  ;;  %1305 = vst [vmem:[%s1753_s3 + $0x38] sm:$0xff] %v1282_v1   ;;  %v653_v6 = vpop.f32.mrf.mxu1  ;;  %v590_v7 = vadd.f32 %v1645_v10, %v589_v5  ;;  %v716_v8 = vadd.f32 %v715_v2, %v652_v4 }
 0x129   :  { %v654_v9 = vadd.f32 %v653_v6, %v590_v7  ;;  %v780_v13 = vadd.f32 %v779_v3, %v716_v8 }
 0x12b   :  { %v810_v18 = vmax.f32 %v780_v13, 0.0 }
 0x12e   :  { %v717_v11 = vpop.f32.mrf.mxu2  ;;  %v592_v15 = vpop.f32.mrf.mxu0 }
 0x12f   :  { %v781_v12 = vpop.f32.mrf.mxu3  ;;  %v718_v14 = vadd.f32 %v717_v11, %v654_v9  ;;  %v656_v16 = vpop.f32.mrf.mxu1  ;;  %v593_v20 = vadd.f32 %v1645_v10, %v592_v15 }
 0x131   :  { %v782_v17 = vadd.f32 %v781_v12, %v718_v14  ;;  %v657_v24 = vadd.f32 %v656_v16, %v593_v20 }
 0x133   :  { %v811_v19 = vmax.f32 %v782_v17, 0.0 }
 0x135   :  { %v1287_v21 = vpack.c.bf16 %v811_v19, %v810_v18 }
 0x136   :  { %v720_v22 = vpop.f32.mrf.mxu2  ;;  %v594_v25 = vpop.f32.mrf.mxu0 }
 0x137   :  { %v784_v23 = vpop.f32.mrf.mxu3  ;;  %1306 = vst [vmem:[%s1753_s3 + $0x40] sm:$0xff] %v1287_v21   ;;  %v658_v26 = vpop.f32.mrf.mxu1  ;;  %v595_v27 = vadd.f32 %v1645_v10, %v594_v25  ;;  %v721_v28 = vadd.f32 %v720_v22, %v657_v24 }
 0x139   :  { %v659_v29 = vadd.f32 %v658_v26, %v595_v27  ;;  %v785_v32 = vadd.f32 %v784_v23, %v721_v28 }
 0x13b   :  { %v812_v37 = vmax.f32 %v785_v32, 0.0 }
 0x13e   :  { %v722_v30 = vpop.f32.mrf.mxu2  ;;  %v597_v34 = vpop.f32.mrf.mxu0 }
 0x13f   :  { %v786_v31 = vpop.f32.mrf.mxu3  ;;  %v723_v33 = vadd.f32 %v722_v30, %v659_v29  ;;  %v661_v36 = vpop.f32.mrf.mxu1  ;;  %v598_v39 = vadd.f32 %v1645_v10, %v597_v34 }
 0x141   :  { %v787_v35 = vadd.f32 %v786_v31, %v723_v33  ;;  %v662_v43 = vadd.f32 %v661_v36, %v598_v39 }
 0x143   :  { %v813_v38 = vmax.f32 %v787_v35, 0.0 }
 0x145   :  { %v1292_v40 = vpack.c.bf16 %v813_v38, %v812_v37 }
 0x146   :  { %v725_v41 = vpop.f32.mrf.mxu2  ;;  %v599_v44 = vpop.f32.mrf.mxu0 }
 0x147   :  { %v789_v42 = vpop.f32.mrf.mxu3  ;;  %1307 = vst [vmem:[%s1753_s3 + $0x48] sm:$0xff] %v1292_v40   ;;  %v600_v45 = vadd.f32 %v1645_v10, %v599_v44  ;;  %v726_v46 = vadd.f32 %v725_v41, %v662_v43  ;;  %v663_v47 = vpop.f32.mrf.mxu1 }
 0x149   :  { %v664_v48 = vadd.f32 %v663_v47, %v600_v45  ;;  %v790_v50 = vadd.f32 %v789_v42, %v726_v46 }
 0x14b   :  { %v814_v54 = vmax.f32 %v790_v50, 0.0 }
 0x14e   :  { %v727_v49 = vpop.f32.mrf.mxu2 }
 0x14f   :  { %v728_v51 = vadd.f32 %v727_v49, %v664_v48  ;;  %v791_v52 = vpop.f32.mrf.mxu3 }
 0x151   :  { %v792_v53 = vadd.f32 %v791_v52, %v728_v51 }
 0x153   :  { %v815_v55 = vmax.f32 %v792_v53, 0.0 }
 0x155   :  { %v1297_v56 = vpack.c.bf16 %v815_v55, %v814_v54 }
 0x157   :  { %1308 = vst [vmem:[%s1753_s3 + $0x50] sm:$0xff] %v1297_v56  }

// kernel: qnetwork_forward.6
= control target key start
LH: loop header
LB: loop body
LE: loop exit
PB: predicated region body
PF: predicated region fallthrough
CT: control target
= control target key end

     0   :  { %vm524_vm0 = vcmask 523264   ;;  %s1655_s1 = inlined_call_operand.vmem [shape: bf16[576,128], index: 1, kind: input, shape index: {}]   ;;  %s1656_s2 = inlined_call_operand.vmem [shape: f32[1,128], index: 2, kind: input, shape index: {}]   ;;  %s1657_s0 = inlined_call_operand.vmem [shape: bf16[112,576], index: 0, kind: input, shape index: {}]   ;;  %s1658_s3 = inlined_call_operand.vmem [shape: bf16[112,128], index: 3, kind: output, shape index: {}]  }
   0x1   :  { %v1145_v0 = vld [vmem:[%s1655_s1 + $0x38] sm:$0xff]  ;;  %v1144_v1 = vld [vmem:[%s1655_s1 + $0x30] sm:$0xff]  ;;  %v1143_v2 = vld [vmem:[%s1655_s1 + $0x28] sm:$0xff] }
   0x2   :  { %1215 = vmatpush.bf16.msra.mxu1 %v1145_v0  ;;  %1216 = vmatpush.bf16.msra.mxu2 %v1145_v0  ;;  %v1142_v3 = vld [vmem:[%s1655_s1 + $0x20] sm:$0xff]  ;;  %v1141_v4 = vld [vmem:[%s1655_s1 + $0x18] sm:$0xff]  ;;  %v1140_v5 = vld [vmem:[%s1655_s1 + $0x10] sm:$0xff] }
   0x3   :  { %1217 = vmatpush.bf16.msra.mxu3 %v1145_v0  ;;  %546 = vmatpush.bf16.msra.mxu0 %v1145_v0  ;;  %v1139_v6 = vld [vmem:[%s1655_s1 + $0x8] sm:$0xff]  ;;  %v1138_v7 = vld [vmem:[%s1655_s1] sm:$0xff]  ;;  %v854_v8 = vld [vmem:[%s1657_s0 + $0x50] sm:$0xf] }
   0x4   :  { %v1115_v9 = vld [vmem:[%s1657_s0 + $0x60] sm:$0xf0]  ;;  %v894_v10 = vld [vmem:[%s1657_s0 + $0xa0] sm:$0xf]  ;;  %v1125_v11 = vld [vmem:[%s1657_s0 + $0xb0] sm:$0xf0] }
   0x5   :  { %v1169_v12 = vld [vmem:[%s1655_s1 + $0xf8] sm:$0xff]  ;;  %v814_v13 = vld [vmem:[%s1657_s0] sm:$0xf]  ;;  %v1105_v14 = vld [vmem:[%s1657_s0 + $0x10] sm:$0xf0]  ;;  %v855_v18 = vor.u32 %v1115_v9, %v854_v8  ;;  %v895_v19 = vor.u32 %v1125_v11, %v894_v10 }
   0x6   :  { %1218 = vmatpush.bf16.msra.mxu1 %v1144_v1  ;;  %1219 = vmatpush.bf16.msra.mxu2 %v1144_v1  ;;  %v1161_v15 = vld [vmem:[%s1655_s1 + $0xb8] sm:$0xff]  ;;  %v934_v16 = vld [vmem:[%s1657_s0 + $0xf0] sm:$0xf]  ;;  %v1135_v17 = vld [vmem:[%s1657_s0 + $0x100] sm:$0xf0]  ;;  %v815_v21 = vor.u32 %v1105_v14, %v814_v13 }
   0x7   :  { %1220 = vmatpush.bf16.msra.mxu3 %v1144_v1  ;;  %547 = vmatpush.bf16.msra.mxu0 %v1144_v1  ;;  %v1153_v20 = vld [vmem:[%s1655_s1 + $0x78] sm:$0xff]  ;;  %v935_v22 = vor.u32 %v1135_v17, %v934_v16  ;;  %v1168_v24 = vld [vmem:[%s1655_s1 + $0xf0] sm:$0xff]  ;;  %v1167_v28 = vld [vmem:[%s1655_s1 + $0xe8] sm:$0xff] }
   0x8   :  { %v1173_v23 = vld [vmem:[%s1655_s1 + $0x118] sm:$0xff]  ;;  %v1160_v25 = vld [vmem:[%s1655_s1 + $0xb0] sm:$0xff]  ;;  %v1159_v29 = vld [vmem:[%s1655_s1 + $0xa8] sm:$0xff] }
   0x9   :  { %v1152_v26 = vld [vmem:[%s1655_s1 + $0x70] sm:$0xff]  ;;  %v1151_v30 = vld [vmem:[%s1655_s1 + $0x68] sm:$0xff]  ;;  %v1166_v32 = vld [vmem:[%s1655_s1 + $0xe0] sm:$0xff] }
   0xa   :  { %1221 = vmatpush.bf16.msra.mxu1 %v1143_v2  ;;  %1222 = vmatpush.bf16.msra.mxu2 %v1143_v2  ;;  %v1172_v27 = vld [vmem:[%s1655_s1 + $0x110] sm:$0xff]  ;;  %v1171_v31 = vld [vmem:[%s1655_s1 + $0x108] sm:$0xff]  ;;  %v1158_v33 = vld [vmem:[%s1655_s1 + $0xa0] sm:$0xff] }
   0xb   :  { %1223 = vmatpush.bf16.msra.mxu3 %v1143_v2  ;;  %548 = vmatpush.bf16.msra.mxu0 %v1143_v2  ;;  %v1150_v34 = vld [vmem:[%s1655_s1 + $0x60] sm:$0xff]  ;;  %v874_v35 = vld [vmem:[%s1657_s0 + $0x78] sm:$0xf]  ;;  %v1120_v36 = vld [vmem:[%s1657_s0 + $0x88] sm:$0xf0] }
   0xc   :  { %v914_v37 = vld [vmem:[%s1657_s0 + $0xc8] sm:$0xf]  ;;  %v1130_v38 = vld [vmem:[%s1657_s0 + $0xd8] sm:$0xf0]  ;;  %v1170_v41 = vld [vmem:[%s1655_s1 + $0x100] sm:$0xff]  ;;  %v875_v44 = vor.u32 %v1120_v36, %v874_v35 }
   0xd   :  { %v834_v39 = vld [vmem:[%s1657_s0 + $0x28] sm:$0xf]  ;;  %v1110_v40 = vld [vmem:[%s1657_s0 + $0x38] sm:$0xf0]  ;;  %v915_v45 = vor.u32 %v1130_v38, %v914_v37  ;;  %v1164_v48 = vld [vmem:[%s1655_s1 + $0xd0] sm:$0xff] }
   0xe   :  { %1224 = vmatpush.bf16.msra.mxu1 %v1142_v3  ;;  %1225 = vmatpush.bf16.msra.mxu2 %v1142_v3  ;;  %v1165_v42 = vld [vmem:[%s1655_s1 + $0xd8] sm:$0xff]  ;;  %v835_v47 = vor.u32 %v1110_v40, %v834_v39  ;;  %v1156_v49 = vld [vmem:[%s1655_s1 + $0x90] sm:$0xff]  ;;  %v1163_v51 = vld [vmem:[%s1655_s1 + $0xc8] sm:$0xff] }
   0xf   :  { %1226 = vmatpush.bf16.msra.mxu3 %v1142_v3  ;;  %549 = vmatpush.bf16.msra.mxu0 %v1142_v3  ;;  %v1157_v43 = vld [vmem:[%s1655_s1 + $0x98] sm:$0xff]  ;;  %v1148_v50 = vld [vmem:[%s1655_s1 + $0x50] sm:$0xff]  ;;  %v1155_v52 = vld [vmem:[%s1655_s1 + $0x88] sm:$0xff] }
  0x10   :  { %v1149_v46 = vld [vmem:[%s1655_s1 + $0x58] sm:$0xff]  ;;  %v1147_v53 = vld [vmem:[%s1655_s1 + $0x48] sm:$0xff]  ;;  %v1162_v54 = vld [vmem:[%s1655_s1 + $0xc0] sm:$0xff] }
  0x11   :  { %v1154_v55 = vld [vmem:[%s1655_s1 + $0x80] sm:$0xff]  ;;  %v1104_v56 = vld [vmem:[%s1657_s0 + $0xc] sm:$0xf]  ;;  %v816_v60 = vld [vmem:[%s1657_s0 + $0x14] sm:$0xf0] }
  0x12   :  { %1227 = vmatpush.bf16.msra.mxu1 %v1141_v4  ;;  %1228 = vmatpush.bf16.msra.mxu2 %v1141_v4  ;;  %v824_v57 = vld [vmem:[%s1657_s0 + $0x1c] sm:$0xf0]  ;;  %v1103_v59 = vld [vmem:[%s1657_s0 + $0x4] sm:$0xf]  ;;  %v822_v61 = vld [vmem:[%s1657_s0 + $0x8] sm:$0xf] }
  0x13   :  { %1229 = vmatpush.bf16.msra.mxu3 %v1141_v4  ;;  %550 = vmatpush.bf16.msra.mxu0 %v1141_v4  ;;  %v1146_v58 = vld [vmem:[%s1655_s1 + $0x40] sm:$0xff]  ;;  %v1106_v62 = vld [vmem:[%s1657_s0 + $0x18] sm:$0xf0]  ;;  %v827_v63 = vor.u32 %v1104_v56, %v824_v57  ;;  %v830_v0 = vld [vmem:[%s1657_s0 + $0x10] sm:$0xf]  ;;  %v819_v2 = vor.u32 %v1103_v59, %v816_v60 }
  0x14   :  { %v1107_v1 = vld [vmem:[%s1657_s0 + $0x20] sm:$0xf0]  ;;  %v823_v3 = vor.u32 %v1106_v62, %v822_v61  ;;  %v836_v8 = vld [vmem:[%s1657_s0 + $0x3c] sm:$0xf0]  ;;  %v842_v9 = vld [vmem:[%s1657_s0 + $0x30] sm:$0xf] }
  0x15   :  { %v831_v4 = vor.u32 %v1107_v1, %v830_v0  ;;  %v1111_v10 = vld [vmem:[%s1657_s0 + $0x40] sm:$0xf0]  ;;  %v1112_v13 = vld [vmem:[%s1657_s0 + $0x48] sm:$0xf0]  ;;  %v1114_v17 = vld [vmem:[%s1657_s0 + $0x5c] sm:$0xf] }
  0x16   :  { %1230 = vmatpush.bf16.msra.mxu1 %v1140_v5  ;;  %1231 = vmatpush.bf16.msra.mxu2 %v1140_v5  ;;  %v890_v36 = vld [vmem:[%s1657_s0 + $0x88] sm:$0xf]  ;;  %v1122_v37 = vld [vmem:[%s1657_s0 + $0x98] sm:$0xf0]  ;;  %v916_v56 = vld [vmem:[%s1657_s0 + $0xdc] sm:$0xf0] }
  0x17   :  { %1232 = vmatpush.bf16.msra.mxu3 %v1140_v5  ;;  %551 = vmatpush.bf16.msra.mxu0 %v1140_v5  ;;  %v1109_v5 = vld [vmem:[%s1657_s0 + $0x34] sm:$0xf]  ;;  %v891_v40 = vor.u32 %v1122_v37, %v890_v36  ;;  %v922_v57 = vld [vmem:[%s1657_s0 + $0xd0] sm:$0xf]  ;;  %v930_v60 = vld [vmem:[%s1657_s0 + $0xd8] sm:$0xf] }
  0x18   :  { %v1132_v61 = vld [vmem:[%s1657_s0 + $0xe8] sm:$0xf0]  ;;  %v1134_v1 = vld [vmem:[%s1657_s0 + $0xfc] sm:$0xf] }
  0x19   :  { %v931_v0 = vor.u32 %v1132_v61, %v930_v60 }
  0x1a   :  { %1233 = vmatpush.bf16.msra.mxu1 %v1139_v6  ;;  %1234 = vmatpush.bf16.msra.mxu2 %v1139_v6 }
  0x1b   :  { %1235 = vmatpush.bf16.msra.mxu3 %v1139_v6  ;;  %552 = vmatpush.bf16.msra.mxu0 %v1139_v6  ;;  %v844_v6 = vld [vmem:[%s1657_s0 + $0x44] sm:$0xf0] }
  0x1c   :  { %v847_v11 = vor.u32 %v1109_v5, %v844_v6  ;;  %v942_v5 = vld [vmem:[%s1657_s0 + $0xf8] sm:$0xf]  ;;  %v1136_v6 = vld [vmem:[%s1657_s0 + $0x108] sm:$0xf0] }
  0x1e   :  { %1236 = vmatpush.bf16.msra.mxu1 %v1138_v7  ;;  %1237 = vmatpush.bf16.msra.mxu2 %v1138_v7 }
  0x1f   :  { %1238 = vmatpush.bf16.msra.mxu3 %v1138_v7  ;;  %553 = vmatpush.bf16.msra.mxu0 %v1138_v7  ;;  %v1108_v7 = vld [vmem:[%s1657_s0 + $0x2c] sm:$0xf] }
  0x20   :  { %v839_v14 = vor.u32 %v1108_v7, %v836_v8  ;;  %v950_v8 = vld [vmem:[%s1657_s0 + $0x100] sm:$0xf] }
  0x21   :  { %564 = vmatmul.bf16.vlgmr.msra.gmra.mxu1 %v855_v18  ;;  %574 = vmatmul.bf16.vlgmr.msra.gmra.mxu2 %v895_v19  ;;  %v864_v18 = vld [vmem:[%s1657_s0 + $0x6c] sm:$0xf0]  ;;  %v1113_v19 = vld [vmem:[%s1657_s0 + $0x54] sm:$0xf] }
  0x22   :  { %634 = vmatpush.bf16.msrb.mxu2 %v1161_v15  ;;  %590 = vmatpush.bf16.msrb.mxu1 %v1153_v20  ;;  %v843_v15 = vor.u32 %v1111_v10, %v842_v9  ;;  %v856_v20 = vld [vmem:[%s1657_s0 + $0x64] sm:$0xf0]  ;;  %v1137_v9 = vld [vmem:[%s1657_s0 + $0x110] sm:$0xf0] }
  0x23   :  { %678 = vmatpush.bf16.msrb.mxu3 %v1169_v12  ;;  %554 = vmatmul.bf16.vlgmr.msra.gmra.mxu0 %v815_v21  ;;  %v850_v12 = vld [vmem:[%s1657_s0 + $0x38] sm:$0xf] }
  0x24   :  { %584 = vmatmul.bf16.vlgmr.msra.gmra.mxu3 %v935_v22  ;;  %726 = vmatpush.bf16.msrb.mxu0 %v1173_v23  ;;  %v851_v16 = vor.u32 %v1112_v13, %v850_v12  ;;  %v862_v21 = vld [vmem:[%s1657_s0 + $0x58] sm:$0xf]  ;;  %v1116_v22 = vld [vmem:[%s1657_s0 + $0x68] sm:$0xf0]  ;;  %v867_v23 = vor.u32 %v1114_v17, %v864_v18  ;;  %v951_v13 = vor.u32 %v1137_v9, %v950_v8 }
  0x26   :  { %635 = vmatpush.bf16.msrb.mxu2 %v1160_v25  ;;  %591 = vmatpush.bf16.msrb.mxu1 %v1152_v26  ;;  %v1117_v25 = vld [vmem:[%s1657_s0 + $0x70] sm:$0xf0]  ;;  %v859_v26 = vor.u32 %v1113_v19, %v856_v20 }
  0x27   :  { %679 = vmatpush.bf16.msrb.mxu3 %v1168_v24  ;;  %v870_v24 = vld [vmem:[%s1657_s0 + $0x60] sm:$0xf] }
  0x28   :  { %727 = vmatpush.bf16.msrb.mxu0 %v1172_v27  ;;  %v863_v27 = vor.u32 %v1116_v22, %v862_v21 }
  0x2a   :  { %636 = vmatpush.bf16.msrb.mxu2 %v1159_v29  ;;  %592 = vmatpush.bf16.msrb.mxu1 %v1151_v30  ;;  %v1119_v29 = vld [vmem:[%s1657_s0 + $0x84] sm:$0xf]  ;;  %v884_v30 = vld [vmem:[%s1657_s0 + $0x94] sm:$0xf0] }
  0x2b   :  { %680 = vmatpush.bf16.msrb.mxu3 %v1167_v28  ;;  %v871_v28 = vor.u32 %v1117_v25, %v870_v24  ;;  %v887_v35 = vor.u32 %v1119_v29, %v884_v30 }
  0x2c   :  { %728 = vmatpush.bf16.msrb.mxu0 %v1171_v31  ;;  %v1118_v31 = vld [vmem:[%s1657_s0 + $0x7c] sm:$0xf] }
  0x2e   :  { %637 = vmatpush.bf16.msrb.mxu2 %v1158_v33  ;;  %593 = vmatpush.bf16.msrb.mxu1 %v1150_v34  ;;  %v882_v33 = vld [vmem:[%s1657_s0 + $0x80] sm:$0xf]  ;;  %v1121_v34 = vld [vmem:[%s1657_s0 + $0x90] sm:$0xf0] }
  0x2f   :  { %681 = vmatpush.bf16.msrb.mxu3 %v1166_v32  ;;  %v876_v32 = vld [vmem:[%s1657_s0 + $0x8c] sm:$0xf0]  ;;  %v883_v39 = vor.u32 %v1121_v34, %v882_v33 }
  0x30   :  { %729 = vmatpush.bf16.msrb.mxu0 %v1170_v41  ;;  %v879_v38 = vor.u32 %v1118_v31, %v876_v32  ;;  %v1124_v41 = vld [vmem:[%s1657_s0 + $0xac] sm:$0xf] }
  0x31   :  { %569 = vmatmul.bf16.gmra.mxu1 %v875_v44  ;;  %579 = vmatmul.bf16.gmra.mxu2 %v915_v45  ;;  %v896_v44 = vld [vmem:[%s1657_s0 + $0xb4] sm:$0xf0]  ;;  %v902_v45 = vld [vmem:[%s1657_s0 + $0xa8] sm:$0xf] }
  0x32   :  { %638 = vmatpush.bf16.msrb.mxu2 %v1157_v43  ;;  %594 = vmatpush.bf16.msrb.mxu1 %v1149_v46  ;;  %v1123_v43 = vld [vmem:[%s1657_s0 + $0xa4] sm:$0xf]  ;;  %v1126_v46 = vld [vmem:[%s1657_s0 + $0xb8] sm:$0xf0] }
  0x33   :  { %682 = vmatpush.bf16.msrb.mxu3 %v1165_v42  ;;  %559 = vmatmul.bf16.gmra.mxu0 %v835_v47  ;;  %v904_v42 = vld [vmem:[%s1657_s0 + $0xbc] sm:$0xf0] }
  0x34   :  { %v907_v47 = vor.u32 %v1124_v41, %v904_v42 }
  0x36   :  { %639 = vmatpush.bf16.msrb.mxu2 %v1156_v49  ;;  %595 = vmatpush.bf16.msrb.mxu1 %v1148_v50  ;;  %v1127_v49 = vld [vmem:[%s1657_s0 + $0xc0] sm:$0xf0]  ;;  %v899_v50 = vor.u32 %v1123_v43, %v896_v44 }
  0x37   :  { %683 = vmatpush.bf16.msrb.mxu3 %v1164_v48  ;;  %v910_v48 = vld [vmem:[%s1657_s0 + $0xb0] sm:$0xf] }
  0x3a   :  { %640 = vmatpush.bf16.msrb.mxu2 %v1155_v52  ;;  %596 = vmatpush.bf16.msrb.mxu1 %v1147_v53  ;;  %v911_v52 = vor.u32 %v1127_v49, %v910_v48  ;;  %v1129_v53 = vld [vmem:[%s1657_s0 + $0xd4] sm:$0xf] }
  0x3b   :  { %684 = vmatpush.bf16.msrb.mxu3 %v1163_v51  ;;  %v903_v51 = vor.u32 %v1126_v46, %v902_v45 }
  0x3e   :  { %641 = vmatpush.bf16.msrb.mxu2 %v1154_v55  ;;  %597 = vmatpush.bf16.msrb.mxu1 %v1146_v58  ;;  %v1128_v55 = vld [vmem:[%s1657_s0 + $0xcc] sm:$0xf]  ;;  %v1131_v58 = vld [vmem:[%s1657_s0 + $0xe0] sm:$0xf0] }
  0x3f   :  { %685 = vmatpush.bf16.msrb.mxu3 %v1162_v54  ;;  %v924_v54 = vld [vmem:[%s1657_s0 + $0xe4] sm:$0xf0]  ;;  %v919_v62 = vor.u32 %v1128_v55, %v916_v56 }
  0x40   :  { %v927_v59 = vor.u32 %v1129_v53, %v924_v54 }
  0x41   :  { %598 = vmatmul.bf16.vlgmr.msrb.gmra.mxu1 %v819_v2  ;;  %642 = vmatmul.bf16.vlgmr.msrb.gmra.mxu2 %v823_v3  ;;  %v944_v2 = vld [vmem:[%s1657_s0 + $0x10c] sm:$0xf0]  ;;  %v1133_v3 = vld [vmem:[%s1657_s0 + $0xf4] sm:$0xf] }
  0x42   :  { %686 = vmatmul.bf16.vlgmr.msrb.gmra.mxu3 %v827_v63  ;;  %v923_v63 = vor.u32 %v1131_v58, %v922_v57  ;;  %v947_v7 = vor.u32 %v1134_v1, %v944_v2 }
  0x43   :  { %1096 = vmatmul.msk.bf16.vlgmr.msrb.gmra.mxu0 %vm524_vm0, %v831_v4  ;;  %v936_v4 = vld [vmem:[%s1657_s0 + $0x104] sm:$0xf0] }
  0x44   :  { %v939_v10 = vor.u32 %v1133_v3, %v936_v4 }
  0x51   :  { %603 = vmatmul.bf16.gmra.mxu1 %v839_v14  ;;  %647 = vmatmul.bf16.gmra.mxu2 %v843_v15  ;;  %v1590_v15 = vld [vmem:[%s1656_s2] ss:$0 sm:$0xff] }
  0x52   :  { %691 = vmatmul.bf16.gmra.mxu3 %v847_v11  ;;  %v943_v11 = vor.u32 %v1136_v6, %v942_v5 }
  0x53   :  { %1097 = vmatmul.msk.bf16.gmra.mxu0 %vm524_vm0, %v851_v16 }
  0x61   :  { %608 = vmatmul.bf16.gmra.mxu1 %v859_v26  ;;  %652 = vmatmul.bf16.gmra.mxu2 %v863_v27 }
  0x62   :  { %696 = vmatmul.bf16.gmra.mxu3 %v867_v23 }
  0x63   :  { %1098 = vmatmul.msk.bf16.gmra.mxu0 %vm524_vm0, %v871_v28 }
  0x71   :  { %613 = vmatmul.bf16.gmra.mxu1 %v879_v38  ;;  %657 = vmatmul.bf16.gmra.mxu2 %v883_v39 }
  0x72   :  { %701 = vmatmul.bf16.gmra.mxu3 %v887_v35 }
  0x73   :  { %1099 = vmatmul.msk.bf16.gmra.mxu0 %vm524_vm0, %v891_v40 }
  0x81   :  { %618 = vmatmul.bf16.gmra.mxu1 %v899_v50  ;;  %662 = vmatmul.bf16.gmra.mxu2 %v903_v51 }
  0x82   :  { %706 = vmatmul.bf16.gmra.mxu3 %v907_v47 }
  0x83   :  { %1100 = vmatmul.msk.bf16.gmra.mxu0 %vm524_vm0, %v911_v52 }
  0x91   :  { %623 = vmatmul.bf16.gmra.mxu1 %v919_v62  ;;  %667 = vmatmul.bf16.gmra.mxu2 %v923_v63 }
  0x92   :  { %711 = vmatmul.bf16.gmra.mxu3 %v927_v59 }
  0x93   :  { %1101 = vmatmul.msk.bf16.gmra.mxu0 %vm524_vm0, %v931_v0 }
  0x9e   :  { %v1584_v12 = vpop.f32.mrf.mxu1 }
  0xa0   :  { %v555_v14 = vpop.f32.mrf.mxu0 }
  0xa1   :  { %628 = vmatmul.bf16.gmra.mxu1 %v939_v10  ;;  %672 = vmatmul.bf16.gmra.mxu2 %v943_v11  ;;  %v556_v37 = vadd.f32 %v1590_v15, %v555_v14 }
  0xa2   :  { %716 = vmatmul.bf16.gmra.mxu3 %v947_v7 }
  0xa3   :  { %1102 = vmatmul.msk.bf16.gmra.mxu0 %vm524_vm0, %v951_v13  ;;  %v566_v13 = vadd.f32 %v1590_v15, %v1584_v12 }
  0xa4   :  { %v575_v16 = vpop.f32.mrf.mxu2 }
  0xa5   :  { %v1593_v17 = vadd.f32 %v1590_v15, %v575_v16 }
  0xa6   :  { %v1595_v18 = vpop.f32.mrf.mxu1 }
  0xa7   :  { %v585_v19 = vpop.f32.mrf.mxu3 }
  0xa8   :  { %v557_v20 = vpop.f32.mrf.mxu0  ;;  %v1598_v21 = vadd.f32 %v1590_v15, %v585_v19 }
  0xa9   :  { %v558_v43 = vadd.f32 %v1590_v15, %v557_v20 }
  0xac   :  { %v577_v22 = vpop.f32.mrf.mxu2 }
  0xad   :  { %v1601_v23 = vadd.f32 %v1590_v15, %v577_v22 }
  0xae   :  { %v1603_v24 = vpop.f32.mrf.mxu1 }
  0xaf   :  { %v587_v25 = vpop.f32.mrf.mxu3 }
  0xb0   :  { %v560_v26 = vpop.f32.mrf.mxu0  ;;  %v1606_v27 = vadd.f32 %v1590_v15, %v587_v25 }
  0xb1   :  { %v561_v55 = vadd.f32 %v1590_v15, %v560_v26 }
  0xb4   :  { %v580_v28 = vpop.f32.mrf.mxu2 }
  0xb5   :  { %v1609_v29 = vadd.f32 %v1590_v15, %v580_v28 }
  0xb6   :  { %v1611_v30 = vpop.f32.mrf.mxu1 }
  0xb8   :  { %v562_v31 = vpop.f32.mrf.mxu0 }
  0xb9   :  { %v563_v0 = vadd.f32 %v1590_v15, %v562_v31  ;;  %v568_v31 = vadd.f32 %v1590_v15, %v1595_v18 }
  0xbc   :  { %v582_v32 = vpop.f32.mrf.mxu2 }
  0xbd   :  { %v1614_v33 = vadd.f32 %v1590_v15, %v582_v32 }
  0xbe   :  { %v599_v34 = vpop.f32.mrf.mxu1 }
  0xbf   :  { %v600_v39 = vadd.f32 %v599_v34, %v556_v37 }
  0xc0   :  { %v731_v35 = vpop.f32.mrf.mxu0 }
  0xc4   :  { %v643_v38 = vpop.f32.mrf.mxu2 }
  0xc5   :  { %v687_v36 = vpop.f32.mrf.mxu3  ;;  %v644_v41 = vadd.f32 %v643_v38, %v600_v39 }
  0xc6   :  { %v601_v40 = vpop.f32.mrf.mxu1 }
  0xc7   :  { %v688_v45 = vadd.f32 %v687_v36, %v644_v41  ;;  %v602_v46 = vadd.f32 %v601_v40, %v558_v43  ;;  %v571_v43 = vadd.f32 %v1590_v15, %v1603_v24 }
  0xc8   :  { %v733_v42 = vpop.f32.mrf.mxu0 }
  0xc9   :  { %v732_v50 = vadd.f32 %v731_v35, %v688_v45 }
  0xcb   :  { %v766_v56 = vmax.f32 %v732_v50, 0.0 }
  0xcc   :  { %v645_v47 = vpop.f32.mrf.mxu2 }
  0xcd   :  { %v689_v44 = vpop.f32.mrf.mxu3  ;;  %v646_v48 = vadd.f32 %v645_v47, %v602_v46 }
  0xce   :  { %v604_v49 = vpop.f32.mrf.mxu1 }
  0xcf   :  { %v690_v51 = vadd.f32 %v689_v44, %v646_v48  ;;  %v605_v60 = vadd.f32 %v604_v49, %v561_v55 }
  0xd0   :  { %v736_v52 = vpop.f32.mrf.mxu0 }
  0xd1   :  { %v734_v53 = vadd.f32 %v733_v42, %v690_v51  ;;  %v573_v51 = vadd.f32 %v1590_v15, %v1611_v30 }
  0xd3   :  { %v767_v57 = vmax.f32 %v734_v53, 0.0 }
  0xd4   :  { %v648_v58 = vpop.f32.mrf.mxu2 }
  0xd5   :  { %v692_v54 = vpop.f32.mrf.mxu3  ;;  %v1177_v59 = vpack.c.bf16 %v767_v57, %v766_v56  ;;  %v649_v62 = vadd.f32 %v648_v58, %v605_v60 }
  0xd6   :  { %v606_v61 = vpop.f32.mrf.mxu1 }
  0xd7   :  { %1178 = vst [vmem:[%s1658_s3] sm:$0xff] %v1177_v59   ;;  %v693_v2 = vadd.f32 %v692_v54, %v649_v62  ;;  %v607_v3 = vadd.f32 %v606_v61, %v563_v0 }
  0xd8   :  { %v738_v63 = vpop.f32.mrf.mxu0 }
  0xd9   :  { %v737_v7 = vadd.f32 %v736_v52, %v693_v2 }
  0xdb   :  { %v768_v14 = vmax.f32 %v737_v7, 0.0 }
  0xdc   :  { %v650_v4 = vpop.f32.mrf.mxu2 }
  0xdd   :  { %v694_v1 = vpop.f32.mrf.mxu3  ;;  %v651_v5 = vadd.f32 %v650_v4, %v607_v3 }
  0xde   :  { %v609_v6 = vpop.f32.mrf.mxu1 }
  0xdf   :  { %v695_v8 = vadd.f32 %v694_v1, %v651_v5  ;;  %v610_v22 = vadd.f32 %v609_v6, %v566_v13 }
  0xe0   :  { %v741_v9 = vpop.f32.mrf.mxu0 }
  0xe1   :  { %v739_v10 = vadd.f32 %v738_v63, %v695_v8 }
  0xe3   :  { %v769_v16 = vmax.f32 %v739_v10, 0.0 }
  0xe4   :  { %v653_v19 = vpop.f32.mrf.mxu2 }
  0xe5   :  { %v697_v11 = vpop.f32.mrf.mxu3  ;;  %v1182_v20 = vpack.c.bf16 %v769_v16, %v768_v14  ;;  %v654_v26 = vadd.f32 %v653_v19, %v610_v22 }
  0xe6   :  { %v611_v25 = vpop.f32.mrf.mxu1 }
  0xe7   :  { %1209 = vst [vmem:[%s1658_s3 + $0x8] sm:$0xff] %v1182_v20   ;;  %v698_v34 = vadd.f32 %v697_v11, %v654_v26  ;;  %v612_v35 = vadd.f32 %v611_v25, %v568_v31 }
  0xe8   :  { %v743_v28 = vpop.f32.mrf.mxu0 }
  0xe9   :  { %v742_v38 = vadd.f32 %v741_v9, %v698_v34 }
  0xeb   :  { %v770_v44 = vmax.f32 %v742_v38, 0.0 }
  0xec   :  { %v655_v36 = vpop.f32.mrf.mxu2 }
  0xed   :  { %v699_v32 = vpop.f32.mrf.mxu3  ;;  %v656_v12 = vadd.f32 %v655_v36, %v612_v35 }
  0xee   :  { %v614_v37 = vpop.f32.mrf.mxu1 }
  0xef   :  { %v700_v39 = vadd.f32 %v699_v32, %v656_v12  ;;  %v615_v48 = vadd.f32 %v614_v37, %v571_v43 }
  0xf0   :  { %v746_v40 = vpop.f32.mrf.mxu0 }
  0xf1   :  { %v744_v41 = vadd.f32 %v743_v28, %v700_v39 }
  0xf3   :  { %v771_v45 = vmax.f32 %v744_v41, 0.0 }
  0xf4   :  { %v658_v46 = vpop.f32.mrf.mxu2 }
  0xf5   :  { %v702_v42 = vpop.f32.mrf.mxu3  ;;  %v1187_v47 = vpack.c.bf16 %v771_v45, %v770_v44  ;;  %v659_v49 = vadd.f32 %v658_v46, %v615_v48 }
  0xf6   :  { %v616_v18 = vpop.f32.mrf.mxu1 }
  0xf7   :  { %1210 = vst [vmem:[%s1658_s3 + $0x10] sm:$0xff] %v1187_v47   ;;  %v703_v53 = vadd.f32 %v702_v42, %v659_v49  ;;  %v617_v54 = vadd.f32 %v616_v18, %v573_v51 }
  0xf8   :  { %v748_v50 = vpop.f32.mrf.mxu0 }
  0xf9   :  { %v747_v57 = vadd.f32 %v746_v40, %v703_v53 }
  0xfb   :  { %v772_v62 = vmax.f32 %v747_v57, 0.0 }
  0xfc   :  { %v660_v55 = vpop.f32.mrf.mxu2 }
  0xfd   :  { %v704_v52 = vpop.f32.mrf.mxu3  ;;  %v661_v24 = vadd.f32 %v660_v55, %v617_v54 }
  0xfe   :  { %v619_v56 = vpop.f32.mrf.mxu1 }
  0xff   :  { %v705_v58 = vadd.f32 %v704_v52, %v661_v24  ;;  %v620_v2 = vadd.f32 %v619_v56, %v1593_v17 }
 0x100   :  { %v751_v59 = vpop.f32.mrf.mxu0 }
 0x101   :  { %v749_v60 = vadd.f32 %v748_v50, %v705_v58 }
 0x103   :  { %v773_v63 = vmax.f32 %v749_v60, 0.0 }
 0x104   :  { %v663_v0 = vpop.f32.mrf.mxu2 }
 0x105   :  { %v707_v61 = vpop.f32.mrf.mxu3  ;;  %v1192_v1 = vpack.c.bf16 %v773_v63, %v772_v62  ;;  %v664_v15 = vadd.f32 %v663_v0, %v620_v2 }
 0x106   :  { %v621_v3 = vpop.f32.mrf.mxu1 }
 0x107   :  { %1211 = vst [vmem:[%s1658_s3 + $0x18] sm:$0xff] %v1192_v1   ;;  %v708_v5 = vadd.f32 %v707_v61, %v664_v15  ;;  %v622_v6 = vadd.f32 %v621_v3, %v1601_v23 }
 0x108   :  { %v753_v30 = vpop.f32.mrf.mxu0 }
 0x109   :  { %v752_v10 = vadd.f32 %v751_v59, %v708_v5 }
 0x10b   :  { %v774_v17 = vmax.f32 %v752_v10, 0.0 }
 0x10c   :  { %v665_v7 = vpop.f32.mrf.mxu2 }
 0x10d   :  { %v709_v4 = vpop.f32.mrf.mxu3  ;;  %v666_v8 = vadd.f32 %v665_v7, %v622_v6 }
 0x10e   :  { %v624_v9 = vpop.f32.mrf.mxu1 }
 0x10f   :  { %v710_v11 = vadd.f32 %v709_v4, %v666_v8  ;;  %v625_v25 = vadd.f32 %v624_v9, %v1609_v29 }
 0x110   :  { %v756_v14 = vpop.f32.mrf.mxu0 }
 0x111   :  { %v754_v13 = vadd.f32 %v753_v30, %v710_v11 }
 0x113   :  { %v775_v19 = vmax.f32 %v754_v13, 0.0 }
 0x114   :  { %v668_v20 = vpop.f32.mrf.mxu2 }
 0x115   :  { %v712_v16 = vpop.f32.mrf.mxu3  ;;  %v1197_v22 = vpack.c.bf16 %v775_v19, %v774_v17  ;;  %v669_v23 = vadd.f32 %v668_v20, %v625_v25 }
 0x116   :  { %v626_v26 = vpop.f32.mrf.mxu1 }
 0x117   :  { %1212 = vst [vmem:[%s1658_s3 + $0x20] sm:$0xff] %v1197_v22   ;;  %v713_v31 = vadd.f32 %v712_v16, %v669_v23  ;;  %v627_v32 = vadd.f32 %v626_v26, %v1614_v33 }
 0x118   :  { %v758_v34 = vpop.f32.mrf.mxu0 }
 0x119   :  { %v757_v37 = vadd.f32 %v756_v14, %v713_v31 }
 0x11b   :  { %v776_v40 = vmax.f32 %v757_v37, 0.0 }
 0x11c   :  { %v670_v35 = vpop.f32.mrf.mxu2 }
 0x11d   :  { %v714_v28 = vpop.f32.mrf.mxu3  ;;  %v671_v36 = vadd.f32 %v670_v35, %v627_v32 }
 0x11e   :  { %v629_v12 = vpop.f32.mrf.mxu1 }
 0x11f   :  { %v715_v38 = vadd.f32 %v714_v28, %v671_v36  ;;  %v630_v44 = vadd.f32 %v629_v12, %v1598_v21 }
 0x120   :  { %v761_v45 = vpop.f32.mrf.mxu0 }
 0x121   :  { %v759_v39 = vadd.f32 %v758_v34, %v715_v38 }
 0x123   :  { %v777_v41 = vmax.f32 %v759_v39, 0.0 }
 0x124   :  { %v673_v42 = vpop.f32.mrf.mxu2 }
 0x125   :  { %v717_v29 = vpop.f32.mrf.mxu3  ;;  %v1202_v43 = vpack.c.bf16 %v777_v41, %v776_v40  ;;  %v674_v33 = vadd.f32 %v673_v42, %v630_v44 }
 0x126   :  { %v631_v46 = vpop.f32.mrf.mxu1 }
 0x127   :  { %1213 = vst [vmem:[%s1658_s3 + $0x28] sm:$0xff] %v1202_v43   ;;  %v718_v47 = vadd.f32 %v717_v29, %v674_v33  ;;  %v632_v48 = vadd.f32 %v631_v46, %v1606_v27 }
 0x128   :  { %v763_v53 = vpop.f32.mrf.mxu0 }
 0x129   :  { %v762_v51 = vadd.f32 %v761_v45, %v718_v47 }
 0x12b   :  { %v778_v55 = vmax.f32 %v762_v51, 0.0 }
 0x12c   :  { %v675_v18 = vpop.f32.mrf.mxu2 }
 0x12d   :  { %v676_v49 = vadd.f32 %v675_v18, %v632_v48  ;;  %v719_v50 = vpop.f32.mrf.mxu3 }
 0x12f   :  { %v720_v52 = vadd.f32 %v719_v50, %v676_v49 }
 0x131   :  { %v764_v54 = vadd.f32 %v763_v53, %v720_v52 }
 0x133   :  { %v779_v24 = vmax.f32 %v764_v54, 0.0 }
 0x135   :  { %v1207_v21 = vpack.c.bf16 %v779_v24, %v778_v55 }
 0x137   :  { %1214 = vst [vmem:[%s1658_s3 + $0x30] sm:$0xff] %v1207_v21  }

// kernel: qnetwork_forward.7
= control target key start
LH: loop header
LB: loop body
LE: loop exit
PB: predicated region body
PF: predicated region fallthrough
CT: control target
= control target key end

     0   :  { %10 = vsyncpa [#allocation4], 0  ;;  %s3775_s18 = smov 0   ;;  %s4412_s0 = inlined_call_operand.vmem [shape: bf16[2,6272], index: 0, kind: input, shape index: {}]   ;;  %s4413_s1 = inlined_call_operand.vmem [shape: bf16[6272,512], index: 1, kind: input, shape index: {}]   ;;  %s4414_s2 = inlined_call_operand.vmem [shape: f32[1,512], index: 2, kind: input, shape index: {}]   ;;  %s4415_s3 = inlined_call_operand.vmem [shape: bf16[512,128], index: 3, kind: input, shape index: {}]   ;;  %s4416_s4 = inlined_call_operand.vmem [shape: f32[1,128], index: 4, kind: input, shape index: {}]   ;;  %s4417_s5 = inlined_call_operand.hbm [shape: f32[2,128], index: 5, kind: output, shape index: {}]  }
   0x1 LB: > { %s3781_s19 = sadd.s32 4294967295, %s3741_s18   ;;  %p2389_p0 = scmp.ge.s32.totalorder %s3741_s18, 1  ;;  %s3741_s18 = sphi %s3775_s18, %s16_s18  }
   0x2   : > { %p195_p1 = scmp.lt.s32.totalorder %s3741_s18, 8 }
   0x4   : > { %p196_p2 = pnand %p2389_p0, %p195_p1 }
   0x5   : > { %s223_s20 = smul.u32 (!%p196_p2), 7, %s3781_s19  ;;  %p2392_p5 = scmp.ne.s32.totalorder (!%p196_p2), %s3781_s19, 0 }
   0x6   : > { %199 = sbr.rel (%p196_p2) target bundleno = 573 (0x23d), region = 40 }
   0x7   : > { %s228_s21 = smul.u32 (!%p196_p2), 112, %s3781_s19  ;;  %p224_p3 = scmp.lt.s32.totalorder (!%p196_p2), %s223_s20, 48 }
   0x9   : > { %p229_p4 = scmp.lt.s32.totalorder (!%p196_p2), %s228_s21, 783 }
   0xb   : > { %s4419_s20 = smov (!%p224_p3, %s223_s20), 48  ;;  %s4421_s21 = smov (!%p229_p4, %s228_s21), 783 }
   0xc   : > { %s226_s24 = scalar_lea.vmem %s4412_s0, %s4419_s20  ;;  %s3422_s25 = sshll.u32 %s4421_s21, 4 }
   0xd   : > { %s3796_s28 = scalar_lea.vmem %s4413_s1, %s3422_s25  ;;  %238 = sbr.rel (%p2392_p5) target bundleno = 20 (0x14), region = 44 }
  0x12   : > { %v3743_v0 = vmov 0.0  }
  0x13   : > { %239 = vst [vmem:[#allocation2] sm:$0xff] %v3743_v0 }
  0x14 PF: > { %v2507_v1 = vld [vmem:[%s3796_s28 + $0xe0] sm:$0xf]  ;;  %v3453_v2 = vld [vmem:[%s3796_s28 + $0xec] sm:$0xf0]  ;;  %vm1973_vm0 = vcmask 1041408   ;;  %vm1975_vm1 = vcmask 1045508  }
  0x15   : > { %v2635_v3 = vld [vmem:[%s3796_s28 + $0x1e0] sm:$0xf]  ;;  %v2508_v4 = vor.u32 %v3453_v2, %v2507_v1  ;;  %v3485_v5 = vld [vmem:[%s3796_s28 + $0x1ec] sm:$0xf0]  ;;  %vm1977_vm2 = vcmask 1043456   ;;  %p3289_p6 = scmp.ne.s32.totalorder %s3781_s19, 6 }
  0x16   : > { %v2763_v6 = vld [vmem:[%s3796_s28 + $0x2e0] sm:$0xf]  ;;  %v3517_v7 = vld [vmem:[%s3796_s28 + $0x2ec] sm:$0xf0]  ;;  %v2636_v8 = vor.u32 %v3485_v5, %v2635_v3 }
  0x17   : > { %v2764_v9 = vor.u32 %v3517_v7, %v2763_v6  ;;  %v2891_v10 = vld [vmem:[%s3796_s28 + $0x3e0] sm:$0xf]  ;;  %v3549_v11 = vld [vmem:[%s3796_s28 + $0x3ec] sm:$0xf0]  ;;  %1602 = vmatpush.bf16.msra.mxu0 %v2508_v4 }
  0x18   : > { %v2491_v12 = vld [vmem:[%s3796_s28 + $0xc0] sm:$0xf]  ;;  %v2892_v13 = vor.u32 %v3549_v11, %v2891_v10  ;;  %v3449_v14 = vld [vmem:[%s3796_s28 + $0xcc] sm:$0xf0]  ;;  %1615 = vmatpush.bf16.msra.mxu1 %v2636_v8 }
  0x19   : > { %v2619_v15 = vld [vmem:[%s3796_s28 + $0x1c0] sm:$0xf]  ;;  %v3481_v16 = vld [vmem:[%s3796_s28 + $0x1cc] sm:$0xf0]  ;;  %1628 = vmatpush.bf16.msra.mxu2 %v2764_v9  ;;  %v2492_v17 = vor.u32 %v3449_v14, %v2491_v12 }
  0x1a   : > { %v2620_v18 = vor.u32 %v3481_v16, %v2619_v15  ;;  %v2747_v19 = vld [vmem:[%s3796_s28 + $0x2c0] sm:$0xf]  ;;  %v3513_v20 = vld [vmem:[%s3796_s28 + $0x2cc] sm:$0xf0]  ;;  %1641 = vmatpush.bf16.msra.mxu3 %v2892_v13 }
  0x1b   : > { %v2875_v21 = vld [vmem:[%s3796_s28 + $0x3c0] sm:$0xf]  ;;  %v2748_v22 = vor.u32 %v3513_v20, %v2747_v19  ;;  %v3545_v23 = vld [vmem:[%s3796_s28 + $0x3cc] sm:$0xf0]  ;;  %1603 = vmatpush.bf16.msra.mxu0 %v2492_v17 }
  0x1c   : > { %v2475_v24 = vld [vmem:[%s3796_s28 + $0xa0] sm:$0xf]  ;;  %v3445_v25 = vld [vmem:[%s3796_s28 + $0xac] sm:$0xf0]  ;;  %v2876_v26 = vor.u32 %v3545_v23, %v2875_v21  ;;  %1616 = vmatpush.bf16.msra.mxu1 %v2620_v18 }
  0x1d   : > { %v2603_v27 = vld [vmem:[%s3796_s28 + $0x1a0] sm:$0xf]  ;;  %v3477_v28 = vld [vmem:[%s3796_s28 + $0x1ac] sm:$0xf0]  ;;  %v2476_v30 = vor.u32 %v3445_v25, %v2475_v24  ;;  %1629 = vmatpush.bf16.msra.mxu2 %v2748_v22 }
  0x1e   : > { %v2731_v29 = vld [vmem:[%s3796_s28 + $0x2a0] sm:$0xf]  ;;  %v3509_v31 = vld [vmem:[%s3796_s28 + $0x2ac] sm:$0xf0]  ;;  %v2604_v34 = vor.u32 %v3477_v28, %v2603_v27  ;;  %1642 = vmatpush.bf16.msra.mxu3 %v2876_v26 }
  0x1f   : > { %v2859_v32 = vld [vmem:[%s3796_s28 + $0x3a0] sm:$0xf]  ;;  %v3541_v33 = vld [vmem:[%s3796_s28 + $0x3ac] sm:$0xf0]  ;;  %v2732_v35 = vor.u32 %v3509_v31, %v2731_v29  ;;  %1604 = vmatpush.bf16.msra.mxu0 %v2476_v30 }
  0x20   : > { %v2459_v36 = vld [vmem:[%s3796_s28 + $0x80] sm:$0xf]  ;;  %v3441_v37 = vld [vmem:[%s3796_s28 + $0x8c] sm:$0xf0]  ;;  %v2860_v39 = vor.u32 %v3541_v33, %v2859_v32  ;;  %1617 = vmatpush.bf16.msra.mxu1 %v2604_v34 }
  0x21   : > { %v2587_v38 = vld [vmem:[%s3796_s28 + $0x180] sm:$0xf]  ;;  %v3473_v40 = vld [vmem:[%s3796_s28 + $0x18c] sm:$0xf0]  ;;  %v2460_v45 = vor.u32 %v3441_v37, %v2459_v36  ;;  %1630 = vmatpush.bf16.msra.mxu2 %v2732_v35 }
  0x22   : > { %v2715_v41 = vld [vmem:[%s3796_s28 + $0x280] sm:$0xf]  ;;  %v3505_v42 = vld [vmem:[%s3796_s28 + $0x28c] sm:$0xf0]  ;;  %v2588_v46 = vor.u32 %v3473_v40, %v2587_v38  ;;  %1643 = vmatpush.bf16.msra.mxu3 %v2860_v39  ;;  %v3451_v38 = vld [vmem:[%s3796_s28 + $0xe4] sm:$0xf] }
  0x23   : > { %v2843_v43 = vld [vmem:[%s3796_s28 + $0x380] sm:$0xf]  ;;  %v3537_v44 = vld [vmem:[%s3796_s28 + $0x38c] sm:$0xf0]  ;;  %v2716_v47 = vor.u32 %v3505_v42, %v2715_v41  ;;  %1605 = vmatpush.bf16.msra.mxu0 %v2460_v45  ;;  %v2509_v39 = vld [vmem:[%s3796_s28 + $0xf0] sm:$0xf0] }
  0x24   : > { %v2443_v48 = vld [vmem:[%s3796_s28 + $0x60] sm:$0xf]  ;;  %v3437_v49 = vld [vmem:[%s3796_s28 + $0x6c] sm:$0xf0]  ;;  %v2844_v51 = vor.u32 %v3537_v44, %v2843_v43  ;;  %1618 = vmatpush.bf16.msra.mxu1 %v2588_v46 }
  0x25   : > { %v2571_v50 = vld [vmem:[%s3796_s28 + $0x160] sm:$0xf]  ;;  %v3469_v52 = vld [vmem:[%s3796_s28 + $0x16c] sm:$0xf0]  ;;  %v2444_v57 = vor.u32 %v3437_v49, %v2443_v48  ;;  %1631 = vmatpush.bf16.msra.mxu2 %v2716_v47  ;;  %v2512_v47 = vor.u32 %v3451_v38, %v2509_v39 }
  0x26   : > { %v2699_v53 = vld [vmem:[%s3796_s28 + $0x260] sm:$0xf]  ;;  %v3501_v54 = vld [vmem:[%s3796_s28 + $0x26c] sm:$0xf0]  ;;  %v2572_v58 = vor.u32 %v3469_v52, %v2571_v50  ;;  %1644 = vmatpush.bf16.msra.mxu3 %v2844_v51  ;;  %v3447_v51 = vld [vmem:[%s3796_s28 + $0xc4] sm:$0xf] }
  0x27   : > { %v2827_v55 = vld [vmem:[%s3796_s28 + $0x360] sm:$0xf]  ;;  %v3533_v56 = vld [vmem:[%s3796_s28 + $0x36c] sm:$0xf0]  ;;  %v2700_v59 = vor.u32 %v3501_v54, %v2699_v53  ;;  %1606 = vmatpush.bf16.msra.mxu0 %v2444_v57  ;;  %v2493_v52 = vld [vmem:[%s3796_s28 + $0xd0] sm:$0xf0] }
  0x28   : > { %v2427_v60 = vld [vmem:[%s3796_s28 + $0x40] sm:$0xf]  ;;  %v3433_v61 = vld [vmem:[%s3796_s28 + $0x4c] sm:$0xf0]  ;;  %v2828_v63 = vor.u32 %v3533_v56, %v2827_v55  ;;  %1619 = vmatpush.bf16.msra.mxu1 %v2572_v58 }
  0x29   : > { %v2555_v62 = vld [vmem:[%s3796_s28 + $0x140] sm:$0xf]  ;;  %v3465_v0 = vld [vmem:[%s3796_s28 + $0x14c] sm:$0xf0]  ;;  %v2428_v5 = vor.u32 %v3433_v61, %v2427_v60  ;;  %1632 = vmatpush.bf16.msra.mxu2 %v2700_v59  ;;  %v2496_v61 = vor.u32 %v3447_v51, %v2493_v52  ;;  %v3427_v52 = vld [vmem:[%s3796_s28 + $0x24] sm:$0xf] }
  0x2a   : > { %v2683_v1 = vld [vmem:[%s3796_s28 + $0x240] sm:$0xf]  ;;  %v3497_v2 = vld [vmem:[%s3796_s28 + $0x24c] sm:$0xf0]  ;;  %v2556_v6 = vor.u32 %v3465_v0, %v2555_v62  ;;  %1645 = vmatpush.bf16.msra.mxu3 %v2828_v63  ;;  %v3443_v0 = vld [vmem:[%s3796_s28 + $0xa4] sm:$0xf] }
  0x2b   : > { %v2811_v3 = vld [vmem:[%s3796_s28 + $0x340] sm:$0xf]  ;;  %v3529_v4 = vld [vmem:[%s3796_s28 + $0x34c] sm:$0xf0]  ;;  %v2684_v7 = vor.u32 %v3497_v2, %v2683_v1  ;;  %1607 = vmatpush.bf16.msra.mxu0 %v2428_v5  ;;  %v2477_v1 = vld [vmem:[%s3796_s28 + $0xb0] sm:$0xf0] }
  0x2c   : > { %v2411_v8 = vld [vmem:[%s3796_s28 + $0x20] sm:$0xf]  ;;  %v3429_v9 = vld [vmem:[%s3796_s28 + $0x2c] sm:$0xf0]  ;;  %v2812_v11 = vor.u32 %v3529_v4, %v2811_v3  ;;  %1620 = vmatpush.bf16.msra.mxu1 %v2556_v6 }
  0x2d   : > { %v2539_v10 = vld [vmem:[%s3796_s28 + $0x120] sm:$0xf]  ;;  %v3461_v12 = vld [vmem:[%s3796_s28 + $0x12c] sm:$0xf0]  ;;  %v2412_v17 = vor.u32 %v3429_v9, %v2411_v8  ;;  %1633 = vmatpush.bf16.msra.mxu2 %v2684_v7  ;;  %v2480_v8 = vor.u32 %v3443_v0, %v2477_v1  ;;  %v3423_v0 = vld [vmem:[%s3796_s28 + $0x4] sm:$0xf] }
  0x2e   : > { %v2667_v13 = vld [vmem:[%s3796_s28 + $0x220] sm:$0xf]  ;;  %v3493_v14 = vld [vmem:[%s3796_s28 + $0x22c] sm:$0xf0]  ;;  %v2540_v20 = vor.u32 %v3461_v12, %v2539_v10  ;;  %1646 = vmatpush.bf16.msra.mxu3 %v2812_v11  ;;  %v3439_v12 = vld [vmem:[%s3796_s28 + $0x84] sm:$0xf] }
  0x2f   : > { %v2795_v15 = vld [vmem:[%s3796_s28 + $0x320] sm:$0xf]  ;;  %v3525_v16 = vld [vmem:[%s3796_s28 + $0x32c] sm:$0xf0]  ;;  %v2668_v21 = vor.u32 %v3493_v14, %v2667_v13  ;;  %1608 = vmatpush.bf16.msra.mxu0 %v2412_v17  ;;  %v2461_v13 = vld [vmem:[%s3796_s28 + $0x90] sm:$0xf0] }
  0x30   : > { %v2395_v18 = vld [vmem:[%s3796_s28] sm:$0xf]  ;;  %v3425_v19 = vld [vmem:[%s3796_s28 + $0xc] sm:$0xf0]  ;;  %v2796_v25 = vor.u32 %v3525_v16, %v2795_v15  ;;  %1621 = vmatpush.bf16.msra.mxu1 %v2540_v20  ;;  %v2397_v1 = vld [vmem:[%s3796_s28 + $0x10] sm:$0xf0] }
  0x31   : > { %v2523_v22 = vld [vmem:[%s3796_s28 + $0x100] sm:$0xf]  ;;  %v3457_v23 = vld [vmem:[%s3796_s28 + $0x10c] sm:$0xf0]  ;;  %v2396_v32 = vor.u32 %v3425_v19, %v2395_v18  ;;  %1634 = vmatpush.bf16.msra.mxu2 %v2668_v21 }
  0x32   : > { %v2651_v24 = vld [vmem:[%s3796_s28 + $0x200] sm:$0xf]  ;;  %v3489_v26 = vld [vmem:[%s3796_s28 + $0x20c] sm:$0xf0]  ;;  %v2524_v36 = vor.u32 %v3457_v23, %v2523_v22  ;;  %1647 = vmatpush.bf16.msra.mxu3 %v2796_v25 }
  0x33   : > { %v2779_v27 = vld [vmem:[%s3796_s28 + $0x300] sm:$0xf]  ;;  %v3521_v28 = vld [vmem:[%s3796_s28 + $0x30c] sm:$0xf0]  ;;  %v2652_v37 = vor.u32 %v3489_v26, %v2651_v24  ;;  %1609 = vmatpush.bf16.msra.mxu0 %v2396_v32  ;;  %v2464_v24 = vor.u32 %v3439_v12, %v2461_v13  ;;  %v3021_v12 = vld [vmem:[%s3796_s28 + $0x4f0] sm:$0xf0]  ;;  %v2400_v13 = vor.u32 %v3423_v0, %v2397_v1 }
  0x34   : > { %v3019_v29 = vld [vmem:[%s3796_s28 + $0x4e0] sm:$0xf]  ;;  %v3581_v30 = vld [vmem:[%s3796_s28 + $0x4ec] sm:$0xf0]  ;;  %v2780_v40 = vor.u32 %v3521_v28, %v2779_v27  ;;  %1622 = vmatpush.bf16.msra.mxu1 %v2524_v36  ;;  %v3435_v28 = vld [vmem:[%s3796_s28 + $0x64] sm:$0xf] }
  0x35   : > { %v3147_v31 = vld [vmem:[%s3796_s28 + $0x5e0] sm:$0xf]  ;;  %v3613_v33 = vld [vmem:[%s3796_s28 + $0x5ec] sm:$0xf0]  ;;  %v3020_v41 = vor.u32 %v3581_v30, %v3019_v29  ;;  %1635 = vmatpush.bf16.msra.mxu2 %v2652_v37  ;;  %v2445_v29 = vld [vmem:[%s3796_s28 + $0x70] sm:$0xf0] }
  0x36   : > { %v3275_v34 = vld [vmem:[%s3796_s28 + $0x6e0] sm:$0xf]  ;;  %v3645_v35 = vld [vmem:[%s3796_s28 + $0x6ec] sm:$0xf0]  ;;  %v3148_v42 = vor.u32 %v3613_v33, %v3147_v31  ;;  %1648 = vmatpush.bf16.msra.mxu3 %v2780_v40  ;;  %v2448_v36 = vor.u32 %v3435_v28, %v2445_v29  ;;  %v3431_v40 = vld [vmem:[%s3796_s28 + $0x44] sm:$0xf] }
  0x37   : > { %v3276_v43 = vor.u32 %v3645_v35, %v3275_v34  ;;  %v3003_v44 = vld [vmem:[%s3796_s28 + $0x4c0] sm:$0xf]  ;;  %v3577_v45 = vld [vmem:[%s3796_s28 + $0x4cc] sm:$0xf0]  ;;  %1654 = vmatpush.bf16.msrb.mxu0 %v3020_v41  ;;  %v2429_v41 = vld [vmem:[%s3796_s28 + $0x50] sm:$0xf0] }
  0x38   : > { %v3131_v46 = vld [vmem:[%s3796_s28 + $0x5c0] sm:$0xf]  ;;  %v3609_v48 = vld [vmem:[%s3796_s28 + $0x5cc] sm:$0xf0]  ;;  %v3004_v53 = vor.u32 %v3577_v45, %v3003_v44  ;;  %1667 = vmatpush.bf16.msrb.mxu1 %v3148_v42  ;;  %v3575_v28 = vld [vmem:[%s3796_s28 + $0x4c4] sm:$0xf] }
  0x39   : > { %v3259_v49 = vld [vmem:[%s3796_s28 + $0x6c0] sm:$0xf]  ;;  %v3641_v50 = vld [vmem:[%s3796_s28 + $0x6cc] sm:$0xf0]  ;;  %1680 = vmatpush.bf16.msrb.mxu2 %v3276_v43  ;;  %v3132_v56 = vor.u32 %v3609_v48, %v3131_v46  ;;  %v2432_v48 = vor.u32 %v3431_v40, %v2429_v41  ;;  %v3005_v29 = vld [vmem:[%s3796_s28 + $0x4d0] sm:$0xf0] }
  0x3a   : > { %v2987_v54 = vld [vmem:[%s3796_s28 + $0x4a0] sm:$0xf]  ;;  %v3573_v55 = vld [vmem:[%s3796_s28 + $0x4ac] sm:$0xf0]  ;;  %v3260_v57 = vor.u32 %v3641_v50, %v3259_v49  ;;  %1693 = vmatpush.bf16.msrb.mxu3 %v2512_v47  ;;  %v2733_v40 = vld [vmem:[%s3796_s28 + $0x2b0] sm:$0xf0] }
  0x3b   : > { %v3115_v58 = vld [vmem:[%s3796_s28 + $0x5a0] sm:$0xf]  ;;  %v3605_v59 = vld [vmem:[%s3796_s28 + $0x5ac] sm:$0xf0]  ;;  %1655 = vmatpush.bf16.msrb.mxu0 %v3004_v53  ;;  %v2988_v2 = vor.u32 %v3573_v55, %v2987_v54  ;;  %v2413_v53 = vld [vmem:[%s3796_s28 + $0x30] sm:$0xf0] }
  0x3c   : > { %v241_v60 = vld [vmem:[%s226_s24] sm:$0x7f]  ;;  %v3637_v63 = vld [vmem:[%s3796_s28 + $0x6ac] sm:$0xf0]  ;;  %1668 = vmatpush.bf16.msrb.mxu1 %v3132_v56  ;;  %v3116_v3 = vor.u32 %v3605_v59, %v3115_v58  ;;  %v2701_v0 = vld [vmem:[%s3796_s28 + $0x270] sm:$0xf0] }
  0x3d   : > { %v3243_v62 = vld [vmem:[%s3796_s28 + $0x6a0] sm:$0xf]  ;;  %467 = vst [vmem:[#allocation1] ss:$9 sm:$0xff] %v241_v60  ;;  %1681 = vmatpush.bf16.msrb.mxu2 %v3260_v57  ;;  %v3569_v6 = vld [vmem:[%s3796_s28 + $0x48c] sm:$0xf0] }
  0x3e   : > { %v3244_v4 = vor.u32 %v3637_v63, %v3243_v62  ;;  %v2971_v5 = vld [vmem:[%s3796_s28 + $0x480] sm:$0xf]  ;;  %1694 = vmatpush.bf16.msrb.mxu3 %v2496_v61  ;;  %v3601_v9 = vld [vmem:[%s3796_s28 + $0x58c] sm:$0xf0]  ;;  %v2416_v62 = vor.u32 %v3427_v52, %v2413_v53  ;;  %v3539_v41 = vld [vmem:[%s3796_s28 + $0x3a4] sm:$0xf] }
  0x3f   : > { %v3099_v7 = vld [vmem:[%s3796_s28 + $0x580] sm:$0xf]  ;;  %v3633_v11 = vld [vmem:[%s3796_s28 + $0x68c] sm:$0xf0]  ;;  %1656 = vmatpush.bf16.msrb.mxu0 %v2988_v2  ;;  %v2972_v15 = vor.u32 %v3569_v6, %v2971_v5  ;;  %v3483_v2 = vld [vmem:[%s3796_s28 + $0x1e4] sm:$0xf] }
  0x40   : > { %v3227_v10 = vld [vmem:[%s3796_s28 + $0x680] sm:$0xf]  ;;  %v3565_v16 = vld [vmem:[%s3796_s28 + $0x46c] sm:$0xf0]  ;;  %1669 = vmatpush.bf16.msrb.mxu1 %v3116_v3  ;;  %v3100_v19 = vor.u32 %v3601_v9, %v3099_v7  ;;  %v2637_v3 = vld [vmem:[%s3796_s28 + $0x1f0] sm:$0xf0] }
  0x41   : > { %v2955_v14 = vld [vmem:[%s3796_s28 + $0x460] sm:$0xf]  ;;  %v3597_v18 = vld [vmem:[%s3796_s28 + $0x56c] sm:$0xf0]  ;;  %1682 = vmatpush.bf16.msrb.mxu2 %v3244_v4  ;;  %v3228_v20 = vor.u32 %v3633_v11, %v3227_v10  ;;  %v3515_v4 = vld [vmem:[%s3796_s28 + $0x2e4] sm:$0xf] }
  0x42   : > { %v3083_v17 = vld [vmem:[%s3796_s28 + $0x560] sm:$0xf]  ;;  %1695 = vmatpush.bf16.msrb.mxu3 %v2480_v8  ;;  %v3629_v26 = vld [vmem:[%s3796_s28 + $0x66c] sm:$0xf0]  ;;  %v2956_v30 = vor.u32 %v3565_v16, %v2955_v14  ;;  %v2765_v6 = vld [vmem:[%s3796_s28 + $0x2f0] sm:$0xf0]  ;;  %v2640_v14 = vor.u32 %v3483_v2, %v2637_v3 }
  0x43   : > { %v3211_v25 = vld [vmem:[%s3796_s28 + $0x660] sm:$0xf]  ;;  %1657 = vmatpush.bf16.msrb.mxu0 %v2972_v15  ;;  %v3084_v31 = vor.u32 %v3597_v18, %v3083_v17  ;;  %v3561_v34 = vld [vmem:[%s3796_s28 + $0x44c] sm:$0xf0]  ;;  %v3547_v7 = vld [vmem:[%s3796_s28 + $0x3e4] sm:$0xf]  ;;  %v2768_v15 = vor.u32 %v3515_v4, %v2765_v6 }
  0x44   : > { %v3904_v21 = vld [vmem:[#allocation1 + $0x12] sm:$0xff]  ;;  %v3906_v22 = vld [vmem:[#allocation1] sm:$0xff]  ;;  %v3908_v23 = vld [vmem:[#allocation1 + $0x9] sm:$0xff]  ;;  %1670 = vmatpush.bf16.msrb.mxu1 %v3100_v19  ;;  %v3212_v32 = vor.u32 %v3629_v26, %v3211_v25 }
  0x45   : > { %1636 = vmatmul.bf16.vlgmr.msra.gmra.mxu2 %v3904_v21  ;;  %v3913_v27 = vld [vmem:[#allocation1 + $0x1b] sm:$0xff]  ;;  %1610 = vmatmul.bf16.vlgmr.msra.gmra.mxu0 %v3906_v22  ;;  %v3593_v37 = vld [vmem:[%s3796_s28 + $0x54c] sm:$0xf0]  ;;  %v2893_v8 = vld [vmem:[%s3796_s28 + $0x3f0] sm:$0xf0] }
  0x46   : > { %1623 = vmatmul.bf16.vlgmr.msra.gmra.mxu1 %v3908_v23  ;;  %1649 = vmatmul.bf16.vlgmr.msra.gmra.mxu3 %v3913_v27  ;;  %v2939_v33 = vld [vmem:[%s3796_s28 + $0x440] sm:$0xf]  ;;  %v3625_v39 = vld [vmem:[%s3796_s28 + $0x64c] sm:$0xf0]  ;;  %v3579_v11 = vld [vmem:[%s3796_s28 + $0x4e4] sm:$0xf]  ;;  %v2896_v16 = vor.u32 %v3547_v7, %v2893_v8 }
  0x47   : > { %1683 = vmatpush.bf16.msrb.mxu2 %v3228_v20  ;;  %v3067_v35 = vld [vmem:[%s3796_s28 + $0x540] sm:$0xf]  ;;  %1696 = vmatpush.bf16.msrb.mxu3 %v2464_v24  ;;  %v2940_v42 = vor.u32 %v3561_v34, %v2939_v33  ;;  %v3557_v46 = vld [vmem:[%s3796_s28 + $0x42c] sm:$0xf0]  ;;  %v3479_v17 = vld [vmem:[%s3796_s28 + $0x1c4] sm:$0xf]  ;;  %v3024_v20 = vor.u32 %v3579_v11, %v3021_v12 }
  0x48   : > { %v3195_v38 = vld [vmem:[%s3796_s28 + $0x640] sm:$0xf]  ;;  %1658 = vmatpush.bf16.msrb.mxu0 %v2956_v30  ;;  %1671 = vmatpush.bf16.msrb.mxu1 %v3084_v31  ;;  %v3068_v43 = vor.u32 %v3593_v37, %v3067_v35  ;;  %v3589_v49 = vld [vmem:[%s3796_s28 + $0x52c] sm:$0xf0]  ;;  %v2621_v18 = vld [vmem:[%s3796_s28 + $0x1d0] sm:$0xf0] }
  0x49   : > { %v3196_v44 = vor.u32 %v3625_v39, %v3195_v38  ;;  %v2923_v45 = vld [vmem:[%s3796_s28 + $0x420] sm:$0xf]  ;;  %v3621_v51 = vld [vmem:[%s3796_s28 + $0x62c] sm:$0xf0]  ;;  %v3511_v19 = vld [vmem:[%s3796_s28 + $0x2c4] sm:$0xf]  ;;  %v2624_v31 = vor.u32 %v3479_v17, %v2621_v18  ;;  %v3008_v39 = vor.u32 %v3575_v28, %v3005_v29 }
  0x4a   : > { %v3051_v47 = vld [vmem:[%s3796_s28 + $0x520] sm:$0xf]  ;;  %v2924_v54 = vor.u32 %v3557_v46, %v2923_v45  ;;  %v3553_v56 = vld [vmem:[%s3796_s28 + $0x40c] sm:$0xf0]  ;;  %v2749_v24 = vld [vmem:[%s3796_s28 + $0x2d0] sm:$0xf0] }
  0x4b   : > { %1684 = vmatpush.bf16.msrb.mxu2 %v3212_v32  ;;  %1697 = vmatpush.bf16.msrb.mxu3 %v2448_v36  ;;  %v3179_v50 = vld [vmem:[%s3796_s28 + $0x620] sm:$0xf]  ;;  %v3052_v57 = vor.u32 %v3589_v49, %v3051_v47  ;;  %v3585_v60 = vld [vmem:[%s3796_s28 + $0x50c] sm:$0xf0]  ;;  %v3543_v25 = vld [vmem:[%s3796_s28 + $0x3c4] sm:$0xf]  ;;  %v2752_v34 = vor.u32 %v3511_v19, %v2749_v24 }
  0x4c   : > { %1659 = vmatpush.bf16.msrb.mxu0 %v2940_v42  ;;  %v2907_v55 = vld [vmem:[%s3796_s28 + $0x400] sm:$0xf]  ;;  %1672 = vmatpush.bf16.msrb.mxu1 %v3068_v43  ;;  %v3180_v58 = vor.u32 %v3621_v51, %v3179_v50  ;;  %v3617_v63 = vld [vmem:[%s3796_s28 + $0x60c] sm:$0xf0]  ;;  %v2877_v26 = vld [vmem:[%s3796_s28 + $0x3d0] sm:$0xf0] }
  0x4d   : > { %v3035_v59 = vld [vmem:[%s3796_s28 + $0x500] sm:$0xf]  ;;  %v2908_v5 = vor.u32 %v3553_v56, %v2907_v55  ;;  %v3960_v30 = vld [vmem:[#allocation1 + $0x36] sm:$0xff]  ;;  %v3962_v32 = vld [vmem:[#allocation1 + $0x24] sm:$0xff]  ;;  %v2880_v35 = vor.u32 %v3543_v25, %v2877_v26 }
  0x4e   : > { %v3163_v61 = vld [vmem:[%s3796_s28 + $0x600] sm:$0xf]  ;;  %v3036_v9 = vor.u32 %v3585_v60, %v3035_v59  ;;  %v3964_v33 = vld [vmem:[#allocation1 + $0x2d] sm:$0xff]  ;;  %v3475_v36 = vld [vmem:[%s3796_s28 + $0x1a4] sm:$0xf] }
  0x4f   : > { %1685 = vmatpush.bf16.msrb.mxu2 %v3196_v44  ;;  %1698 = vmatpush.bf16.msrb.mxu3 %v2432_v48  ;;  %v3164_v10 = vor.u32 %v3617_v63, %v3163_v61  ;;  %v2605_v37 = vld [vmem:[%s3796_s28 + $0x1b0] sm:$0xf0]  ;;  %v3507_v38 = vld [vmem:[%s3796_s28 + $0x2a4] sm:$0xf] }
  0x50   : > { %1660 = vmatpush.bf16.msrb.mxu0 %v2924_v54  ;;  %1673 = vmatpush.bf16.msrb.mxu1 %v3052_v57  ;;  %v2861_v42 = vld [vmem:[%s3796_s28 + $0x3b0] sm:$0xf0]  ;;  %v3571_v43 = vld [vmem:[%s3796_s28 + $0x4a4] sm:$0xf]  ;;  %v2608_v45 = vor.u32 %v3475_v36, %v2605_v37  ;;  %v2736_v46 = vor.u32 %v3507_v38, %v2733_v40 }
  0x51   : > { %v2989_v44 = vld [vmem:[%s3796_s28 + $0x4b0] sm:$0xf0]  ;;  %v2864_v47 = vor.u32 %v3539_v41, %v2861_v42  ;;  %v3471_v48 = vld [vmem:[%s3796_s28 + $0x184] sm:$0xf] }
  0x52   : > { %v2589_v49 = vld [vmem:[%s3796_s28 + $0x190] sm:$0xf0]  ;;  %v3503_v50 = vld [vmem:[%s3796_s28 + $0x284] sm:$0xf]  ;;  %v2992_v51 = vor.u32 %v3571_v43, %v2989_v44 }
  0x53   : > { %1686 = vmatpush.bf16.msrb.mxu2 %v3180_v58  ;;  %1699 = vmatpush.bf16.msrb.mxu3 %v2416_v62  ;;  %v2717_v52 = vld [vmem:[%s3796_s28 + $0x290] sm:$0xf0]  ;;  %v3535_v53 = vld [vmem:[%s3796_s28 + $0x384] sm:$0xf]  ;;  %v2592_v57 = vor.u32 %v3471_v48, %v2589_v49 }
  0x54   : > { %1661 = vmatpush.bf16.msrb.mxu0 %v2908_v5  ;;  %1674 = vmatpush.bf16.msrb.mxu1 %v3036_v9  ;;  %v2845_v54 = vld [vmem:[%s3796_s28 + $0x390] sm:$0xf0]  ;;  %v3567_v55 = vld [vmem:[%s3796_s28 + $0x484] sm:$0xf]  ;;  %v2720_v58 = vor.u32 %v3503_v50, %v2717_v52 }
  0x55   : > { %v2973_v56 = vld [vmem:[%s3796_s28 + $0x490] sm:$0xf0]  ;;  %v2848_v59 = vor.u32 %v3535_v53, %v2845_v54  ;;  %v3467_v60 = vld [vmem:[%s3796_s28 + $0x164] sm:$0xf]  ;;  %v2515_v53 = vld [vmem:[%s3796_s28 + $0xe8] sm:$0xf] }
  0x56   : > { %v2573_v61 = vld [vmem:[%s3796_s28 + $0x170] sm:$0xf0]  ;;  %v3499_v62 = vld [vmem:[%s3796_s28 + $0x264] sm:$0xf]  ;;  %v2976_v63 = vor.u32 %v3567_v55, %v2973_v56  ;;  %v3454_v54 = vld [vmem:[%s3796_s28 + $0xf4] sm:$0xf0] }
  0x57   : > { %1687 = vmatpush.bf16.msrb.mxu2 %v3164_v10  ;;  %1700 = vmatpush.bf16.msrb.mxu3 %v2400_v13  ;;  %v3531_v1 = vld [vmem:[%s3796_s28 + $0x364] sm:$0xf]  ;;  %v2829_v2 = vld [vmem:[%s3796_s28 + $0x370] sm:$0xf0]  ;;  %v2576_v5 = vor.u32 %v3467_v60, %v2573_v61  ;;  %v2704_v6 = vor.u32 %v3499_v62, %v2701_v0  ;;  %v2516_v62 = vor.u32 %v3454_v54, %v2515_v53 }
  0x58   : > { %1706 = vmatpush.bf16.msra.mxu0 %v2640_v14  ;;  %1719 = vmatpush.bf16.msra.mxu1 %v2768_v15  ;;  %v3563_v3 = vld [vmem:[%s3796_s28 + $0x464] sm:$0xf]  ;;  %v2957_v4 = vld [vmem:[%s3796_s28 + $0x470] sm:$0xf0]  ;;  %v2832_v7 = vor.u32 %v3531_v1, %v2829_v2 }
  0x59   : > { %1662 = vmatmul.bf16.vlgmr.msrb.gmra.mxu0 %v3962_v32  ;;  %1675 = vmatmul.bf16.vlgmr.msrb.gmra.mxu1 %v3964_v33  ;;  %v3463_v8 = vld [vmem:[%s3796_s28 + $0x144] sm:$0xf]  ;;  %v2557_v9 = vld [vmem:[%s3796_s28 + $0x150] sm:$0xf0]  ;;  %v2960_v11 = vor.u32 %v3563_v3, %v2957_v4  ;;  %v2499_v4 = vld [vmem:[%s3796_s28 + $0xc8] sm:$0xf] }
  0x5a   : > { %1688 = vmatmul.bf16.vlgmr.msrb.gmra.mxu2 %v3960_v30  ;;  %1701 = vmatmul.bf16.vlgmr.msrb.gmra.mxu3 %v3906_v22  ;;  %v3495_v10 = vld [vmem:[%s3796_s28 + $0x244] sm:$0xf]  ;;  %v2685_v12 = vld [vmem:[%s3796_s28 + $0x250] sm:$0xf0]  ;;  %v2560_v17 = vor.u32 %v3463_v8, %v2557_v9 }
  0x5b   : > { %1732 = vmatpush.bf16.msra.mxu2 %v2896_v16  ;;  %1745 = vmatpush.bf16.msra.mxu3 %v3024_v20  ;;  %v3527_v13 = vld [vmem:[%s3796_s28 + $0x344] sm:$0xf]  ;;  %v2813_v14 = vld [vmem:[%s3796_s28 + $0x350] sm:$0xf0]  ;;  %v2688_v18 = vor.u32 %v3495_v10, %v2685_v12 }
  0x5c   : > { %1707 = vmatpush.bf16.msra.mxu0 %v2624_v31  ;;  %1720 = vmatpush.bf16.msra.mxu1 %v2752_v34  ;;  %v3559_v15 = vld [vmem:[%s3796_s28 + $0x444] sm:$0xf]  ;;  %v2941_v16 = vld [vmem:[%s3796_s28 + $0x450] sm:$0xf0]  ;;  %v2816_v19 = vor.u32 %v3527_v13, %v2813_v14 }
  0x5d   : > { %v3459_v20 = vld [vmem:[%s3796_s28 + $0x124] sm:$0xf]  ;;  %v2541_v24 = vld [vmem:[%s3796_s28 + $0x130] sm:$0xf0]  ;;  %v2944_v26 = vor.u32 %v3559_v15, %v2941_v16  ;;  %v2483_v16 = vld [vmem:[%s3796_s28 + $0xa8] sm:$0xf] }
  0x5e   : > { %v3491_v25 = vld [vmem:[%s3796_s28 + $0x224] sm:$0xf]  ;;  %v2669_v28 = vld [vmem:[%s3796_s28 + $0x230] sm:$0xf0]  ;;  %v2544_v36 = vor.u32 %v3459_v20, %v2541_v24 }
  0x5f   : > { %1733 = vmatpush.bf16.msra.mxu2 %v2880_v35  ;;  %1746 = vmatpush.bf16.msra.mxu3 %v3008_v39  ;;  %v3523_v29 = vld [vmem:[%s3796_s28 + $0x324] sm:$0xf]  ;;  %v2797_v31 = vld [vmem:[%s3796_s28 + $0x330] sm:$0xf0]  ;;  %v2672_v39 = vor.u32 %v3491_v25, %v2669_v28 }
  0x60   : > { %1708 = vmatpush.bf16.msra.mxu0 %v2608_v45  ;;  %1721 = vmatpush.bf16.msra.mxu1 %v2736_v46  ;;  %v3555_v34 = vld [vmem:[%s3796_s28 + $0x424] sm:$0xf]  ;;  %v2925_v35 = vld [vmem:[%s3796_s28 + $0x430] sm:$0xf0]  ;;  %v2800_v40 = vor.u32 %v3523_v29, %v2797_v31 }
  0x61   : > { %v3455_v37 = vld [vmem:[%s3796_s28 + $0x104] sm:$0xf]  ;;  %v2525_v38 = vld [vmem:[%s3796_s28 + $0x110] sm:$0xf0]  ;;  %v2928_v44 = vor.u32 %v3555_v34, %v2925_v35  ;;  %v2467_v35 = vld [vmem:[%s3796_s28 + $0x88] sm:$0xf] }
  0x62   : > { %v3487_v41 = vld [vmem:[%s3796_s28 + $0x204] sm:$0xf]  ;;  %v2653_v42 = vld [vmem:[%s3796_s28 + $0x210] sm:$0xf0] }
  0x63   : > { %1734 = vmatpush.bf16.msra.mxu2 %v2864_v47  ;;  %1747 = vmatpush.bf16.msra.mxu3 %v2992_v51  ;;  %v3519_v43 = vld [vmem:[%s3796_s28 + $0x304] sm:$0xf]  ;;  %v2781_v45 = vld [vmem:[%s3796_s28 + $0x310] sm:$0xf0]  ;;  %v2528_v51 = vor.u32 %v3455_v37, %v2525_v38  ;;  %v2656_v55 = vor.u32 %v3487_v41, %v2653_v42  ;;  %v2595_v37 = vld [vmem:[%s3796_s28 + $0x188] sm:$0xf] }
  0x64   : > { %1709 = vmatpush.bf16.msra.mxu0 %v2592_v57  ;;  %1722 = vmatpush.bf16.msra.mxu1 %v2720_v58  ;;  %v3551_v46 = vld [vmem:[%s3796_s28 + $0x404] sm:$0xf]  ;;  %v2909_v47 = vld [vmem:[%s3796_s28 + $0x410] sm:$0xf0]  ;;  %v2784_v56 = vor.u32 %v3519_v43, %v2781_v45  ;;  %v2643_v57 = vld [vmem:[%s3796_s28 + $0x1e8] sm:$0xf] }
  0x65   : > { %v3611_v48 = vld [vmem:[%s3796_s28 + $0x5e4] sm:$0xf]  ;;  %v3149_v49 = vld [vmem:[%s3796_s28 + $0x5f0] sm:$0xf0]  ;;  %v3486_v58 = vld [vmem:[%s3796_s28 + $0x1f4] sm:$0xf0] }
  0x66   : > { %v3643_v50 = vld [vmem:[%s3796_s28 + $0x6e4] sm:$0xf]  ;;  %v3277_v52 = vld [vmem:[%s3796_s28 + $0x6f0] sm:$0xf0]  ;;  %v3152_v60 = vor.u32 %v3611_v48, %v3149_v49  ;;  %v2644_v2 = vor.u32 %v3486_v58, %v2643_v57  ;;  %v3474_v38 = vld [vmem:[%s3796_s28 + $0x194] sm:$0xf0] }
  0x67   : > { %1735 = vmatpush.bf16.msra.mxu2 %v2848_v59  ;;  %1748 = vmatpush.bf16.msra.mxu3 %v2976_v63  ;;  %v2912_v59 = vor.u32 %v3551_v46, %v2909_v47  ;;  %v3280_v61 = vor.u32 %v3643_v50, %v3277_v52  ;;  %v3607_v63 = vld [vmem:[%s3796_s28 + $0x5c4] sm:$0xf]  ;;  %v3133_v0 = vld [vmem:[%s3796_s28 + $0x5d0] sm:$0xf0]  ;;  %v2596_v45 = vor.u32 %v3474_v38, %v2595_v37  ;;  %v2451_v47 = vld [vmem:[%s3796_s28 + $0x68] sm:$0xf] }
  0x68   : > { %1710 = vmatpush.bf16.msra.mxu0 %v2576_v5  ;;  %1723 = vmatpush.bf16.msra.mxu1 %v2704_v6  ;;  %v3639_v1 = vld [vmem:[%s3796_s28 + $0x6c4] sm:$0xf]  ;;  %v3261_v3 = vld [vmem:[%s3796_s28 + $0x6d0] sm:$0xf0]  ;;  %v3450_v5 = vld [vmem:[%s3796_s28 + $0xd4] sm:$0xf0]  ;;  %v3136_v8 = vor.u32 %v3607_v63, %v3133_v0 }
  0x69   : > { %v2627_v6 = vld [vmem:[%s3796_s28 + $0x1c8] sm:$0xf]  ;;  %v3264_v9 = vor.u32 %v3639_v1, %v3261_v3  ;;  %v2500_v10 = vor.u32 %v3450_v5, %v2499_v4  ;;  %v3117_v12 = vld [vmem:[%s3796_s28 + $0x5b0] sm:$0xf0]  ;;  %v3635_v13 = vld [vmem:[%s3796_s28 + $0x6a4] sm:$0xf] }
  0x6a   : > { %v3245_v15 = vld [vmem:[%s3796_s28 + $0x6b0] sm:$0xf0]  ;;  %v3631_v29 = vld [vmem:[%s3796_s28 + $0x684] sm:$0xf]  ;;  %v3438_v48 = vld [vmem:[%s3796_s28 + $0x74] sm:$0xf0] }
  0x6b   : > { %1736 = vmatpush.bf16.msra.mxu2 %v2832_v7  ;;  %1749 = vmatpush.bf16.msra.mxu3 %v2960_v11  ;;  %v3482_v7 = vld [vmem:[%s3796_s28 + $0x1d4] sm:$0xf0]  ;;  %v3603_v11 = vld [vmem:[%s3796_s28 + $0x5a4] sm:$0xf]  ;;  %v3248_v24 = vor.u32 %v3635_v13, %v3245_v15  ;;  %v3101_v28 = vld [vmem:[%s3796_s28 + $0x590] sm:$0xf0]  ;;  %v2452_v53 = vor.u32 %v3438_v48, %v2451_v47 }
  0x6c   : > { %1711 = vmatpush.bf16.msra.mxu0 %v2560_v17  ;;  %1724 = vmatpush.bf16.msra.mxu1 %v2688_v18  ;;  %v2628_v14 = vor.u32 %v3482_v7, %v2627_v6  ;;  %v3446_v17 = vld [vmem:[%s3796_s28 + $0xb4] sm:$0xf0]  ;;  %v2611_v18 = vld [vmem:[%s3796_s28 + $0x1a8] sm:$0xf]  ;;  %v3120_v20 = vor.u32 %v3603_v11, %v3117_v12  ;;  %v3229_v34 = vld [vmem:[%s3796_s28 + $0x690] sm:$0xf0] }
  0x6d   : > { %v2484_v25 = vor.u32 %v3446_v17, %v2483_v16  ;;  %v3595_v42 = vld [vmem:[%s3796_s28 + $0x564] sm:$0xf]  ;;  %v3085_v43 = vld [vmem:[%s3796_s28 + $0x570] sm:$0xf0]  ;;  %v2579_v49 = vld [vmem:[%s3796_s28 + $0x168] sm:$0xf] }
  0x6e   : > { %v3213_v46 = vld [vmem:[%s3796_s28 + $0x670] sm:$0xf0]  ;;  %v3470_v50 = vld [vmem:[%s3796_s28 + $0x174] sm:$0xf0]  ;;  %v3591_v54 = vld [vmem:[%s3796_s28 + $0x544] sm:$0xf] }
  0x6f   : > { %1737 = vmatpush.bf16.msra.mxu2 %v2816_v19  ;;  %1750 = vmatpush.bf16.msra.mxu3 %v2944_v26  ;;  %v3478_v19 = vld [vmem:[%s3796_s28 + $0x1b4] sm:$0xf0]  ;;  %v3599_v26 = vld [vmem:[%s3796_s28 + $0x584] sm:$0xf]  ;;  %v2580_v57 = vor.u32 %v3470_v50, %v2579_v49  ;;  %v3197_v58 = vld [vmem:[%s3796_s28 + $0x650] sm:$0xf0] }
  0x70   : > { %1712 = vmatpush.bf16.msra.mxu0 %v2544_v36  ;;  %1725 = vmatpush.bf16.msra.mxu1 %v2672_v39  ;;  %v2612_v31 = vor.u32 %v3478_v19, %v2611_v18  ;;  %v3442_v36 = vld [vmem:[%s3796_s28 + $0x94] sm:$0xf0]  ;;  %v3104_v39 = vor.u32 %v3599_v26, %v3101_v28  ;;  %v3053_v3 = vld [vmem:[%s3796_s28 + $0x530] sm:$0xf0]  ;;  %v3619_v4 = vld [vmem:[%s3796_s28 + $0x624] sm:$0xf] }
  0x71   : > { %v2468_v41 = vor.u32 %v3442_v36, %v2467_v35  ;;  %v3181_v6 = vld [vmem:[%s3796_s28 + $0x630] sm:$0xf0]  ;;  %v2419_v7 = vld [vmem:[%s3796_s28 + $0x28] sm:$0xf]  ;;  %v3583_v12 = vld [vmem:[%s3796_s28 + $0x504] sm:$0xf] }
  0x72   : > { %v3037_v13 = vld [vmem:[%s3796_s28 + $0x510] sm:$0xf0]  ;;  %v3615_v16 = vld [vmem:[%s3796_s28 + $0x604] sm:$0xf]  ;;  %v2403_v18 = vld [vmem:[%s3796_s28 + $0x8] sm:$0xf] }
  0x73   : > { %1738 = vmatpush.bf16.msra.mxu2 %v2800_v40  ;;  %1751 = vmatpush.bf16.msra.mxu3 %v2928_v44  ;;  %v3232_v40 = vor.u32 %v3631_v29, %v3229_v34  ;;  %v3627_v44 = vld [vmem:[%s3796_s28 + $0x664] sm:$0xf]  ;;  %v3165_v17 = vld [vmem:[%s3796_s28 + $0x610] sm:$0xf0]  ;;  %v2771_v26 = vld [vmem:[%s3796_s28 + $0x2e8] sm:$0xf] }
  0x74   : > { %1713 = vmatpush.bf16.msra.mxu0 %v2528_v51  ;;  %1726 = vmatpush.bf16.msra.mxu1 %v2656_v55  ;;  %v3088_v51 = vor.u32 %v3595_v42, %v3085_v43  ;;  %v3216_v52 = vor.u32 %v3627_v44, %v3213_v46  ;;  %v3069_v55 = vld [vmem:[%s3796_s28 + $0x550] sm:$0xf0]  ;;  %v3518_v28 = vld [vmem:[%s3796_s28 + $0x2f4] sm:$0xf0]  ;;  %v2899_v29 = vld [vmem:[%s3796_s28 + $0x3e8] sm:$0xf]  ;;  %v3168_v37 = vor.u32 %v3615_v16, %v3165_v17 }
  0x75   : > { %v3072_v63 = vor.u32 %v3591_v54, %v3069_v55  ;;  %v3550_v34 = vld [vmem:[%s3796_s28 + $0x3f4] sm:$0xf0]  ;;  %v3027_v35 = vld [vmem:[%s3796_s28 + $0x4e8] sm:$0xf]  ;;  %v2772_v42 = vor.u32 %v3518_v28, %v2771_v26 }
  0x76   : > { %v3582_v36 = vld [vmem:[%s3796_s28 + $0x4f4] sm:$0xf0]  ;;  %v2900_v43 = vor.u32 %v3550_v34, %v2899_v29  ;;  %v2883_v47 = vld [vmem:[%s3796_s28 + $0x3c8] sm:$0xf] }
  0x77   : > { %1739 = vmatpush.bf16.msra.mxu2 %v2784_v56  ;;  %1752 = vmatpush.bf16.msra.mxu3 %v2912_v59  ;;  %v3623_v56 = vld [vmem:[%s3796_s28 + $0x644] sm:$0xf]  ;;  %v2435_v59 = vld [vmem:[%s3796_s28 + $0x48] sm:$0xf]  ;;  %v3028_v44 = vor.u32 %v3582_v36, %v3027_v35  ;;  %v3514_v46 = vld [vmem:[%s3796_s28 + $0x2d4] sm:$0xf0] }
  0x78   : > { %1758 = vmatpush.bf16.msrb.mxu0 %v3152_v60  ;;  %1771 = vmatpush.bf16.msrb.mxu1 %v3280_v61  ;;  %v3434_v60 = vld [vmem:[%s3796_s28 + $0x54] sm:$0xf0]  ;;  %v2563_v61 = vld [vmem:[%s3796_s28 + $0x148] sm:$0xf]  ;;  %v3200_v0 = vor.u32 %v3623_v56, %v3197_v58 }
  0x79   : > { %1714 = vmatmul.bf16.vlgmr.msra.gmra.mxu0 %v3908_v23  ;;  %1727 = vmatmul.bf16.vlgmr.msra.gmra.mxu1 %v3904_v21  ;;  %v2436_v1 = vor.u32 %v3434_v60, %v2435_v59  ;;  %v3546_v49 = vld [vmem:[%s3796_s28 + $0x3d4] sm:$0xf0]  ;;  %v3011_v50 = vld [vmem:[%s3796_s28 + $0x4c8] sm:$0xf] }
  0x7a   : > { %1740 = vmatmul.bf16.vlgmr.msra.gmra.mxu2 %v3913_v27  ;;  %1753 = vmatmul.bf16.vlgmr.msra.gmra.mxu3 %v3962_v32  ;;  %v2884_v55 = vor.u32 %v3546_v49, %v2883_v47  ;;  %v3510_v58 = vld [vmem:[%s3796_s28 + $0x2b4] sm:$0xf0]  ;;  %v2867_v59 = vld [vmem:[%s3796_s28 + $0x3a8] sm:$0xf] }
  0x7b   : > { %1784 = vmatpush.bf16.msrb.mxu2 %v2516_v62  ;;  %1797 = vmatpush.bf16.msrb.mxu3 %v2644_v2  ;;  %v3466_v62 = vld [vmem:[%s3796_s28 + $0x154] sm:$0xf0]  ;;  %v3587_v2 = vld [vmem:[%s3796_s28 + $0x524] sm:$0xf]  ;;  %v2835_v16 = vld [vmem:[%s3796_s28 + $0x368] sm:$0xf] }
  0x7c   : > { %1759 = vmatpush.bf16.msrb.mxu0 %v3136_v8  ;;  %1772 = vmatpush.bf16.msrb.mxu1 %v3264_v9  ;;  %v2564_v5 = vor.u32 %v3466_v62, %v2563_v61  ;;  %v3430_v8 = vld [vmem:[%s3796_s28 + $0x34] sm:$0xf0]  ;;  %v2547_v9 = vld [vmem:[%s3796_s28 + $0x128] sm:$0xf]  ;;  %v3056_v11 = vor.u32 %v3587_v2, %v3053_v3 }
  0x7d   : > { %v2420_v15 = vor.u32 %v3430_v8, %v2419_v7  ;;  %v3542_v61 = vld [vmem:[%s3796_s28 + $0x3b4] sm:$0xf0]  ;;  %v2995_v62 = vld [vmem:[%s3796_s28 + $0x4a8] sm:$0xf] }
  0x7e   : > { %v2868_v3 = vor.u32 %v3542_v61, %v2867_v59  ;;  %v3538_v8 = vld [vmem:[%s3796_s28 + $0x394] sm:$0xf0]  ;;  %v2819_v35 = vld [vmem:[%s3796_s28 + $0x348] sm:$0xf] }
  0x7f   : > { %1785 = vmatpush.bf16.msrb.mxu2 %v2500_v10  ;;  %1798 = vmatpush.bf16.msrb.mxu3 %v2628_v14  ;;  %v3462_v10 = vld [vmem:[%s3796_s28 + $0x134] sm:$0xf0]  ;;  %v3184_v14 = vor.u32 %v3619_v4, %v3181_v6  ;;  %v2851_v6 = vld [vmem:[%s3796_s28 + $0x388] sm:$0xf] }
  0x80   : > { %1760 = vmatpush.bf16.msrb.mxu0 %v3120_v20  ;;  %1773 = vmatpush.bf16.msrb.mxu1 %v3248_v24  ;;  %v2548_v19 = vor.u32 %v3462_v10, %v2547_v9  ;;  %v3426_v20 = vld [vmem:[%s3796_s28 + $0x14] sm:$0xf0]  ;;  %v2531_v24 = vld [vmem:[%s3796_s28 + $0x108] sm:$0xf] }
  0x81   : > { %v2404_v38 = vor.u32 %v3426_v20, %v2403_v18  ;;  %v3570_v9 = vld [vmem:[%s3796_s28 + $0x494] sm:$0xf0]  ;;  %v3107_v10 = vld [vmem:[%s3796_s28 + $0x588] sm:$0xf] }
  0x82   : > { %v3534_v18 = vld [vmem:[%s3796_s28 + $0x374] sm:$0xf0]  ;;  %v2803_v47 = vld [vmem:[%s3796_s28 + $0x328] sm:$0xf] }
  0x83   : > { %1786 = vmatpush.bf16.msrb.mxu2 %v2484_v25  ;;  %1799 = vmatpush.bf16.msrb.mxu3 %v2612_v31  ;;  %v3458_v25 = vld [vmem:[%s3796_s28 + $0x114] sm:$0xf0]  ;;  %v3040_v31 = vor.u32 %v3583_v12, %v3037_v13  ;;  %v2852_v12 = vor.u32 %v3538_v8, %v2851_v6  ;;  %v2836_v28 = vor.u32 %v3534_v18, %v2835_v16  ;;  %v2787_v59 = vld [vmem:[%s3796_s28 + $0x308] sm:$0xf]  ;;  %v3484_v6 = vld [vmem:[%s3796_s28 + $0x1ec] sm:$0xf] }
  0x84   : > { %1761 = vmatpush.bf16.msrb.mxu0 %v3104_v39  ;;  %1774 = vmatpush.bf16.msrb.mxu1 %v3232_v40  ;;  %v3155_v39 = vld [vmem:[%s3796_s28 + $0x5e8] sm:$0xf]  ;;  %v3614_v40 = vld [vmem:[%s3796_s28 + $0x5f4] sm:$0xf0]  ;;  %v3448_v16 = vld [vmem:[%s3796_s28 + $0xcc] sm:$0xf] }
  0x85   : > { %v3156_v48 = vor.u32 %v3614_v40, %v3155_v39  ;;  %v3566_v20 = vld [vmem:[%s3796_s28 + $0x474] sm:$0xf0]  ;;  %v3075_v40 = vld [vmem:[%s3796_s28 + $0x548] sm:$0xf]  ;;  %v2501_v18 = vld [vmem:[%s3796_s28 + $0xd8] sm:$0xf0] }
  0x86   : > { %v3498_v34 = vld [vmem:[%s3796_s28 + $0x254] sm:$0xf0]  ;;  %v2915_v61 = vld [vmem:[%s3796_s28 + $0x408] sm:$0xf] }
  0x87   : > { %1787 = vmatpush.bf16.msrb.mxu2 %v2468_v41  ;;  %1800 = vmatpush.bf16.msrb.mxu3 %v2596_v45  ;;  %v2532_v41 = vor.u32 %v3458_v25, %v2531_v24  ;;  %v2755_v45 = vld [vmem:[%s3796_s28 + $0x2c8] sm:$0xf]  ;;  %v3598_v25 = vld [vmem:[%s3796_s28 + $0x574] sm:$0xf0] }
  0x88   : > { %1762 = vmatpush.bf16.msrb.mxu0 %v3088_v51  ;;  %1775 = vmatpush.bf16.msrb.mxu1 %v3216_v52  ;;  %v3578_v51 = vld [vmem:[%s3796_s28 + $0x4d4] sm:$0xf0]  ;;  %v3139_v52 = vld [vmem:[%s3796_s28 + $0x5c8] sm:$0xf]  ;;  %v2756_v54 = vor.u32 %v3514_v46, %v2755_v45 }
  0x89   : > { %v3012_v56 = vor.u32 %v3578_v51, %v3011_v50  ;;  %v3091_v24 = vld [vmem:[%s3796_s28 + $0x568] sm:$0xf]  ;;  %v3562_v39 = vld [vmem:[%s3796_s28 + $0x454] sm:$0xf0] }
  0x8a   : > { %v3092_v36 = vor.u32 %v3598_v25, %v3091_v24  ;;  %v2675_v45 = vld [vmem:[%s3796_s28 + $0x228] sm:$0xf]  ;;  %v3494_v46 = vld [vmem:[%s3796_s28 + $0x234] sm:$0xf0]  ;;  %v3512_v24 = vld [vmem:[%s3796_s28 + $0x2cc] sm:$0xf] }
  0x8b   : > { %1788 = vmatpush.bf16.msrb.mxu2 %v2452_v53  ;;  %1801 = vmatpush.bf16.msrb.mxu3 %v2580_v57  ;;  %v3610_v53 = vld [vmem:[%s3796_s28 + $0x5d4] sm:$0xf0]  ;;  %v2739_v57 = vld [vmem:[%s3796_s28 + $0x2a8] sm:$0xf]  ;;  %v2757_v25 = vld [vmem:[%s3796_s28 + $0x2d8] sm:$0xf0] }
  0x8c   : > { %1763 = vmatpush.bf16.msrb.mxu0 %v3072_v63  ;;  %1776 = vmatpush.bf16.msrb.mxu1 %v3200_v0  ;;  %v3140_v60 = vor.u32 %v3610_v53, %v3139_v52  ;;  %v3574_v63 = vld [vmem:[%s3796_s28 + $0x4b4] sm:$0xf0]  ;;  %v3123_v0 = vld [vmem:[%s3796_s28 + $0x5a8] sm:$0xf]  ;;  %v2740_v2 = vor.u32 %v3510_v58, %v2739_v57 }
  0x8d   : > { %v2996_v4 = vor.u32 %v3574_v63, %v2995_v62  ;;  %v3526_v49 = vld [vmem:[%s3796_s28 + $0x334] sm:$0xf0]  ;;  %v2931_v50 = vld [vmem:[%s3796_s28 + $0x428] sm:$0xf] }
  0x8e   : > { %v3558_v51 = vld [vmem:[%s3796_s28 + $0x434] sm:$0xf0]  ;;  %v3059_v52 = vld [vmem:[%s3796_s28 + $0x528] sm:$0xf]  ;;  %v2804_v57 = vor.u32 %v3526_v49, %v2803_v47  ;;  %v3472_v47 = vld [vmem:[%s3796_s28 + $0x18c] sm:$0xf] }
  0x8f   : > { %1789 = vmatpush.bf16.msrb.mxu2 %v2436_v1  ;;  %1802 = vmatpush.bf16.msrb.mxu3 %v2564_v5  ;;  %v3606_v1 = vld [vmem:[%s3796_s28 + $0x5b4] sm:$0xf0]  ;;  %v2723_v5 = vld [vmem:[%s3796_s28 + $0x288] sm:$0xf]  ;;  %v2932_v58 = vor.u32 %v3558_v51, %v2931_v50  ;;  %v3504_v49 = vld [vmem:[%s3796_s28 + $0x28c] sm:$0xf] }
  0x90   : > { %1764 = vmatpush.bf16.msrb.mxu0 %v3056_v11  ;;  %1777 = vmatpush.bf16.msrb.mxu1 %v3184_v14  ;;  %v3124_v7 = vor.u32 %v3606_v1, %v3123_v0  ;;  %v2707_v14 = vld [vmem:[%s3796_s28 + $0x268] sm:$0xf]  ;;  %v3590_v53 = vld [vmem:[%s3796_s28 + $0x534] sm:$0xf0] }
  0x91   : > { %v3060_v62 = vor.u32 %v3590_v53, %v3059_v52  ;;  %v3554_v63 = vld [vmem:[%s3796_s28 + $0x414] sm:$0xf0]  ;;  %v3043_v0 = vld [vmem:[%s3796_s28 + $0x508] sm:$0xf] }
  0x92   : > { %v3586_v1 = vld [vmem:[%s3796_s28 + $0x514] sm:$0xf0]  ;;  %v3219_v53 = vld [vmem:[%s3796_s28 + $0x668] sm:$0xf] }
  0x93   : > { %1790 = vmatpush.bf16.msrb.mxu2 %v2420_v15  ;;  %1803 = vmatpush.bf16.msrb.mxu3 %v2548_v19  ;;  %v3502_v15 = vld [vmem:[%s3796_s28 + $0x274] sm:$0xf0]  ;;  %v2963_v19 = vld [vmem:[%s3796_s28 + $0x468] sm:$0xf] }
  0x94   : > { %1765 = vmatpush.bf16.msrb.mxu0 %v3040_v31  ;;  %1778 = vmatpush.bf16.msrb.mxu1 %v3168_v37  ;;  %v2708_v26 = vor.u32 %v3502_v15, %v2707_v14  ;;  %v2964_v29 = vor.u32 %v3566_v20, %v2963_v19  ;;  %v2691_v31 = vld [vmem:[%s3796_s28 + $0x248] sm:$0xf]  ;;  %v3530_v37 = vld [vmem:[%s3796_s28 + $0x354] sm:$0xf0]  ;;  %v3480_v19 = vld [vmem:[%s3796_s28 + $0x1cc] sm:$0xf] }
  0x95   : > { %v3267_v14 = vld [vmem:[%s3796_s28 + $0x6c8] sm:$0xf]  ;;  %v3642_v15 = vld [vmem:[%s3796_s28 + $0x6d4] sm:$0xf0]  ;;  %v2629_v20 = vld [vmem:[%s3796_s28 + $0x1d8] sm:$0xf0] }
  0x97   : > { %1791 = vmatpush.bf16.msrb.mxu2 %v2404_v38  ;;  %1804 = vmatpush.bf16.msrb.mxu3 %v2532_v41  ;;  %v2947_v38 = vld [vmem:[%s3796_s28 + $0x448] sm:$0xf]  ;;  %v3594_v41 = vld [vmem:[%s3796_s28 + $0x554] sm:$0xf0] }
  0x98   : > { %1810 = vmatpush.bf16.msra.mxu0 %v2772_v42  ;;  %1823 = vmatpush.bf16.msra.mxu1 %v2900_v43  ;;  %v2692_v42 = vor.u32 %v3498_v34, %v2691_v31  ;;  %v2820_v43 = vor.u32 %v3530_v37, %v2819_v35  ;;  %v3251_v31 = vld [vmem:[%s3796_s28 + $0x6a8] sm:$0xf]  ;;  %v3638_v34 = vld [vmem:[%s3796_s28 + $0x6b4] sm:$0xf0]  ;;  %v3444_v35 = vld [vmem:[%s3796_s28 + $0xac] sm:$0xf] }
  0x99   : > { %1766 = vmatmul.bf16.vlgmr.msrb.gmra.mxu0 %v3964_v33  ;;  %1779 = vmatmul.bf16.vlgmr.msrb.gmra.mxu1 %v3960_v30  ;;  %v3506_v30 = vld [vmem:[%s3796_s28 + $0x294] sm:$0xf0]  ;;  %v2485_v37 = vld [vmem:[%s3796_s28 + $0xb8] sm:$0xf0] }
  0x9a   : > { %1792 = vmatmul.bf16.vlgmr.msrb.gmra.mxu2 %v3906_v22  ;;  %1805 = vmatmul.bf16.vlgmr.msrb.gmra.mxu3 %v3908_v23  ;;  %v2979_v22 = vld [vmem:[%s3796_s28 + $0x488] sm:$0xf]  ;;  %v3602_v23 = vld [vmem:[%s3796_s28 + $0x594] sm:$0xf0]  ;;  %v2724_v11 = vor.u32 %v3506_v30, %v2723_v5  ;;  %v2517_v30 = vld [vmem:[%s3796_s28 + $0xf8] sm:$0xf0] }
  0x9b   : > { %1836 = vmatpush.bf16.msra.mxu2 %v3028_v44  ;;  %1849 = vmatpush.bf16.msra.mxu3 %v3156_v48  ;;  %v2980_v13 = vor.u32 %v3570_v9, %v2979_v22  ;;  %v3108_v17 = vor.u32 %v3602_v23, %v3107_v10  ;;  %v2948_v44 = vor.u32 %v3562_v39, %v2947_v38  ;;  %v3516_v9 = vld [vmem:[%s3796_s28 + $0x2ec] sm:$0xf]  ;;  %v2773_v10 = vld [vmem:[%s3796_s28 + $0x2f8] sm:$0xf0] }
  0x9c   : > { %1811 = vmatpush.bf16.msra.mxu0 %v2756_v54  ;;  %1824 = vmatpush.bf16.msra.mxu1 %v2884_v55  ;;  %v3076_v48 = vor.u32 %v3594_v41, %v3075_v40  ;;  %v2676_v54 = vor.u32 %v3494_v46, %v2675_v45  ;;  %v2659_v55 = vld [vmem:[%s3796_s28 + $0x208] sm:$0xf]  ;;  %v2916_v22 = vor.u32 %v3554_v63, %v2915_v61  ;;  %v3476_v38 = vld [vmem:[%s3796_s28 + $0x1ac] sm:$0xf]  ;;  %v2613_v39 = vld [vmem:[%s3796_s28 + $0x1b8] sm:$0xf0] }
  0x9d   : > { %v3044_v23 = vor.u32 %v3586_v1, %v3043_v0  ;;  %v3508_v40 = vld [vmem:[%s3796_s28 + $0x2ac] sm:$0xf]  ;;  %v2741_v41 = vld [vmem:[%s3796_s28 + $0x2b8] sm:$0xf0]  ;;  %v3203_v1 = vld [vmem:[%s3796_s28 + $0x648] sm:$0xf] }
  0x9e   : > { %v3440_v45 = vld [vmem:[%s3796_s28 + $0x8c] sm:$0xf]  ;;  %v2469_v46 = vld [vmem:[%s3796_s28 + $0x98] sm:$0xf0] }
  0x9f   : > { %1837 = vmatpush.bf16.msra.mxu2 %v3012_v56  ;;  %1850 = vmatpush.bf16.msra.mxu3 %v3140_v60  ;;  %v3490_v56 = vld [vmem:[%s3796_s28 + $0x214] sm:$0xf0]  ;;  %v2472_v51 = vor.u32 %v3440_v45, %v2469_v46  ;;  %v2709_v61 = vld [vmem:[%s3796_s28 + $0x278] sm:$0xf0]  ;;  %v3612_v46 = vld [vmem:[%s3796_s28 + $0x5ec] sm:$0xf] }
  0xa0   : > { %1812 = vmatpush.bf16.msra.mxu0 %v2740_v2  ;;  %1825 = vmatpush.bf16.msra.mxu1 %v2868_v3  ;;  %v3522_v60 = vld [vmem:[%s3796_s28 + $0x314] sm:$0xf0]  ;;  %v3283_v2 = vld [vmem:[%s3796_s28 + $0x6e8] sm:$0xf]  ;;  %v2660_v5 = vor.u32 %v3490_v56, %v2659_v55  ;;  %v3436_v55 = vld [vmem:[%s3796_s28 + $0x6c] sm:$0xf] }
  0xa1   : > { %v3646_v3 = vld [vmem:[%s3796_s28 + $0x6f4] sm:$0xf0]  ;;  %v2788_v8 = vor.u32 %v3522_v60, %v2787_v59  ;;  %v2581_v59 = vld [vmem:[%s3796_s28 + $0x178] sm:$0xf0]  ;;  %v3500_v60 = vld [vmem:[%s3796_s28 + $0x26c] sm:$0xf] }
  0xa3   : > { %1838 = vmatpush.bf16.msra.mxu2 %v2996_v4  ;;  %1851 = vmatpush.bf16.msra.mxu3 %v3124_v7  ;;  %v3452_v4 = vld [vmem:[%s3796_s28 + $0xec] sm:$0xf]  ;;  %v2645_v7 = vld [vmem:[%s3796_s28 + $0x1f8] sm:$0xf0] }
  0xa4   : > { %1813 = vmatpush.bf16.msra.mxu0 %v2724_v11  ;;  %1826 = vmatpush.bf16.msra.mxu1 %v2852_v12  ;;  %v3284_v11 = vor.u32 %v3646_v3, %v3283_v2  ;;  %v2520_v12 = vor.u32 %v3452_v4, %v2517_v30  ;;  %v3626_v2 = vld [vmem:[%s3796_s28 + $0x654] sm:$0xf0]  ;;  %v3432_v3 = vld [vmem:[%s3796_s28 + $0x4c] sm:$0xf]  ;;  %v2712_v4 = vor.u32 %v3500_v60, %v2709_v61 }
  0xa5   : > { %v3464_v30 = vld [vmem:[%s3796_s28 + $0x14c] sm:$0xf] }
  0xa6   : > { %v3576_v60 = vld [vmem:[%s3796_s28 + $0x4cc] sm:$0xf] }
  0xa7   : > { %1839 = vmatpush.bf16.msra.mxu2 %v2980_v13  ;;  %1852 = vmatpush.bf16.msra.mxu3 %v3108_v17  ;;  %v2648_v13 = vor.u32 %v3484_v6, %v2645_v7  ;;  %v2776_v17 = vor.u32 %v3516_v9, %v2773_v10  ;;  %v2565_v6 = vld [vmem:[%s3796_s28 + $0x158] sm:$0xf0]  ;;  %v3496_v7 = vld [vmem:[%s3796_s28 + $0x24c] sm:$0xf] }
  0xa8   : > { %1814 = vmatpush.bf16.msra.mxu0 %v2708_v26  ;;  %1827 = vmatpush.bf16.msra.mxu1 %v2836_v28  ;;  %v3268_v26 = vor.u32 %v3642_v15, %v3267_v14  ;;  %v2504_v28 = vor.u32 %v3448_v16, %v2501_v18  ;;  %v3428_v14 = vld [vmem:[%s3796_s28 + $0x2c] sm:$0xf] }
  0xa9   : > { %v3460_v18 = vld [vmem:[%s3796_s28 + $0x12c] sm:$0xf] }
  0xab   : > { %1840 = vmatpush.bf16.msra.mxu2 %v2964_v29  ;;  %1853 = vmatpush.bf16.msra.mxu3 %v3092_v36  ;;  %v2632_v29 = vor.u32 %v3480_v19, %v2629_v20  ;;  %v2760_v36 = vor.u32 %v3512_v24, %v2757_v25  ;;  %v2549_v19 = vld [vmem:[%s3796_s28 + $0x138] sm:$0xf0]  ;;  %v3492_v20 = vld [vmem:[%s3796_s28 + $0x22c] sm:$0xf] }
  0xac   : > { %1815 = vmatpush.bf16.msra.mxu0 %v2692_v42  ;;  %1828 = vmatpush.bf16.msra.mxu1 %v2820_v43  ;;  %v3252_v42 = vor.u32 %v3638_v34, %v3251_v31  ;;  %v2616_v43 = vor.u32 %v3476_v38, %v2613_v39  ;;  %v2677_v24 = vld [vmem:[%s3796_s28 + $0x238] sm:$0xf0]  ;;  %v2552_v31 = vor.u32 %v3460_v18, %v2549_v19  ;;  %v3424_v34 = vld [vmem:[%s3796_s28 + $0xc] sm:$0xf]  ;;  %v3698_v18 = vld [vmem:[#allocation1] sm:$0xff] }
  0xad   : > { %v2680_v38 = vor.u32 %v3492_v20, %v2677_v24  ;;  %v2533_v39 = vld [vmem:[%s3796_s28 + $0x118] sm:$0xf0]  ;;  %v3536_v24 = vld [vmem:[%s3796_s28 + $0x38c] sm:$0xf] }
  0xaf   : > { %1841 = vmatpush.bf16.msra.mxu2 %v2948_v44  ;;  %1854 = vmatpush.bf16.msra.mxu3 %v3076_v48  ;;  %v3235_v44 = vld [vmem:[%s3796_s28 + $0x688] sm:$0xf]  ;;  %v2597_v48 = vld [vmem:[%s3796_s28 + $0x198] sm:$0xf0] }
  0xb0   : > { %1816 = vmatpush.bf16.msra.mxu0 %v2676_v54  ;;  %1829 = vmatpush.bf16.msra.mxu1 %v2804_v57  ;;  %v2600_v52 = vor.u32 %v3472_v47, %v2597_v48  ;;  %v3630_v54 = vld [vmem:[%s3796_s28 + $0x674] sm:$0xf0]  ;;  %v2453_v57 = vld [vmem:[%s3796_s28 + $0x78] sm:$0xf0] }
  0xb1   : > { %v2456_v63 = vor.u32 %v3436_v55, %v2453_v57  ;;  %v3157_v47 = vld [vmem:[%s3796_s28 + $0x5f8] sm:$0xf0] }
  0xb2   : > { %v3160_v57 = vor.u32 %v3612_v46, %v3157_v47  ;;  %v3093_v46 = vld [vmem:[%s3796_s28 + $0x578] sm:$0xf0]  ;;  %v3628_v47 = vld [vmem:[%s3796_s28 + $0x66c] sm:$0xf] }
  0xb3   : > { %1842 = vmatpush.bf16.msra.mxu2 %v2932_v58  ;;  %1855 = vmatpush.bf16.msra.mxu3 %v3060_v62  ;;  %v3468_v58 = vld [vmem:[%s3796_s28 + $0x16c] sm:$0xf]  ;;  %v3220_v62 = vor.u32 %v3630_v54, %v3219_v53  ;;  %v3285_v53 = vld [vmem:[%s3796_s28 + $0x6f8] sm:$0xf0] }
  0xb4   : > { %1817 = vmatpush.bf16.msra.mxu0 %v2660_v5  ;;  %1830 = vmatpush.bf16.msra.mxu1 %v2788_v8  ;;  %v2584_v0 = vor.u32 %v3468_v58, %v2581_v59  ;;  %v2437_v5 = vld [vmem:[%s3796_s28 + $0x58] sm:$0xf0]  ;;  %v3544_v58 = vld [vmem:[%s3796_s28 + $0x3cc] sm:$0xf] }
  0xb5   : > { %v2693_v8 = vld [vmem:[%s3796_s28 + $0x258] sm:$0xf0] }
  0xb6   : > { %v2696_v16 = vor.u32 %v3496_v7, %v2693_v8  ;;  %v2885_v59 = vld [vmem:[%s3796_s28 + $0x3d8] sm:$0xf0]  ;;  %v3572_v8 = vld [vmem:[%s3796_s28 + $0x4ac] sm:$0xf] }
  0xb7   : > { %1843 = vmatpush.bf16.msra.mxu2 %v2916_v22  ;;  %1856 = vmatpush.bf16.msra.mxu3 %v3044_v23  ;;  %v3204_v22 = vor.u32 %v3626_v2, %v3203_v1  ;;  %v2440_v23 = vor.u32 %v3432_v3, %v2437_v5  ;;  %v3640_v1 = vld [vmem:[%s3796_s28 + $0x6cc] sm:$0xf]  ;;  %v3269_v2 = vld [vmem:[%s3796_s28 + $0x6d8] sm:$0xf0] }
  0xb8   : > { %1862 = vmatpush.bf16.msrb.mxu0 %v3284_v11  ;;  %1875 = vmatpush.bf16.msrb.mxu1 %v2520_v12  ;;  %v2568_v11 = vor.u32 %v3464_v30, %v2565_v6  ;;  %v3187_v12 = vld [vmem:[%s3796_s28 + $0x628] sm:$0xf]  ;;  %v3540_v6 = vld [vmem:[%s3796_s28 + $0x3ac] sm:$0xf]  ;;  %v2869_v7 = vld [vmem:[%s3796_s28 + $0x3b8] sm:$0xf0] }
  0xb9   : > { %1818 = vmatmul.bf16.vlgmr.msra.gmra.mxu0 %v3904_v21  ;;  %1831 = vmatmul.bf16.vlgmr.msra.gmra.mxu1 %v3913_v27  ;;  %v3634_v21 = vld [vmem:[%s3796_s28 + $0x694] sm:$0xf0]  ;;  %v2725_v27 = vld [vmem:[%s3796_s28 + $0x298] sm:$0xf0] }
  0xba   : > { %1844 = vmatmul.bf16.vlgmr.msra.gmra.mxu2 %v3962_v32  ;;  %1857 = vmatmul.bf16.vlgmr.msra.gmra.mxu3 %v3964_v33  ;;  %v2488_v32 = vor.u32 %v3444_v35, %v2485_v37  ;;  %v2744_v33 = vor.u32 %v3508_v40, %v2741_v41  ;;  %v3236_v50 = vor.u32 %v3634_v21, %v3235_v44  ;;  %v2405_v35 = vld [vmem:[%s3796_s28 + $0x18] sm:$0xf0]  ;;  %v3488_v40 = vld [vmem:[%s3796_s28 + $0x20c] sm:$0xf] }
  0xbb   : > { %1888 = vmatpush.bf16.msrb.mxu2 %v2648_v13  ;;  %1901 = vmatpush.bf16.msrb.mxu3 %v2776_v17  ;;  %v2728_v56 = vor.u32 %v3504_v49, %v2725_v27  ;;  %v3622_v13 = vld [vmem:[%s3796_s28 + $0x634] sm:$0xf0]  ;;  %v2421_v17 = vld [vmem:[%s3796_s28 + $0x38] sm:$0xf0]  ;;  %v3580_v44 = vld [vmem:[%s3796_s28 + $0x4ec] sm:$0xf] }
  0xbc   : > { %1863 = vmatpush.bf16.msrb.mxu0 %v3268_v26  ;;  %1876 = vmatpush.bf16.msrb.mxu1 %v2504_v28  ;;  %v3188_v25 = vor.u32 %v3622_v13, %v3187_v12  ;;  %v3171_v26 = vld [vmem:[%s3796_s28 + $0x608] sm:$0xf]  ;;  %v3618_v28 = vld [vmem:[%s3796_s28 + $0x614] sm:$0xf0]  ;;  %v2661_v41 = vld [vmem:[%s3796_s28 + $0x218] sm:$0xf0] }
  0xbd   : > { %v3172_v45 = vor.u32 %v3618_v28, %v3171_v26  ;;  %v2664_v54 = vor.u32 %v3488_v40, %v2661_v41  ;;  %v3125_v12 = vld [vmem:[%s3796_s28 + $0x5b8] sm:$0xf0]  ;;  %v3696_v13 = vld [vmem:[#allocation1 + $0x9] sm:$0xff] }
  0xbe   : > { %v3568_v26 = vld [vmem:[%s3796_s28 + $0x48c] sm:$0xf] }
  0xbf   : > { %1889 = vmatpush.bf16.msrb.mxu2 %v2632_v29  ;;  %1902 = vmatpush.bf16.msrb.mxu3 %v2760_v36  ;;  %v2424_v29 = vor.u32 %v3428_v14, %v2421_v17  ;;  %v3456_v36 = vld [vmem:[%s3796_s28 + $0x10c] sm:$0xf]  ;;  %v2872_v17 = vor.u32 %v3540_v6, %v2869_v7 }
  0xc0   : > { %1864 = vmatpush.bf16.msrb.mxu0 %v3252_v42  ;;  %1877 = vmatpush.bf16.msrb.mxu1 %v2488_v32  ;;  %v3548_v32 = vld [vmem:[%s3796_s28 + $0x3ec] sm:$0xf] }
  0xc1   : > { %v3636_v14 = vld [vmem:[%s3796_s28 + $0x6ac] sm:$0xf] }
  0xc2   : > { %v1611_v9 = vpop.f32.mrf.mxu0  ;;  %v3556_v6 = vld [vmem:[%s3796_s28 + $0x42c] sm:$0xf] }
  0xc3   : > { %1890 = vmatpush.bf16.msrb.mxu2 %v2616_v43  ;;  %1903 = vmatpush.bf16.msrb.mxu3 %v2744_v33  ;;  %v1624_v10 = vpop.f32.mrf.mxu1  ;;  %v2901_v43 = vld [vmem:[%s3796_s28 + $0x3f8] sm:$0xf0] }
  0xc4   : > { %1865 = vmatpush.bf16.msrb.mxu0 %v3236_v50  ;;  %1878 = vmatpush.bf16.msrb.mxu1 %v2472_v51  ;;  %v1625_v15 = vadd.f32 %v1624_v10, %v1611_v9  ;;  %v3029_v33 = vld [vmem:[%s3796_s28 + $0x4f8] sm:$0xf0]  ;;  %v2408_v50 = vor.u32 %v3424_v34, %v2405_v35  ;;  %v2536_v51 = vor.u32 %v3456_v36, %v2533_v39  ;;  %v3632_v35 = vld [vmem:[%s3796_s28 + $0x68c] sm:$0xf] }
  0xc5   : > { %v2904_v55 = vor.u32 %v3548_v32, %v2901_v43  ;;  %v4243_v9 = vld [vmem:[#allocation1 + $0x36] sm:$0xff]  ;;  %v3272_v10 = vor.u32 %v3640_v1, %v3269_v2  ;;  %v3564_v43 = vld [vmem:[%s3796_s28 + $0x46c] sm:$0xf] }
  0xc6   : > { %v3109_v34 = vld [vmem:[%s3796_s28 + $0x598] sm:$0xf0] }
  0xc7   : > { %1891 = vmatpush.bf16.msrb.mxu2 %v2600_v52  ;;  %1904 = vmatpush.bf16.msrb.mxu3 %v2728_v56  ;;  %v3644_v52 = vld [vmem:[%s3796_s28 + $0x6ec] sm:$0xf]  ;;  %v3032_v56 = vor.u32 %v3580_v44, %v3029_v33  ;;  %v3237_v36 = vld [vmem:[%s3796_s28 + $0x698] sm:$0xf0] }
  0xc8   : > { %1866 = vmatpush.bf16.msrb.mxu0 %v3220_v62  ;;  %1879 = vmatpush.bf16.msrb.mxu1 %v2456_v63  ;;  %v1637_v37 = vpop.f32.mrf.mxu2  ;;  %v3288_v61 = vor.u32 %v3644_v52, %v3285_v53  ;;  %v3013_v62 = vld [vmem:[%s3796_s28 + $0x4d8] sm:$0xf0]  ;;  %v3608_v63 = vld [vmem:[%s3796_s28 + $0x5cc] sm:$0xf] }
  0xc9   : > { %v1638_v42 = vadd.f32 %v1637_v37, %v1625_v15  ;;  %v1650_v21 = vpop.f32.mrf.mxu3  ;;  %v3016_v5 = vor.u32 %v3576_v60, %v3013_v62  ;;  %v3253_v15 = vld [vmem:[%s3796_s28 + $0x6b8] sm:$0xf0]  ;;  %v3596_v33 = vld [vmem:[%s3796_s28 + $0x56c] sm:$0xf] }
  0xca   : > { %v1613_v48 = vpop.f32.mrf.mxu0  ;;  %v3256_v28 = vor.u32 %v3636_v14, %v3253_v15  ;;  %v2837_v32 = vld [vmem:[%s3796_s28 + $0x378] sm:$0xf0]  ;;  %v3528_v52 = vld [vmem:[%s3796_s28 + $0x34c] sm:$0xf] }
  0xcb   : > { %1892 = vmatpush.bf16.msrb.mxu2 %v2584_v0  ;;  %1905 = vmatpush.bf16.msrb.mxu3 %v2712_v4  ;;  %v4228_v49 = vadd.f32 %v1650_v21, %v1638_v42  ;;  %v1626_v27 = vpop.f32.mrf.mxu1  ;;  %v3141_v0 = vld [vmem:[%s3796_s28 + $0x5d8] sm:$0xf0]  ;;  %v2888_v4 = vor.u32 %v3544_v58, %v2885_v59  ;;  %v3532_v42 = vld [vmem:[%s3796_s28 + $0x36c] sm:$0xf]  ;;  %v3240_v21 = vor.u32 %v3632_v35, %v3237_v36 }
  0xcc   : > { %1867 = vmatpush.bf16.msrb.mxu0 %v3204_v22  ;;  %1880 = vmatpush.bf16.msrb.mxu1 %v2440_v23  ;;  %v3144_v30 = vor.u32 %v3608_v63, %v3141_v0  ;;  %v2997_v23 = vld [vmem:[%s3796_s28 + $0x4b8] sm:$0xf0]  ;;  %v3592_v58 = vld [vmem:[%s3796_s28 + $0x54c] sm:$0xf] }
  0xcd   : > { %v3000_v19 = vor.u32 %v3572_v8, %v2997_v23  ;;  %v3221_v48 = vld [vmem:[%s3796_s28 + $0x678] sm:$0xf0]  ;;  %v3620_v23 = vld [vmem:[%s3796_s28 + $0x62c] sm:$0xf] }
  0xce   : > { %v2821_v53 = vld [vmem:[%s3796_s28 + $0x358] sm:$0xf0]  ;;  %v3520_v15 = vld [vmem:[%s3796_s28 + $0x30c] sm:$0xf] }
  0xcf   : > { %1893 = vmatpush.bf16.msrb.mxu2 %v2568_v11  ;;  %1906 = vmatpush.bf16.msrb.mxu3 %v2696_v16  ;;  %v3604_v11 = vld [vmem:[%s3796_s28 + $0x5ac] sm:$0xf]  ;;  %v3697_v16 = vld [vmem:[#allocation1 + $0x12] sm:$0xff]  ;;  %v3077_v59 = vld [vmem:[%s3796_s28 + $0x558] sm:$0xf0]  ;;  %v2824_v0 = vor.u32 %v3528_v52, %v2821_v53 }
  0xd0   : > { %1868 = vmatpush.bf16.msrb.mxu0 %v3188_v25  ;;  %1881 = vmatpush.bf16.msrb.mxu1 %v2424_v29  ;;  %v1639_v3 = vpop.f32.mrf.mxu2  ;;  %v3128_v20 = vor.u32 %v3604_v11, %v3125_v12  ;;  %v2853_v25 = vld [vmem:[%s3796_s28 + $0x398] sm:$0xf0] }
  0xd1   : > { %v1652_v22 = vpop.f32.mrf.mxu3  ;;  %v2981_v29 = vld [vmem:[%s3796_s28 + $0x498] sm:$0xf0]  ;;  %v2856_v37 = vor.u32 %v3536_v24, %v2853_v25  ;;  %v3584_v24 = vld [vmem:[%s3796_s28 + $0x50c] sm:$0xf] }
  0xd2   : > { %v2984_v40 = vor.u32 %v3568_v26, %v2981_v29  ;;  %v3205_v62 = vld [vmem:[%s3796_s28 + $0x658] sm:$0xf0]  ;;  %v3588_v22 = vld [vmem:[%s3796_s28 + $0x52c] sm:$0xf] }
  0xd3   : > { %1894 = vmatpush.bf16.msrb.mxu2 %v2552_v31  ;;  %1907 = vmatpush.bf16.msrb.mxu3 %v2680_v38  ;;  %v3600_v31 = vld [vmem:[%s3796_s28 + $0x58c] sm:$0xf]  ;;  %v2933_v8 = vld [vmem:[%s3796_s28 + $0x438] sm:$0xf0] }
  0xd4   : > { %1869 = vmatpush.bf16.msrb.mxu0 %v3172_v45  ;;  %1882 = vmatpush.bf16.msrb.mxu1 %v2408_v50  ;;  %v3112_v41 = vor.u32 %v3600_v31, %v3109_v34  ;;  %v2965_v45 = vld [vmem:[%s3796_s28 + $0x478] sm:$0xf0]  ;;  %v2840_v50 = vor.u32 %v3532_v42, %v2837_v32  ;;  %v3616_v26 = vld [vmem:[%s3796_s28 + $0x60c] sm:$0xf] }
  0xd5   : > { %v3189_v11 = vld [vmem:[%s3796_s28 + $0x638] sm:$0xf0] }
  0xd6   : > { %v1663_v38 = vpop.f32.mrf.mxu0  ;;  %v1676_v39 = vpop.f32.mrf.mxu1  ;;  %v3045_v25 = vld [vmem:[%s3796_s28 + $0x518] sm:$0xf0] }
  0xd7   : > { %1895 = vmatpush.bf16.msrb.mxu2 %v2536_v51  ;;  %1908 = vmatpush.bf16.msrb.mxu3 %v2664_v54  ;;  %v1664_v44 = vadd.f32 %v1663_v38, %v4228_v49  ;;  %v2968_v49 = vor.u32 %v3564_v43, %v2965_v45  ;;  %v3096_v51 = vor.u32 %v3596_v33, %v3093_v46  ;;  %v3560_v54 = vld [vmem:[%s3796_s28 + $0x44c] sm:$0xf]  ;;  %v3700_v38 = vld [vmem:[#allocation1 + $0x24] sm:$0xff] }
  0xd8   : > { %1914 = vmatpush.bf16.msra.mxu0 %v2904_v55  ;;  %1927 = vmatpush.bf16.msra.mxu1 %v3032_v56  ;;  %v3224_v56 = vor.u32 %v3628_v47, %v3221_v48  ;;  %v3048_v35 = vor.u32 %v3584_v24, %v3045_v25 }
  0xd9   : > { %1870 = vmatmul.bf16.vlgmr.msrb.gmra.mxu0 %v4243_v9  ;;  %1883 = vmatmul.bf16.vlgmr.msrb.gmra.mxu1 %v3698_v18  ;;  %v1677_v27 = vadd.f32 %v1676_v39, %v1664_v44  ;;  %v3701_v39 = vld [vmem:[#allocation1 + $0x2d] sm:$0xff] }
  0xda   : > { %1896 = vmatmul.bf16.vlgmr.msrb.gmra.mxu2 %v3696_v13  ;;  %1909 = vmatmul.bf16.vlgmr.msrb.gmra.mxu3 %v3697_v16  ;;  %v2936_v13 = vor.u32 %v3556_v6, %v2933_v8  ;;  %v2789_v16 = vld [vmem:[%s3796_s28 + $0x318] sm:$0xf0] }
  0xdb   : > { %1940 = vmatpush.bf16.msra.mxu2 %v3160_v57  ;;  %1953 = vmatpush.bf16.msra.mxu3 %v3288_v61  ;;  %v2949_v57 = vld [vmem:[%s3796_s28 + $0x458] sm:$0xf0]  ;;  %v3624_v61 = vld [vmem:[%s3796_s28 + $0x64c] sm:$0xf]  ;;  %v2792_v31 = vor.u32 %v3520_v15, %v2789_v16 }
  0xdc   : > { %1915 = vmatpush.bf16.msra.mxu0 %v2888_v4  ;;  %1928 = vmatpush.bf16.msra.mxu1 %v3016_v5  ;;  %v2952_v3 = vor.u32 %v3560_v54, %v2949_v57  ;;  %v3080_v4 = vor.u32 %v3592_v58, %v3077_v59  ;;  %v3524_v5 = vld [vmem:[%s3796_s28 + $0x32c] sm:$0xf]  ;;  %v3208_v7 = vor.u32 %v3624_v61, %v3205_v62 }
  0xdd   : > { %v1689_v55 = vpop.f32.mrf.mxu2  ;;  %v1702_v63 = vpop.f32.mrf.mxu3 }
  0xde   : > { %v4274_v60 = vadd.f32 %v1689_v55, %v1677_v27  ;;  %v1665_v1 = vpop.f32.mrf.mxu0  ;;  %v1678_v2 = vpop.f32.mrf.mxu1 }
  0xdf   : > { %1941 = vmatpush.bf16.msra.mxu2 %v3144_v30  ;;  %1954 = vmatpush.bf16.msra.mxu3 %v3272_v10  ;;  %v2805_v30 = vld [vmem:[%s3796_s28 + $0x338] sm:$0xf0] }
  0xe0   : > { %1916 = vmatpush.bf16.msra.mxu0 %v2872_v17  ;;  %1929 = vmatpush.bf16.msra.mxu1 %v3000_v19  ;;  %v3061_v10 = vld [vmem:[%s3796_s28 + $0x538] sm:$0xf0]  ;;  %v2808_v12 = vor.u32 %v3524_v5, %v2805_v30  ;;  %v3552_v17 = vld [vmem:[%s3796_s28 + $0x40c] sm:$0xf]  ;;  %v3192_v19 = vor.u32 %v3620_v23, %v3189_v11 }
  0xe1   : > { %v3064_v14 = vor.u32 %v3588_v22, %v3061_v10 }
  0xe3   : > { %1942 = vmatpush.bf16.msra.mxu2 %v3128_v20  ;;  %1955 = vmatpush.bf16.msra.mxu3 %v3256_v28  ;;  %v2917_v20 = vld [vmem:[%s3796_s28 + $0x418] sm:$0xf0] }
  0xe4   : > { %1917 = vmatpush.bf16.msra.mxu0 %v2856_v37  ;;  %1930 = vmatpush.bf16.msra.mxu1 %v2984_v40  ;;  %v3173_v28 = vld [vmem:[%s3796_s28 + $0x618] sm:$0xf0]  ;;  %v2920_v34 = vor.u32 %v3552_v17, %v2917_v20 }
  0xe5   : > { %v1691_v18 = vpop.f32.mrf.mxu2  ;;  %v1704_v29 = vpop.f32.mrf.mxu3  ;;  %v3176_v36 = vor.u32 %v3616_v26, %v3173_v28  ;;  %v3699_v37 = vld [vmem:[#allocation1 + $0x1b] sm:$0xff] }
  0xe7   : > { %1943 = vmatpush.bf16.msra.mxu2 %v3112_v41  ;;  %1956 = vmatpush.bf16.msra.mxu3 %v3240_v21 }
  0xe8   : > { %1918 = vmatpush.bf16.msra.mxu0 %v2840_v50  ;;  %1931 = vmatpush.bf16.msra.mxu1 %v2968_v49 }
  0xeb   : > { %1944 = vmatpush.bf16.msra.mxu2 %v3096_v51  ;;  %1957 = vmatpush.bf16.msra.mxu3 %v3224_v56 }
  0xec   : > { %1919 = vmatpush.bf16.msra.mxu0 %v2824_v0  ;;  %1932 = vmatpush.bf16.msra.mxu1 %v2952_v3 }
  0xef   : > { %1945 = vmatpush.bf16.msra.mxu2 %v3080_v4  ;;  %1958 = vmatpush.bf16.msra.mxu3 %v3208_v7 }
  0xf0   : > { %1920 = vmatpush.bf16.msra.mxu0 %v2808_v12  ;;  %1933 = vmatpush.bf16.msra.mxu1 %v2936_v13 }
  0xf3   : > { %1946 = vmatpush.bf16.msra.mxu2 %v3064_v14  ;;  %1959 = vmatpush.bf16.msra.mxu3 %v3192_v19 }
  0xf4   : > { %1921 = vmatpush.bf16.msra.mxu0 %v2792_v31  ;;  %1934 = vmatpush.bf16.msra.mxu1 %v2920_v34 }
  0xf6   : > { %v1715_v40 = vpop.f32.mrf.mxu0  ;;  %v1728_v42 = vpop.f32.mrf.mxu1 }
  0xf7   : > { %1947 = vmatpush.bf16.msra.mxu2 %v3048_v35  ;;  %1960 = vmatpush.bf16.msra.mxu3 %v3176_v36  ;;  %v1716_v41 = vadd.f32 %v1715_v40, %v1702_v63  ;;  %v240_v36 = vld [vmem:[#allocation2] sm:$0xff] }
  0xf8   : > { %1922 = vmatmul.bf16.vlgmr.msra.gmra.mxu0 %v3699_v37  ;;  %1935 = vmatmul.bf16.vlgmr.msra.gmra.mxu1 %v3700_v38 }
  0xf9   : > { %v1729_v32 = vadd.f32 %v1728_v42, %v1716_v41 }
  0xfa   : > { %1948 = vmatmul.bf16.vlgmr.msra.gmra.mxu2 %v3701_v39  ;;  %1961 = vmatmul.bf16.vlgmr.msra.gmra.mxu3 %v4243_v9 }
  0xfd   : > { %v1741_v43 = vpop.f32.mrf.mxu2  ;;  %v1754_v21 = vpop.f32.mrf.mxu3 }
  0xfe   : > { %v1742_v44 = vadd.f32 %v1741_v43, %v1729_v32  ;;  %v1717_v33 = vpop.f32.mrf.mxu0  ;;  %v1730_v46 = vpop.f32.mrf.mxu1 }
 0x100   : > { %v1755_v45 = vadd.f32 %v1754_v21, %v1742_v44 }
 0x105   : > { %v1743_v47 = vpop.f32.mrf.mxu2  ;;  %v1756_v48 = vpop.f32.mrf.mxu3 }
 0x116   : > { %v1767_v27 = vpop.f32.mrf.mxu0  ;;  %v1780_v49 = vpop.f32.mrf.mxu1 }
 0x117   : > { %v1768_v50 = vadd.f32 %v1767_v27, %v1755_v45 }
 0x119   : > { %v1781_v51 = vadd.f32 %v1780_v49, %v1768_v50 }
 0x11b   : > { %v1970_v52 = vrot.slane %v1781_v51, 6 }
 0x11d   : > { %v1974_v9 = vsel %vm1973_vm0, %v4274_v60, %v1970_v52  ;;  %v1793_v53 = vpop.f32.mrf.mxu2  ;;  %v1806_v54 = vpop.f32.mrf.mxu3 }
 0x11e   : > { %v1769_v55 = vpop.f32.mrf.mxu0  ;;  %v1807_v56 = vadd.f32 %v1806_v54, %v1793_v53  ;;  %v1782_v57 = vpop.f32.mrf.mxu1 }
 0x125   : > { %v1795_v58 = vpop.f32.mrf.mxu2  ;;  %v1808_v59 = vpop.f32.mrf.mxu3 }
 0x136   : > { %v1819_v61 = vpop.f32.mrf.mxu0  ;;  %v1832_v62 = vpop.f32.mrf.mxu1 }
 0x137   : > { %v1820_v23 = vadd.f32 %v1819_v61, %v1807_v56 }
 0x139   : > { %v1833_v12 = vadd.f32 %v1832_v62, %v1820_v23 }
 0x13d   : > { %v1845_v63 = vpop.f32.mrf.mxu2  ;;  %v1858_v0 = vpop.f32.mrf.mxu3 }
 0x13e   : > { %v1821_v1 = vpop.f32.mrf.mxu0  ;;  %v1834_v2 = vpop.f32.mrf.mxu1  ;;  %v1846_v16 = vadd.f32 %v1845_v63, %v1833_v12 }
 0x140   : > { %v1859_v18 = vadd.f32 %v1858_v0, %v1846_v16 }
 0x145   : > { %v1847_v3 = vpop.f32.mrf.mxu2  ;;  %v1860_v4 = vpop.f32.mrf.mxu3 }
 0x156   : > { %v1871_v5 = vpop.f32.mrf.mxu0  ;;  %v1884_v30 = vpop.f32.mrf.mxu1 }
 0x157   : > { %v1872_v24 = vadd.f32 %v1871_v5, %v1859_v18 }
 0x159   : > { %v1971_v34 = vrot.slane %v1872_v24, 4 }
 0x15d   : > { %v1897_v6 = vpop.f32.mrf.mxu2  ;;  %v1910_v7 = vpop.f32.mrf.mxu3 }
 0x15e   : > { %v1873_v60 = vpop.f32.mrf.mxu0  ;;  %v1886_v8 = vpop.f32.mrf.mxu1  ;;  %v1898_v11 = vadd.f32 %v1897_v6, %v1884_v30 }
 0x160   : > { %v1911_v13 = vadd.f32 %v1910_v7, %v1898_v11 }
 0x165   : > { %v1899_v22 = vpop.f32.mrf.mxu2  ;;  %v1912_v10 = vpop.f32.mrf.mxu3 }
 0x175   : > { %v1923_v14 = vpop.f32.mrf.mxu0  ;;  %v1936_v15 = vpop.f32.mrf.mxu1 }
 0x176   : > { %v1924_v17 = vadd.f32 %v1923_v14, %v1911_v13 }
 0x178   : > { %v1937_v19 = vadd.f32 %v1936_v15, %v1924_v17 }
 0x17d   : > { %v1949_v20 = vpop.f32.mrf.mxu2  ;;  %v1962_v26 = vpop.f32.mrf.mxu3 }
 0x17e   : > { %v1950_v25 = vadd.f32 %v1949_v20, %v1937_v19  ;;  %v1925_v28 = vpop.f32.mrf.mxu0  ;;  %v1938_v29 = vpop.f32.mrf.mxu1 }
 0x180   : > { %v1963_v31 = vadd.f32 %v1962_v26, %v1950_v25 }
 0x182   : > { %v1972_v35 = vrot.slane %v1963_v31, 2 }
 0x184   : > { %v1976_v37 = vsel %vm1975_vm1, %v1971_v34, %v1972_v35  ;;  %1985 = sbr.rel (%p3289_p6) target bundleno = 568 (0x238), region = 48 }
 0x185   : > { %v1978_v38 = vsel %vm1977_vm2, %v1974_v9, %v1976_v37  ;;  %v1951_v39 = vpop.f32.mrf.mxu2  ;;  %v1964_v41 = vpop.f32.mrf.mxu3 }
 0x186   : > { %v1980_v40 = vadd.f32 %v1978_v38, %v240_v36 }
 0x188   : > { %1981 = vst [vmem:[#allocation2] sm:$0xff] %v1980_v40 }
 0x189   : > { %v3654_v42 = vld [vmem:[%s4415_s3 + $0x38] sm:$0xff]  ;;  %v3653_v21 = vld [vmem:[%s4415_s3 + $0x30] sm:$0xff]  ;;  %v3652_v47 = vld [vmem:[%s4415_s3 + $0x28] sm:$0xff] }
 0x18a   : > { %v3662_v32 = vld [vmem:[%s4415_s3 + $0x78] sm:$0xff]  ;;  %2276 = vmatpush.bf16.msra.mxu0 %v3654_v42  ;;  %v3661_v45 = vld [vmem:[%s4415_s3 + $0x70] sm:$0xff]  ;;  %v3660_v48 = vld [vmem:[%s4415_s3 + $0x68] sm:$0xff] }
 0x18b   : > { %v3670_v43 = vld [vmem:[%s4415_s3 + $0xb8] sm:$0xff]  ;;  %2289 = vmatpush.bf16.msra.mxu1 %v3662_v32  ;;  %v3669_v33 = vld [vmem:[%s4415_s3 + $0xb0] sm:$0xff]  ;;  %v3668_v27 = vld [vmem:[%s4415_s3 + $0xa8] sm:$0xff] }
 0x18c   : > { %v3678_v44 = vld [vmem:[%s4415_s3 + $0xf8] sm:$0xff]  ;;  %2302 = vmatpush.bf16.msra.mxu2 %v3670_v43  ;;  %v3677_v46 = vld [vmem:[%s4415_s3 + $0xf0] sm:$0xff]  ;;  %v3676_v50 = vld [vmem:[%s4415_s3 + $0xe8] sm:$0xff] }
 0x18d   : > { %2315 = vmatpush.bf16.msra.mxu3 %v3678_v44  ;;  %v3651_v49 = vld [vmem:[%s4415_s3 + $0x20] sm:$0xff]  ;;  %v3650_v58 = vld [vmem:[%s4415_s3 + $0x18] sm:$0xff]  ;;  %v3649_v30 = vld [vmem:[%s4415_s3 + $0x10] sm:$0xff] }
 0x18e   : > { %2277 = vmatpush.bf16.msra.mxu0 %v3653_v21  ;;  %v3659_v51 = vld [vmem:[%s4415_s3 + $0x60] sm:$0xff]  ;;  %v3658_v59 = vld [vmem:[%s4415_s3 + $0x58] sm:$0xff]  ;;  %v3657_v6 = vld [vmem:[%s4415_s3 + $0x50] sm:$0xff] }
 0x18f   : > { %2290 = vmatpush.bf16.msra.mxu1 %v3661_v45  ;;  %v3667_v52 = vld [vmem:[%s4415_s3 + $0xa0] sm:$0xff]  ;;  %v3666_v0 = vld [vmem:[%s4415_s3 + $0x98] sm:$0xff]  ;;  %v1986_v2 = vld [vmem:[#allocation2] sm:$0xff] }
 0x190   : > { %2303 = vmatpush.bf16.msra.mxu2 %v3669_v33  ;;  %v3675_v9 = vld [vmem:[%s4415_s3 + $0xe0] sm:$0xff]  ;;  %v3674_v1 = vld [vmem:[%s4415_s3 + $0xd8] sm:$0xff]  ;;  %v3665_v60 = vld [vmem:[%s4415_s3 + $0x90] sm:$0xff] }
 0x191   : > { %2316 = vmatpush.bf16.msra.mxu3 %v3677_v46  ;;  %v1987_v53 = vld [vmem:[%s4414_s2] sm:$0xf]  ;;  %v3673_v8 = vld [vmem:[%s4415_s3 + $0xd0] sm:$0xff]  ;;  %v3648_v10 = vld [vmem:[%s4415_s3 + $0x8] sm:$0xff] }
 0x192   : > { %2278 = vmatpush.bf16.msra.mxu0 %v3652_v47  ;;  %v1989_v54 = vperm.slane %v1987_v53, 0  ;;  %v1990_v55 = vperm.slane %v1987_v53, 1  ;;  %v1991_v56 = vperm.slane %v1987_v53, 2  ;;  %v1992_v57 = vperm.slane %v1987_v53, 3  ;;  %v3656_v23 = vld [vmem:[%s4415_s3 + $0x48] sm:$0xff]  ;;  %v3647_v13 = vld [vmem:[%s4415_s3] sm:$0xff] }
 0x193   : > { %2291 = vmatpush.bf16.msra.mxu1 %v3660_v48  ;;  %v3664_v11 = vld [vmem:[%s4415_s3 + $0x88] sm:$0xff]  ;;  %v3655_v14 = vld [vmem:[%s4415_s3 + $0x40] sm:$0xff] }
 0x194   : > { %2304 = vmatpush.bf16.msra.mxu2 %v3668_v27  ;;  %v1993_v61 = vrot.slane %v1990_v55, 6  ;;  %v1994_v62 = vrot.slane %v1991_v56, 4  ;;  %v1995_v63 = vrot.slane %v1992_v57, 2  ;;  %v3672_v12 = vld [vmem:[%s4415_s3 + $0xc8] sm:$0xff]  ;;  %v3663_v15 = vld [vmem:[%s4415_s3 + $0x80] sm:$0xff] }
 0x195   : > { %2317 = vmatpush.bf16.msra.mxu3 %v3676_v50  ;;  %v3671_v16 = vld [vmem:[%s4415_s3 + $0xc0] sm:$0xff] }
 0x196   : > { %2279 = vmatpush.bf16.msra.mxu0 %v3651_v49  ;;  %v1996_v3 = vsel %vm1973_vm0, %v1989_v54, %v1993_v61  ;;  %v1997_v4 = vsel %vm1975_vm1, %v1994_v62, %v1995_v63  ;;  %v3702_v29 = vld [vmem:[%s4416_s4] ss:$0 sm:$0xff] }
 0x197   : > { %2292 = vmatpush.bf16.msra.mxu1 %v3659_v51  ;;  %v1998_v5 = vsel %vm1977_vm2, %v1996_v3, %v1997_v4 }
 0x198   : > { %2305 = vmatpush.bf16.msra.mxu2 %v3667_v52  ;;  %v2000_v7 = vadd.f32 %v1998_v5, %v1986_v2 }
 0x199   : > { %2318 = vmatpush.bf16.msra.mxu3 %v3675_v9 }
 0x19a   : > { %2280 = vmatpush.bf16.msra.mxu0 %v3650_v58  ;;  %v2001_v22 = vmax.f32 %v2000_v7, 0.0 }
 0x19b   : > { %2293 = vmatpush.bf16.msra.mxu1 %v3658_v59 }
 0x19c   : > { %2306 = vmatpush.bf16.msra.mxu2 %v3666_v0  ;;  %2003 = vst [vmem:[#allocation1] ss:$4 sm:$0xff] %v2001_v22 }
 0x19d   : > { %2319 = vmatpush.bf16.msra.mxu3 %v3674_v1 }
 0x19e   : > { %2281 = vmatpush.bf16.msra.mxu0 %v3649_v30 }
 0x19f   : > { %2294 = vmatpush.bf16.msra.mxu1 %v3657_v6 }
 0x1a0   : > { %2307 = vmatpush.bf16.msra.mxu2 %v3665_v60 }
 0x1a1   : > { %2320 = vmatpush.bf16.msra.mxu3 %v3673_v8 }
 0x1a2   : > { %2282 = vmatpush.bf16.msra.mxu0 %v3648_v10 }
 0x1a3   : > { %2295 = vmatpush.bf16.msra.mxu1 %v3656_v23  ;;  %v2004_v17 = vld.sshfl [vmem:[#allocation1] sm:$0xff pattern:$0x73625140]  ;;  %v2005_v18 = vld.sshfl [vmem:[#allocation1 + $0x8] sm:$0xff pattern:$0x73625140] }
 0x1a4   : > { %2308 = vmatpush.bf16.msra.mxu2 %v3664_v11  ;;  %v2012_v19 = vpack.c.bf16 %v2004_v17, %v2004_v17  ;;  %v2013_v20 = vpack.c.bf16 %v2005_v18, %v2005_v18  ;;  %v2006_v24 = vld.sshfl [vmem:[#allocation1 + $0x10] sm:$0xff pattern:$0x73625140]  ;;  %v2007_v25 = vld.sshfl [vmem:[#allocation1 + $0x18] sm:$0xff pattern:$0x73625140] }
 0x1a5   : > { %2321 = vmatpush.bf16.msra.mxu3 %v3672_v12  ;;  %v2014_v26 = vpack.c.bf16 %v2006_v24, %v2006_v24  ;;  %v2015_v28 = vpack.c.bf16 %v2007_v25, %v2007_v25 }
 0x1a6   : > { %2283 = vmatpush.bf16.msra.mxu0 %v3647_v13 }
 0x1a7   : > { %2296 = vmatpush.bf16.msra.mxu1 %v3655_v14 }
 0x1a8   : > { %2309 = vmatpush.bf16.msra.mxu2 %v3663_v15 }
 0x1a9   : > { %2322 = vmatpush.bf16.msra.mxu3 %v3671_v16  ;;  %2284 = vmatmul.bf16.vlgmr.msra.gmra.mxu0 %v2012_v19 }
 0x1aa   : > { %2297 = vmatmul.bf16.vlgmr.msra.gmra.mxu1 %v2013_v20 }
 0x1ab   : > { %2310 = vmatmul.bf16.vlgmr.msra.gmra.mxu2 %v2014_v26 }
 0x1ac   : > { %2323 = vmatmul.bf16.vlgmr.msra.gmra.mxu3 %v2015_v28 }
 0x226   : > { %v2285_v31 = vpop.f32.mrf.mxu0 }
 0x227   : > { %v2298_v34 = vpop.f32.mrf.mxu1  ;;  %v2286_v35 = vadd.f32 %v3702_v29, %v2285_v31 }
 0x229   : > { %v2299_v36 = vadd.f32 %v2298_v34, %v2286_v35 }
 0x22e   : > { %v2311_v37 = vpop.f32.mrf.mxu2  ;;  %v2287_v40 = vpop.f32.mrf.mxu0 }
 0x22f   : > { %v2324_v38 = vpop.f32.mrf.mxu3  ;;  %v2312_v39 = vadd.f32 %v2311_v37, %v2299_v36  ;;  %v2300_v41 = vpop.f32.mrf.mxu1 }
 0x231   : > { %v2325_v42 = vadd.f32 %v2324_v38, %v2312_v39 }
 0x233   : > { %2328 = vst [vmem:[#allocation3] sm:$0x3] %v2325_v42 }
 0x236   : > { %v2313_v32 = vpop.f32.mrf.mxu2 }
 0x237   : > { %v2326_v43 = vpop.f32.mrf.mxu3 }
 0x238 PF: > { %p3683_p7 = scmp.eq.s32.totalorder %s3781_s19, 6  ;;  %s3744_s30 = smov [#allocation3]  }
 0x239   : > { %s2335_s6 = sshll.u32 %s3744_s30, 4  ;;  %s2337_s9 = sshll.u32 %s4417_s5, 4  ;;  %s2336_s6 = int_to_ptr.vmem [resolvable:$true] %s2335_s6  ;;  %s2338_s9 = int_to_ptr.hbm [resolvable:$true] %s2337_s9 }
 0x23a   : > { %3680 = dma.vmem_to_hbm [thread:$0]  (%p3683_p7), %s2336_s6, 32, %s2338_s9, [#allocation4]  }
 0x23b   : > { %3736 = dma.done.wait (%p3683_p7), [#allocation4], 32  }
 0x23c   : > { %3738 = vsyncadd (%p3683_p7), [#allocation4], 4294967264 }
 0x23d PF: > { %s16_s18 = sadd.s32 1, %s3741_s18  }
 0x23e   : > { %p13_p8 = scmp.ge.s32.totalorder %s16_s18, 9  }
 0x240   :  { %15 = sbr.rel (!%p13_p8) target bundleno = 1 (0x1), region = 78 }
 0x245   :  { %2351 = vsyncpa [#allocation4], 1 }
 0x246   :  { %2353 = vsyncpa [#allocation4 + $0x1], 1 }

</bundles_post_ra>
